<compile_context>
chip_gen: v6e
topology: v6e:2x2x1
jax: 0.10.0
libtpu: 0.0.40
codegen_flags: <defaults>
</compile_context>

<pallas_src>
import jax
import jax.numpy as jnp
from jax.experimental import pallas as pl
from jax.experimental.pallas import tpu as pltpu


def wrapped_model_kernel(x_ref, wci_ref, bc_ref, wf_ref, bf_ref, o_ref):
    # x_ref  : (B, Hp, Wp, C)  zero-padded input tile (flip + /255 folded into wci)
    # wci_ref: (9*C, Cout)     im2col conv weights (channel-flipped, scaled)
    # bc_ref : (1, Cout)       conv bias
    # wf_ref : (Cout, NC)      fc weights
    # bf_ref : (1, NC)         fc bias
    # o_ref  : (1, 1, B) int32 argmax class index per image (lane-dense row)
    B, Hp, Wp, C = x_ref.shape
    H, W = Hp - 2, Wp - 2
    Cout = wci_ref.shape[1]
    NC = wf_ref.shape[1]

    x = x_ref[...]  # (B, Hp, Wp, C)

    # --- im2col: 9 shifted patches concatenated along the channel axis -------
    patches = []
    for kh in range(3):
        for kw in range(3):
            patches.append(
                x[:, kh:kh + H, kw:kw + W, :].reshape(B * H * W, C))
    cols = jnp.concatenate(patches, axis=1)             # (B*H*W, 9*C)

    # --- single MXU matmul + bias + ReLU --------------------------------------
    acc = jnp.dot(cols, wci_ref[...], preferred_element_type=jnp.float32)
    acc = jnp.maximum(acc + bc_ref[...], 0.0)           # (B*H*W, Cout)

    # --- global average pool per image ----------------------------------------
    pooled = jnp.sum(acc.reshape(B, H * W, Cout), axis=1) * (1.0 / float(H * W))

    # --- classifier head -> logits (B, NC) -------------------------------------
    logits = jnp.dot(pooled, wf_ref[...], preferred_element_type=jnp.float32)
    logits = logits + bf_ref[...]

    # --- topk(k=1, dim=1)[1] == argmax over classes (lowest-index tiebreak) -----
    iota = jax.lax.broadcasted_iota(jnp.int32, (B, NC), 1)
    mx = jnp.max(logits, axis=1, keepdims=True)
    idx = jnp.min(jnp.where(logits == mx, iota, NC), axis=1)  # (B,)
    o_ref[...] = idx.reshape(1, 1, B)


def wrapped_model_forward(x, wc, bc, wf, bf, *, block_n=None):
    """x: (N, H, W, C) float32 in [0, 255]. Returns (N, 1) int32 class index."""
    N, H, W, C = x.shape
    Cout = wc.shape[-1]
    NC = wf.shape[-1]
    Hp, Wp = H + 2, W + 2

    # Fold RGB->BGR flip (flip of the conv input-channel axis) and the 1/255
    # scale into the conv weights once on the host; the zero-padded border is
    # invariant under both, so this is exact up to f32 reassociation.
    wci = (wc[:, :, ::-1, :] * (1.0 / 255.0)).reshape(9 * C, Cout)  # (27, Cout)
    bc_r = bc.reshape(1, Cout)
    bf_r = bf.reshape(1, NC)

    # Batch block_n images per grid step to amortize the ~0.35us per-step
    # pipeline overhead and grow the MXU M dimension. block_n=128 keeps the
    # per-step working set (a few MB at 16x16x3) well inside default scoped
    # VMEM on v5e/v6e/v7x and still yields >=2 grid steps (both v7x TCs)
    # once N >= 256.
    if block_n is None:
        block_n = min(N, 128)
    G = pl.cdiv(N, block_n)
    Np = G * block_n

    # glue: pad batch to a multiple of block_n, zero-pad spatially for "same" conv
    x_pad = jnp.pad(x, ((0, Np - N), (1, 1), (1, 1), (0, 0)))

    out = pl.pallas_call(
        wrapped_model_kernel,
        out_shape=jax.ShapeDtypeStruct((G, 1, block_n), jnp.int32),
        grid_spec=pltpu.PrefetchScalarGridSpec(
            num_scalar_prefetch=0,
            grid=(G,),
            in_specs=[
                pl.BlockSpec((block_n, Hp, Wp, C), lambda g: (g, 0, 0, 0)),
                pl.BlockSpec((9 * C, Cout), lambda g: (0, 0)),
                pl.BlockSpec((1, Cout), lambda g: (0, 0)),
                pl.BlockSpec((Cout, NC), lambda g: (0, 0)),
                pl.BlockSpec((1, NC), lambda g: (0, 0)),
            ],
            out_specs=pl.BlockSpec((1, 1, block_n), lambda g: (g, 0, 0)),
        ),
        compiler_params=pltpu.CompilerParams(
            dimension_semantics=("parallel",)),
    )(x_pad, wci, bc_r, wf, bf_r)
    # TODO(synk): torch.topk returns int64 indices; int32 kept here (x64 off).
    return out.reshape(Np)[:N].reshape(N, 1)


def reference_forward(x, wc, bc, wf, bf):
    """Pure-JAX reference mirroring the PyTorch semantics."""
    xb = x[..., ::-1] / 255.0  # channel flip + scale (NHWC)
    y = jax.lax.conv_general_dilated(
        xb, wc, window_strides=(1, 1), padding="SAME",
        dimension_numbers=("NHWC", "HWIO", "NHWC")) + bc
    y = jnp.maximum(y, 0.0)
    pooled = jnp.mean(y, axis=(1, 2))
    logits = pooled @ wf + bf
    return jnp.argmax(logits, axis=1).astype(jnp.int32).reshape(-1, 1)


if __name__ == "__main__":
    N, H, W, C = 2, 16, 16, 3
    Cout, NC = 8, 10

    key = jax.random.PRNGKey(0)
    k_x, k_wc, k_bc, k_wf, k_bf = jax.random.split(key, 5)
    x = jax.random.uniform(k_x, (N, H, W, C), jnp.float32, 0.0, 255.0)
    wc = jax.random.normal(k_wc, (3, 3, C, Cout), jnp.float32) * 0.1  # HWIO
    bc = jax.random.normal(k_bc, (Cout,), jnp.float32) * 0.1
    wf = jax.random.normal(k_wf, (Cout, NC), jnp.float32) * 0.1
    bf = jax.random.normal(k_bf, (NC,), jnp.float32) * 0.1

    out = wrapped_model_forward(x, wc, bc, wf, bf)
    out = jax.block_until_ready(out)

    ref = reference_forward(x, wc, bc, wf, bf)
    assert out.shape == (N, 1) and out.dtype == jnp.int32
    assert bool(jnp.all(out == ref)), f"mismatch: {out} vs {ref}"
    print("KERNEL_OK")
</pallas_src>

<mosaic_0001>
module attributes {stable_mosaic.version = 11 : i64} {
  func.func @wrapped_model_kernel(%arg0: i32, %arg1: memref<2x18x18x3xf32, #tpu.memory_space<vmem>>, %arg2: memref<27x8xf32, #tpu.memory_space<vmem>>, %arg3: memref<1x8xf32, #tpu.memory_space<vmem>>, %arg4: memref<8x10xf32, #tpu.memory_space<vmem>>, %arg5: memref<1x10xf32, #tpu.memory_space<vmem>>, %arg6: memref<1x1x2xi32, #tpu.memory_space<vmem>>) attributes {dimension_semantics = [#tpu.dimension_semantics<parallel>], iteration_bounds = array<i64: 1>, scalar_prefetch = 0 : i64, scratch_operands = 0 : i64, tpu.core_type = #tpu.core_type<tc>, window_params = [{transform_indices = @transform_0, window_bounds = array<i64: 2, 18, 18, 3>}, {pipeline_mode = #tpu.pipeline_mode<synchronous>, transform_indices = @transform_1, window_bounds = array<i64: 27, 8>}, {pipeline_mode = #tpu.pipeline_mode<synchronous>, transform_indices = @transform_2, window_bounds = array<i64: 1, 8>}, {pipeline_mode = #tpu.pipeline_mode<synchronous>, transform_indices = @transform_3, window_bounds = array<i64: 8, 10>}, {pipeline_mode = #tpu.pipeline_mode<synchronous>, transform_indices = @transform_4, window_bounds = array<i64: 1, 10>}, {transform_indices = @transform_5, window_bounds = array<i64: 1, 1, 2>}]} {
    %c0 = arith.constant 0 : index
    %c0_0 = arith.constant 0 : index
    %c0_1 = arith.constant 0 : index
    %c0_2 = arith.constant 0 : index
    %0 = vector.load %arg1[%c0, %c0_0, %c0_1, %c0_2] : memref<2x18x18x3xf32, #tpu.memory_space<vmem>>, vector<2x18x18x3xf32>
    %1 = vector.extract_strided_slice %0 {offsets = [0, 0, 0, 0], sizes = [2, 16, 16, 3], strides = [1, 1, 1, 1]} : vector<2x18x18x3xf32> to vector<2x16x16x3xf32>
    %2 = vector.shape_cast %1 : vector<2x16x16x3xf32> to vector<512x3xf32>
    %3 = vector.extract_strided_slice %0 {offsets = [0, 0, 1, 0], sizes = [2, 16, 16, 3], strides = [1, 1, 1, 1]} : vector<2x18x18x3xf32> to vector<2x16x16x3xf32>
    %4 = vector.shape_cast %3 : vector<2x16x16x3xf32> to vector<512x3xf32>
    %5 = vector.extract_strided_slice %0 {offsets = [0, 0, 2, 0], sizes = [2, 16, 16, 3], strides = [1, 1, 1, 1]} : vector<2x18x18x3xf32> to vector<2x16x16x3xf32>
    %6 = vector.shape_cast %5 : vector<2x16x16x3xf32> to vector<512x3xf32>
    %7 = vector.extract_strided_slice %0 {offsets = [0, 1, 0, 0], sizes = [2, 16, 16, 3], strides = [1, 1, 1, 1]} : vector<2x18x18x3xf32> to vector<2x16x16x3xf32>
    %8 = vector.shape_cast %7 : vector<2x16x16x3xf32> to vector<512x3xf32>
    %9 = vector.extract_strided_slice %0 {offsets = [0, 1, 1, 0], sizes = [2, 16, 16, 3], strides = [1, 1, 1, 1]} : vector<2x18x18x3xf32> to vector<2x16x16x3xf32>
    %10 = vector.shape_cast %9 : vector<2x16x16x3xf32> to vector<512x3xf32>
    %11 = vector.extract_strided_slice %0 {offsets = [0, 1, 2, 0], sizes = [2, 16, 16, 3], strides = [1, 1, 1, 1]} : vector<2x18x18x3xf32> to vector<2x16x16x3xf32>
    %12 = vector.shape_cast %11 : vector<2x16x16x3xf32> to vector<512x3xf32>
    %13 = vector.extract_strided_slice %0 {offsets = [0, 2, 0, 0], sizes = [2, 16, 16, 3], strides = [1, 1, 1, 1]} : vector<2x18x18x3xf32> to vector<2x16x16x3xf32>
    %14 = vector.shape_cast %13 : vector<2x16x16x3xf32> to vector<512x3xf32>
    %15 = vector.extract_strided_slice %0 {offsets = [0, 2, 1, 0], sizes = [2, 16, 16, 3], strides = [1, 1, 1, 1]} : vector<2x18x18x3xf32> to vector<2x16x16x3xf32>
    %16 = vector.shape_cast %15 : vector<2x16x16x3xf32> to vector<512x3xf32>
    %17 = vector.extract_strided_slice %0 {offsets = [0, 2, 2, 0], sizes = [2, 16, 16, 3], strides = [1, 1, 1, 1]} : vector<2x18x18x3xf32> to vector<2x16x16x3xf32>
    %18 = vector.shape_cast %17 : vector<2x16x16x3xf32> to vector<512x3xf32>
    %19 = tpu.concatenate %2, %4, %6, %8, %10, %12, %14, %16, %18 in 1 : vector<512x3xf32>, vector<512x3xf32>, vector<512x3xf32>, vector<512x3xf32>, vector<512x3xf32>, vector<512x3xf32>, vector<512x3xf32>, vector<512x3xf32>, vector<512x3xf32> -> vector<512x27xf32>
    %c0_3 = arith.constant 0 : index
    %c0_4 = arith.constant 0 : index
    %20 = vector.load %arg2[%c0_3, %c0_4] : memref<27x8xf32, #tpu.memory_space<vmem>>, vector<27x8xf32>
    %cst = arith.constant dense<0.000000e+00> : vector<512x8xf32>
    %21 = tpu.matmul %19, %20, %cst {dimension_numbers = #tpu.dot_dimension_numbers<[1], [0], [0], [1], [0, 0, 1, 1], [], []>} : vector<512x27xf32>, vector<27x8xf32>, vector<512x8xf32> -> vector<512x8xf32>
    %c0_5 = arith.constant 0 : index
    %c0_6 = arith.constant 0 : index
    %22 = vector.load %arg3[%c0_5, %c0_6] : memref<1x8xf32, #tpu.memory_space<vmem>>, vector<1x8xf32>
    %23 = vector.broadcast %22 : vector<1x8xf32> to vector<512x8xf32>
    %24 = arith.addf %21, %23 : vector<512x8xf32>
    %cst_7 = arith.constant 0.000000e+00 : f32
    %25 = vector.broadcast %cst_7 : f32 to vector<512x8xf32>
    %26 = arith.maximumf %24, %25 : vector<512x8xf32>
    %27 = vector.shape_cast %26 : vector<512x8xf32> to vector<2x256x8xf32>
    %cst_8 = arith.constant dense<0.000000e+00> : vector<2x8xf32>
    %28 = vector.multi_reduction <add>, %27, %cst_8 [1] : vector<2x256x8xf32> to vector<2x8xf32>
    %cst_9 = arith.constant 3.906250e-03 : f32
    %29 = vector.broadcast %cst_9 : f32 to vector<2x8xf32>
    %30 = arith.mulf %28, %29 : vector<2x8xf32>
    %c0_10 = arith.constant 0 : index
    %c0_11 = arith.constant 0 : index
    %31 = vector.load %arg4[%c0_10, %c0_11] : memref<8x10xf32, #tpu.memory_space<vmem>>, vector<8x10xf32>
    %cst_12 = arith.constant dense<0.000000e+00> : vector<2x10xf32>
    %32 = tpu.matmul %30, %31, %cst_12 {dimension_numbers = #tpu.dot_dimension_numbers<[1], [0], [0], [1], [0, 0, 1, 1], [], []>} : vector<2x8xf32>, vector<8x10xf32>, vector<2x10xf32> -> vector<2x10xf32>
    %c0_13 = arith.constant 0 : index
    %c0_14 = arith.constant 0 : index
    %33 = vector.load %arg5[%c0_13, %c0_14] : memref<1x10xf32, #tpu.memory_space<vmem>>, vector<1x10xf32>
    %34 = vector.broadcast %33 : vector<1x10xf32> to vector<2x10xf32>
    %35 = arith.addf %32, %34 : vector<2x10xf32>
    %36 = tpu.iota {dimensions = array<i32: 1>} : vector<2x10xi32>
    %cst_15 = arith.constant dense<0xFF800000> : vector<2xf32>
    %37 = vector.multi_reduction <maximumf>, %35, %cst_15 [1] : vector<2x10xf32> to vector<2xf32>
    %38 = vector.shape_cast %37 : vector<2xf32> to vector<2x1xf32>
    %39 = vector.broadcast %38 : vector<2x1xf32> to vector<2x10xf32>
    %40 = arith.cmpf oeq, %35, %39 : vector<2x10xf32>
    %c10_i32 = arith.constant 10 : i32
    %41 = vector.broadcast %c10_i32 : i32 to vector<2x10xi32>
    %42 = arith.select %40, %36, %41 : vector<2x10xi1>, vector<2x10xi32>
    %cst_16 = arith.constant dense<2147483647> : vector<2xi32>
    %43 = vector.multi_reduction <minsi>, %42, %cst_16 [1] : vector<2x10xi32> to vector<2xi32>
    %44 = vector.shape_cast %43 : vector<2xi32> to vector<1x1x2xi32>
    %c0_17 = arith.constant 0 : index
    %c0_18 = arith.constant 0 : index
    %c0_19 = arith.constant 0 : index
    %45 = vector.load %arg6[%c0_17, %c0_18, %c0_19] : memref<1x1x2xi32, #tpu.memory_space<vmem>>, vector<1x1x2xi32>
    tpu.vector_store %arg6[%c0_17, %c0_18, %c0_19], %44 {strides = array<i32>} : memref<1x1x2xi32, #tpu.memory_space<vmem>>, vector<1x1x2xi32>,
    return
  }
  func.func @transform_0(%arg0: i32) -> (i32, i32, i32, i32) {
    %c0_i32 = arith.constant 0 : i32
    %c0_i32_0 = arith.constant 0 : i32
    %c0_i32_1 = arith.constant 0 : i32
    %c0_i32_2 = arith.constant 0 : i32
    return %arg0, %c0_i32, %c0_i32_0, %c0_i32_1 : i32, i32, i32, i32
  }
  func.func @transform_1(%arg0: i32) -> (i32, i32) {
    %c0_i32 = arith.constant 0 : i32
    %c0_i32_0 = arith.constant 0 : i32
    %c0_i32_1 = arith.constant 0 : i32
    return %c0_i32, %c0_i32_0 : i32, i32
  }
  func.func @transform_2(%arg0: i32) -> (i32, i32) {
    %c0_i32 = arith.constant 0 : i32
    %c0_i32_0 = arith.constant 0 : i32
    %c0_i32_1 = arith.constant 0 : i32
    return %c0_i32, %c0_i32_0 : i32, i32
  }
  func.func @transform_3(%arg0: i32) -> (i32, i32) {
    %c0_i32 = arith.constant 0 : i32
    %c0_i32_0 = arith.constant 0 : i32
    %c0_i32_1 = arith.constant 0 : i32
    return %c0_i32, %c0_i32_0 : i32, i32
  }
  func.func @transform_4(%arg0: i32) -> (i32, i32) {
    %c0_i32 = arith.constant 0 : i32
    %c0_i32_0 = arith.constant 0 : i32
    %c0_i32_1 = arith.constant 0 : i32
    return %c0_i32, %c0_i32_0 : i32, i32
  }
  func.func @transform_5(%arg0: i32) -> (i32, i32, i32) {
    %c0_i32 = arith.constant 0 : i32
    %c0_i32_0 = arith.constant 0 : i32
    %c0_i32_1 = arith.constant 0 : i32
    return %arg0, %c0_i32, %c0_i32_0 : i32, i32, i32
  }
}

</mosaic_0001>

<bundles_post_ra>
// kernel: tpu_custom_call.1
= control target key start
LH: loop header
LB: loop body
LE: loop exit
PB: predicated region body
PF: predicated region fallthrough
CT: control target
= control target key end

     0   :  { %vm225_vm0 = vcmask 1046528   ;;  %s3944_s11 = smov 3   ;;  %s7561_s0 = inlined_call_operand.vmem [shape: f32[2,18,18,3], index: 0, kind: input, shape index: {}]   ;;  %s7562_s1 = inlined_call_operand.vmem [shape: f32[27,8], index: 1, kind: input, shape index: {}]   ;;  %s7563_s2 = inlined_call_operand.vmem [shape: f32[1,8], index: 2, kind: input, shape index: {}]   ;;  %s7564_s3 = inlined_call_operand.vmem [shape: f32[8,10], index: 3, kind: input, shape index: {}]   ;;  %s7565_s4 = inlined_call_operand.vmem [shape: f32[1,10], index: 4, kind: input, shape index: {}]   ;;  %s7566_s5 = inlined_call_operand.hbm [shape: s32[1,1,2], index: 5, kind: output, shape index: {}]  }
   0x1   :  { %v3988_v0 = vld [vmem:[%s7561_s0 + $0x18] sm:$0xff]  ;;  %v3993_v1 = vld [vmem:[%s7561_s0 + $0x20] sm:$0xff]  ;;  %v4005_v5 = vld [vmem:[%s7561_s0 + $0x8] sm:$0xff] }
   0x2   :  { %v3998_v2 = vld [vmem:[%s7561_s0] sm:$0xff]  ;;  %v231_v3 = vrot.slane %v3988_v0, 1  ;;  %v232_v4 = vrot.slane %v3993_v1, 1  ;;  %v4011_v7 = vld [vmem:[%s7561_s0 + $0x28] sm:$0x3]  ;;  %v227_v8 = vrot.slane %v4005_v5, 1 }
   0x3   :  { %v226_v6 = vrot.slane %v3998_v2, 1  ;;  %v234_v9 = vrot.slane %v4011_v7, 1  ;;  %v4018_v10 = vld [vmem:[%s7561_s0 + $0x10] sm:$0x3]  ;;  %v4023_v11 = vld [vmem:[%s7561_s0 + $0x38] sm:$0xff]  ;;  %v4063_v24 = vld [vmem:[%s7561_s0 + $0x48] sm:$0xff] }
   0x4   :  { %v4026_v12 = vsel %vm225_vm0, %v231_v3, %v232_v4  ;;  %v229_v13 = vrot.slane %v4018_v10, 1  ;;  %v4032_v14 = vld [vmem:[%s7561_s0 + $0x40] sm:$0x3]  ;;  %v4037_v15 = vld [vmem:[%s7561_s0 + $0x30] sm:$0xff]  ;;  %v237_v18 = vrot.slane %v4023_v11, 1  ;;  %v241_v29 = vrot.slane %v4063_v24, 1 }
   0x5   :  { %7732 = vst [vmem:[#allocation5_spill] sm:$0xff] %v4026_v12  ;;  %603 = vrot.lane.b32.xlu1 %v4026_v12, %s3944_s11  ;;  %v228_v16 = vsel %vm225_vm0, %v226_v6, %v227_v8  ;;  %v4044_v17 = vsel %vm225_vm0, %v232_v4, %v234_v9  ;;  %v239_v19 = vrot.slane %v4032_v14, 1  ;;  %v236_v21 = vrot.slane %v4037_v15, 1  ;;  %v4053_v22 = vld [vmem:[%s7561_s0 + $0x50] sm:$0xff]  ;;  %v4058_v23 = vld [vmem:[%s7561_s0 + $0x58] sm:$0x3] }
   0x6   :  { %599 = vrot.lane.b32.xlu0 %v228_v16, %s3944_s11  ;;  %7733 = vst [vmem:[#allocation6_spill] sm:$0xff] %v4044_v17  ;;  %v230_v20 = vsel %vm225_vm0, %v227_v8, %v229_v13  ;;  %v242_v26 = vrot.slane %v4053_v22, 1  ;;  %v244_v27 = vrot.slane %v4058_v23, 1  ;;  %v4080_v30 = vld [vmem:[%s7561_s0 + $0x68] sm:$0xff]  ;;  %v4085_v31 = vld [vmem:[%s7561_s0 + $0x70] sm:$0x3] }
   0x7   :  { %v4069_v25 = vsel %vm225_vm0, %v237_v18, %v239_v19  ;;  %v4074_v28 = vsel %vm225_vm0, %v236_v21, %v237_v18  ;;  %v4090_v32 = vld [vmem:[%s7561_s0 + $0x60] sm:$0xff]  ;;  %v247_v34 = vrot.slane %v4080_v30, 1  ;;  %v249_v35 = vrot.slane %v4085_v31, 1  ;;  %v4113_v39 = vld [vmem:[%s7561_s0 + $0x88] sm:$0x3]  ;;  %v4118_v40 = vld [vmem:[%s7561_s0 + $0x78] sm:$0xff] }
   0x8   :  { %7734 = vst [vmem:[#allocation7_spill] sm:$0xff] %v4069_v25  ;;  %7735 = vst [vmem:[#allocation8_spill] sm:$0xff] %v4074_v28  ;;  %v4097_v33 = vsel %vm225_vm0, %v242_v26, %v244_v27  ;;  %v4102_v36 = vsel %vm225_vm0, %v241_v29, %v242_v26  ;;  %v246_v37 = vrot.slane %v4090_v32, 1  ;;  %v4108_v38 = vld [vmem:[%s7561_s0 + $0x80] sm:$0xff]  ;;  %v254_v43 = vrot.slane %v4113_v39, 1  ;;  %v4136_v46 = vld [vmem:[%s7561_s0 + $0x98] sm:$0xff] }
   0x9   :  { %605 = vrot.lane.b32.xlu1 %v4044_v17, %s3944_s11  ;;  %7736 = vst [vmem:[#allocation9_spill] sm:$0xff] %v4097_v33  ;;  %7737 = vst [vmem:[#allocation10_spill] sm:$0xff] %v4102_v36  ;;  %v4125_v41 = vsel %vm225_vm0, %v247_v34, %v249_v35  ;;  %v252_v42 = vrot.slane %v4108_v38, 1  ;;  %v251_v45 = vrot.slane %v4118_v40, 1  ;;  %v4141_v47 = vld [vmem:[%s7561_s0 + $0xa0] sm:$0x3] }
   0xa   :  { %601 = vrot.lane.b32.xlu0 %v230_v20, %s3944_s11  ;;  %7738 = vst [vmem:[#allocation11_spill] sm:$0xff] %v4125_v41  ;;  %v4130_v44 = vsel %vm225_vm0, %v246_v37, %v247_v34  ;;  %v4146_v48 = vld [vmem:[%s7561_s0 + $0x90] sm:$0xff]  ;;  %v257_v50 = vrot.slane %v4136_v46, 1  ;;  %v259_v51 = vrot.slane %v4141_v47, 1  ;;  %v4169_v55 = vld [vmem:[%s7561_s0 + $0xb8] sm:$0x3] }
   0xb   :  { %7739 = vst [vmem:[#allocation12_spill] sm:$0xff] %v4130_v44  ;;  %v4153_v49 = vsel %vm225_vm0, %v252_v42, %v254_v43  ;;  %v4158_v52 = vsel %vm225_vm0, %v251_v45, %v252_v42  ;;  %v256_v53 = vrot.slane %v4146_v48, 1  ;;  %v4164_v54 = vld [vmem:[%s7561_s0 + $0xb0] sm:$0xff]  ;;  %v4174_v56 = vld [vmem:[%s7561_s0 + $0xa8] sm:$0xff]  ;;  %v264_v59 = vrot.slane %v4169_v55, 1  ;;  %v4202_v3 = vld [vmem:[%s7561_s0 + $0xc0] sm:$0xff] }
   0xc   :  { %7740 = vst [vmem:[#allocation13_spill] sm:$0xff] %v4153_v49  ;;  %7741 = vst [vmem:[#allocation14_spill] sm:$0xff] %v4158_v52  ;;  %v4181_v57 = vsel %vm225_vm0, %v257_v50, %v259_v51  ;;  %v262_v58 = vrot.slane %v4164_v54, 1  ;;  %v261_v61 = vrot.slane %v4174_v56, 1  ;;  %v4192_v62 = vld [vmem:[%s7561_s0 + $0xc8] sm:$0xff]  ;;  %v266_v13 = vrot.slane %v4202_v3, 1 }
   0xd   :  { %609 = vrot.lane.b32.xlu1 %v4069_v25, %s3944_s11  ;;  %7742 = vst [vmem:[#allocation15_spill] sm:$0xff] %v4181_v57  ;;  %v4186_v60 = vsel %vm225_vm0, %v256_v53, %v257_v50  ;;  %v4197_v63 = vld [vmem:[%s7561_s0 + $0xd0] sm:$0x3]  ;;  %v267_v6 = vrot.slane %v4192_v62, 1  ;;  %v4220_v16 = vld [vmem:[%s7561_s0 + $0xe0] sm:$0xff]  ;;  %v4230_v19 = vld [vmem:[%s7561_s0 + $0xd8] sm:$0xff] }
   0xe   :  { %607 = vrot.lane.b32.xlu0 %v4074_v28, %s3944_s11  ;;  %7743 = vst [vmem:[#allocation16_spill] sm:$0xff] %v4186_v60  ;;  %v4209_v4 = vsel %vm225_vm0, %v262_v58, %v264_v59  ;;  %v269_v8 = vrot.slane %v4197_v63, 1  ;;  %v4214_v9 = vsel %vm225_vm0, %v261_v61, %v262_v58  ;;  %v4225_v18 = vld [vmem:[%s7561_s0 + $0xe8] sm:$0x3]  ;;  %v272_v21 = vrot.slane %v4220_v16, 1  ;;  %v4248_v34 = vld [vmem:[%s7561_s0 + $0xf8] sm:$0xff] }
   0xf   :  { %7744 = vst [vmem:[#allocation17_spill] sm:$0xff] %v4209_v4  ;;  %7745 = vst [vmem:[#allocation18_spill] sm:$0xff] %v4214_v9  ;;  %v274_v26 = vrot.slane %v4225_v18, 1  ;;  %v4242_v27 = vsel %vm225_vm0, %v266_v13, %v267_v6  ;;  %v271_v29 = vrot.slane %v4230_v19, 1  ;;  %v4253_v35 = vld [vmem:[%s7561_s0 + $0x100] sm:$0x3] }
  0x10   :  { %v4237_v20 = vsel %vm225_vm0, %v267_v6, %v269_v8  ;;  %7747 = vst [vmem:[#allocation20_spill] sm:$0xff] %v4242_v27  ;;  %v4258_v37 = vld [vmem:[%s7561_s0 + $0xf0] sm:$0xff] }
  0x11   :  { %613 = vrot.lane.b32.xlu1 %v4097_v33, %s3944_s11  ;;  %7746 = vst [vmem:[#allocation19_spill] sm:$0xff] %v4237_v20 }
  0x12   :  { %611 = vrot.lane.b32.xlu0 %v4102_v36, %s3944_s11 }
  0x15   :  { %617 = vrot.lane.b32.xlu1 %v4125_v41, %s3944_s11 }
  0x16   :  { %615 = vrot.lane.b32.xlu0 %v4130_v44, %s3944_s11 }
  0x19   :  { %621 = vrot.lane.b32.xlu1 %v4153_v49, %s3944_s11 }
  0x1a   :  { %619 = vrot.lane.b32.xlu0 %v4158_v52, %s3944_s11 }
  0x1d   :  { %625 = vrot.lane.b32.xlu1 %v4181_v57, %s3944_s11 }
  0x1e   :  { %623 = vrot.lane.b32.xlu0 %v4186_v60, %s3944_s11 }
  0x21   :  { %629 = vrot.lane.b32.xlu1 %v4209_v4, %s3944_s11 }
  0x22   :  { %627 = vrot.lane.b32.xlu0 %v4214_v9, %s3944_s11 }
  0x25   :  { %633 = vrot.lane.b32.xlu1 %v4237_v20, %s3944_s11 }
  0x26   :  { %10 = vsyncpa [#allocation3], 0  ;;  %631 = vrot.lane.b32.xlu0 %v4242_v27, %s3944_s11  ;;  %v4265_v42 = vsel %vm225_vm0, %v272_v21, %v274_v26  ;;  %v277_v43 = vrot.slane %v4248_v34, 1  ;;  %v279_v45 = vrot.slane %v4253_v35, 1  ;;  %v4270_v50 = vsel %vm225_vm0, %v271_v29, %v272_v21  ;;  %v4276_v53 = vld [vmem:[%s7561_s0 + $0x110] sm:$0xff]  ;;  %v4286_v59 = vld [vmem:[%s7561_s0 + $0x108] sm:$0xff] }
  0x27   :  { %7748 = vst [vmem:[#allocation21_spill] sm:$0xff] %v4265_v42  ;;  %7749 = vst [vmem:[#allocation22_spill] sm:$0xff] %v4270_v50  ;;  %v276_v51 = vrot.slane %v4258_v37, 1  ;;  %v4281_v58 = vld [vmem:[%s7561_s0 + $0x118] sm:$0x3]  ;;  %v282_v6 = vrot.slane %v4276_v53, 1 }
  0x28   :  { %v4293_v61 = vsel %vm225_vm0, %v277_v43, %v279_v45  ;;  %v284_v8 = vrot.slane %v4281_v58, 1  ;;  %v281_v21 = vrot.slane %v4286_v59, 1  ;;  %v4304_v26 = vld [vmem:[%s7561_s0 + $0x128] sm:$0xff]  ;;  %v4309_v29 = vld [vmem:[%s7561_s0 + $0x130] sm:$0x3]  ;;  %v4314_v45 = vld [vmem:[%s7561_s0 + $0x120] sm:$0xff] }
  0x29   :  { %637 = vrot.lane.b32.xlu1 %v4265_v42, %s3944_s11  ;;  %7750 = vst [vmem:[#allocation23_spill] sm:$0xff] %v4293_v61  ;;  %v4298_v13 = vsel %vm225_vm0, %v276_v51, %v277_v43  ;;  %v287_v51 = vrot.slane %v4304_v26, 1  ;;  %v289_v42 = vrot.slane %v4309_v29, 1  ;;  %v286_v20 = vrot.slane %v4314_v45, 1  ;;  %v4332_v27 = vld [vmem:[%s7561_s0 + $0x140] sm:$0xff]  ;;  %v4360_v57 = vld [vmem:[%s7561_s0 + $0x158] sm:$0xff] }
  0x2a   :  { %635 = vrot.lane.b32.xlu0 %v4270_v50, %s3944_s11  ;;  %7751 = vst [vmem:[#allocation24_spill] sm:$0xff] %v4298_v13  ;;  %v4321_v43 = vsel %vm225_vm0, %v282_v6, %v284_v8  ;;  %v4326_v50 = vsel %vm225_vm0, %v281_v21, %v282_v6  ;;  %v4342_v8 = vld [vmem:[%s7561_s0 + $0x138] sm:$0xff]  ;;  %v292_v21 = vrot.slane %v4332_v27, 1  ;;  %v4388_v52 = vld [vmem:[%s7561_s0 + $0x170] sm:$0xff]  ;;  %vm386_vm1 = vcmask 1045504   ;;  %s3945_s18 = smov 6  }
  0x2b   :  { %7752 = vst [vmem:[#allocation25_spill] sm:$0xff] %v4321_v43  ;;  %7753 = vst [vmem:[#allocation26_spill] sm:$0xff] %v4326_v50  ;;  %v4349_v6 = vsel %vm225_vm0, %v287_v51, %v289_v42  ;;  %v4354_v4 = vsel %vm225_vm0, %v286_v20, %v287_v51  ;;  %v291_v9 = vrot.slane %v4342_v8, 1  ;;  %v4370_v42 = vld [vmem:[%s7561_s0 + $0x150] sm:$0xff]  ;;  %v297_v51 = vrot.slane %v4360_v57, 1  ;;  %v4416_v33 = vld [vmem:[%s7561_s0 + $0x1b8] sm:$0xff] }
  0x2c   :  { %7754 = vst [vmem:[#allocation27_spill] sm:$0xff] %v4349_v6  ;;  %7755 = vst [vmem:[#allocation28_spill] sm:$0xff] %v4354_v4  ;;  %v296_v49 = vrot.slane %v4370_v42, 1  ;;  %v4444_v28 = vld [vmem:[%s7561_s0 + $0x1d0] sm:$0xff]  ;;  %s3946_s20 = smov 9   ;;  %s3947_s23 = smov 12  }
  0x2d   :  { %641 = vrot.lane.b32.xlu1 %v4293_v61, %s3944_s11  ;;  %v4337_v61 = vld [vmem:[%s7561_s0 + $0x148] sm:$0x3]  ;;  %v4382_v60 = vsel %vm225_vm0, %v291_v9, %v292_v21  ;;  %7764 = vst [vmem:[#allocation37_spill] sm:$0xff] %v4444_v28  ;;  %s3948_s24 = smov 15   ;;  %vm2859_vm2 = vcmask 1042432   ;;  %s3949_s29 = smov 18  }
  0x2e   :  { %639 = vrot.lane.b32.xlu0 %v4298_v13, %s3944_s11  ;;  %v294_v13 = vrot.slane %v4337_v61, 1  ;;  %7757 = vst [vmem:[#allocation30_spill] sm:$0xff] %v4382_v60  ;;  %v4410_v41 = vsel %vm225_vm0, %v296_v49, %v297_v51  ;;  %s3950_s7 = smov 21   ;;  %vm2135_vm3 = vcmask 23552   ;;  %vm2200_vm4 = vcmask 48128  }
  0x2f   :  { %7759 = vst [vmem:[#allocation32_spill] sm:$0xff] %v4410_v41  ;;  %vm2265_vm5 = vcmask 72704   ;;  %vm2330_vm6 = vcmask 97280   ;;  %vm2395_vm7 = vcmask 121856   ;;  %vm2460_vm8 = vcmask 146432  }
  0x30   :  { %v4377_v20 = vsel %vm225_vm0, %v292_v21, %v294_v13  ;;  %v4398_v13 = vld [vmem:[%s7561_s0 + $0x168] sm:$0xff]  ;;  %v302_v21 = vrot.slane %v4388_v52, 1  ;;  %vm2525_vm9 = vcmask 171008   ;;  %vm2590_vm10 = vcmask 195584  }
  0x31   :  { %645 = vrot.lane.b32.xlu1 %v4321_v43, %s3944_s11  ;;  %v4365_v43 = vld [vmem:[%s7561_s0 + $0x160] sm:$0x3]  ;;  %7756 = vst [vmem:[#allocation29_spill] sm:$0xff] %v4377_v20  ;;  %v301_v44 = vrot.slane %v4398_v13, 1  ;;  %vm2666_vm11 = vcmask 220160   ;;  %vm3312_vm12 = vcmask 64512  }
  0x32   :  { %643 = vrot.lane.b32.xlu0 %v4326_v50, %s3944_s11  ;;  %v299_v50 = vrot.slane %v4365_v43, 1  ;;  %vm3953_vm13 = vmmov 0   ;;  %vm3463_vm14 = vcmask 1041409   ;;  %vm3539_vm15 = vcmask 74752  }
  0x33   :  { %v4438_v36 = vsel %vm225_vm0, %v301_v44, %v302_v21 }
  0x34   :  { %v4405_v9 = vsel %vm225_vm0, %v297_v51, %v299_v50  ;;  %v4426_v50 = vld [vmem:[%s7561_s0 + $0x1b0] sm:$0xff]  ;;  %v307_v51 = vrot.slane %v4416_v33, 1  ;;  %7763 = vst [vmem:[#allocation36_spill] sm:$0xff] %v4438_v36 }
  0x35   :  { %649 = vrot.lane.b32.xlu1 %v4349_v6, %s3944_s11  ;;  %v4393_v6 = vld [vmem:[%s7561_s0 + $0x178] sm:$0x3]  ;;  %7758 = vst [vmem:[#allocation31_spill] sm:$0xff] %v4405_v9  ;;  %7761 = vst [vmem:[#allocation34_spill] sm:$0xff] %v4426_v50  ;;  %v306_v25 = vrot.slane %v4426_v50, 1  ;;  %v4468_v50 = vld [vmem:[%s7561_s0 + $0x1e8] sm:$0xff] }
  0x36   :  { %647 = vrot.lane.b32.xlu0 %v4354_v4, %s3944_s11  ;;  %v304_v4 = vrot.slane %v4393_v6, 1  ;;  %7767 = vst [vmem:[#allocation40_spill] sm:$0xff] %v4468_v50 }
  0x37   :  { %v308_v12 = vsel %vm225_vm0, %v306_v25, %v307_v51 }
  0x38   :  { %v4433_v49 = vsel %vm225_vm0, %v302_v21, %v304_v4  ;;  %v4454_v4 = vld [vmem:[%s7561_s0 + $0x1c8] sm:$0xff]  ;;  %v312_v21 = vrot.slane %v4444_v28, 1  ;;  %v4494_v28 = vld [vmem:[%s7561_s0 + $0x200] sm:$0xff] }
  0x39   :  { %653 = vrot.lane.b32.xlu1 %v4377_v20, %s3944_s11  ;;  %v4421_v20 = vld [vmem:[%s7561_s0 + $0x1c0] sm:$0x3]  ;;  %7762 = vst [vmem:[#allocation35_spill] sm:$0xff] %v4433_v49  ;;  %7766 = vst [vmem:[#allocation39_spill] sm:$0xff] %v4454_v4  ;;  %v311_v17 = vrot.slane %v4454_v4, 1 }
  0x3a   :  { %651 = vrot.lane.b32.xlu0 %v4382_v60, %s3944_s11  ;;  %7760 = vst [vmem:[#allocation33_spill] sm:$0xff] %v4421_v20  ;;  %v309_v60 = vrot.slane %v4421_v20, 1  ;;  %7772 = vst [vmem:[#allocation45_spill] sm:$0xff] %v4494_v28  ;;  %v121_v20 = vld [vmem:[%s7561_s0 + $0x320] sm:$0xff] }
  0x3b   :  { %v4488_v4 = vsel %vm225_vm0, %v311_v17, %v312_v21 }
  0x3c   :  { %v310_v44 = vsel %vm225_vm0, %v307_v51, %v309_v60  ;;  %v4478_v60 = vld [vmem:[%s7561_s0 + $0x1e0] sm:$0xff]  ;;  %v317_v51 = vrot.slane %v4468_v50, 1  ;;  %7771 = vst [vmem:[#allocation44_spill] sm:$0xff] %v4488_v4  ;;  %v4522_v50 = vld [vmem:[%s7561_s0 + $0x218] sm:$0xff] }
  0x3d   :  { %657 = vrot.lane.b32.xlu1 %v4405_v9, %s3944_s11  ;;  %v4449_v9 = vld [vmem:[%s7561_s0 + $0x1d8] sm:$0x3]  ;;  %7769 = vst [vmem:[#allocation42_spill] sm:$0xff] %v4478_v60  ;;  %7777 = vst [vmem:[#allocation50_spill] sm:$0xff] %v4522_v50 }
  0x3e   :  { %655 = vrot.lane.b32.xlu0 %v4410_v41, %s3944_s11  ;;  %7765 = vst [vmem:[#allocation38_spill] sm:$0xff] %v4449_v9  ;;  %v314_v41 = vrot.slane %v4449_v9, 1  ;;  %v316_v9 = vrot.slane %v4478_v60, 1 }
  0x40   :  { %v4483_v25 = vsel %vm225_vm0, %v312_v21, %v314_v41  ;;  %v4504_v41 = vld [vmem:[%s7561_s0 + $0x1f8] sm:$0xff]  ;;  %v4516_v60 = vsel %vm225_vm0, %v316_v9, %v317_v51 }
  0x41   :  { %661 = vrot.lane.b32.xlu1 %v4433_v49, %s3944_s11  ;;  %v4473_v49 = vld [vmem:[%s7561_s0 + $0x1f0] sm:$0x3]  ;;  %7770 = vst [vmem:[#allocation43_spill] sm:$0xff] %v4483_v25  ;;  %7774 = vst [vmem:[#allocation47_spill] sm:$0xff] %v4504_v41 }
  0x42   :  { %659 = vrot.lane.b32.xlu0 %v4438_v36, %s3944_s11  ;;  %7768 = vst [vmem:[#allocation41_spill] sm:$0xff] %v4473_v49  ;;  %v319_v36 = vrot.slane %v4473_v49, 1  ;;  %7776 = vst [vmem:[#allocation49_spill] sm:$0xff] %v4516_v60  ;;  %v321_v49 = vrot.slane %v4504_v41, 1 }
  0x44   :  { %v4511_v17 = vsel %vm225_vm0, %v317_v51, %v319_v36  ;;  %v4532_v36 = vld [vmem:[%s7561_s0 + $0x210] sm:$0xff]  ;;  %v327_v51 = vrot.slane %v4522_v50, 1  ;;  %v94_v50 = vld [vmem:[%s7561_s0 + $0x248] sm:$0xff] }
  0x45   :  { %665 = vrot.lane.b32.xlu1 %v310_v44, %s3944_s11  ;;  %7775 = vst [vmem:[#allocation48_spill] sm:$0xff] %v4511_v17  ;;  %v322_v44 = vrot.slane %v4494_v28, 1  ;;  %7779 = vst [vmem:[#allocation52_spill] sm:$0xff] %v4532_v36  ;;  %v4550_v28 = vld [vmem:[%s7561_s0 + $0x230] sm:$0xff] }
  0x46   :  { %663 = vrot.lane.b32.xlu0 %v308_v12, %s3944_s11  ;;  %v4499_v12 = vld [vmem:[%s7561_s0 + $0x208] sm:$0x3]  ;;  %7782 = vst [vmem:[#allocation55_spill] sm:$0xff] %v4550_v28 }
  0x47   :  { %7773 = vst [vmem:[#allocation46_spill] sm:$0xff] %v4499_v12  ;;  %v324_v21 = vrot.slane %v4499_v12, 1  ;;  %v4544_v41 = vsel %vm225_vm0, %v321_v49, %v322_v44  ;;  %v326_v12 = vrot.slane %v4532_v36, 1 }
  0x48   :  { %7781 = vst [vmem:[#allocation54_spill] sm:$0xff] %v4544_v41 }
  0x49   :  { %669 = vrot.lane.b32.xlu1 %v4483_v25, %s3944_s11  ;;  %v4527_v25 = vld [vmem:[%s7561_s0 + $0x220] sm:$0x3]  ;;  %v4539_v9 = vsel %vm225_vm0, %v322_v44, %v324_v21  ;;  %v4560_v21 = vld [vmem:[%s7561_s0 + $0x228] sm:$0xff]  ;;  %v332_v44 = vrot.slane %v4550_v28, 1  ;;  %v4572_v36 = vsel %vm225_vm0, %v326_v12, %v327_v51 }
  0x4a   :  { %667 = vrot.lane.b32.xlu0 %v4488_v4, %s3944_s11  ;;  %7778 = vst [vmem:[#allocation51_spill] sm:$0xff] %v4527_v25  ;;  %7780 = vst [vmem:[#allocation53_spill] sm:$0xff] %v4539_v9  ;;  %v329_v4 = vrot.slane %v4527_v25, 1  ;;  %v331_v25 = vrot.slane %v4560_v21, 1  ;;  %v97_v28 = vld [vmem:[%s7561_s0 + $0x260] sm:$0xff] }
  0x4b   :  { %7784 = vst [vmem:[#allocation57_spill] sm:$0xff] %v4560_v21  ;;  %7786 = vst [vmem:[#allocation59_spill] sm:$0xff] %v4572_v36 }
  0x4c   :  { %v4567_v49 = vsel %vm225_vm0, %v327_v51, %v329_v4  ;;  %v93_v4 = vld [vmem:[%s7561_s0 + $0x240] sm:$0xff]  ;;  %v337_v51 = vrot.slane %v94_v50, 1  ;;  %v4592_v21 = vsel %vm225_vm0, %v331_v25, %v332_v44 }
  0x4d   :  { %673 = vrot.lane.b32.xlu1 %v4511_v17, %s3944_s11  ;;  %v4555_v17 = vld [vmem:[%s7561_s0 + $0x238] sm:$0x3]  ;;  %7785 = vst [vmem:[#allocation58_spill] sm:$0xff] %v4567_v49  ;;  %7788 = vst [vmem:[#allocation61_spill] sm:$0xff] %v4592_v21 }
  0x4e   :  { %671 = vrot.lane.b32.xlu0 %v4516_v60, %s3944_s11  ;;  %7783 = vst [vmem:[#allocation56_spill] sm:$0xff] %v4555_v17  ;;  %v334_v60 = vrot.slane %v4555_v17, 1  ;;  %v336_v17 = vrot.slane %v93_v4, 1  ;;  %v100_v4 = vld [vmem:[%s7561_s0 + $0x278] sm:$0xff] }
  0x50   :  { %v4589_v12 = vsel %vm225_vm0, %v332_v44, %v334_v60  ;;  %v342_v60 = vrot.slane %v97_v28, 1 }
  0x51   :  { %677 = vrot.lane.b32.xlu1 %v4539_v9, %s3944_s11  ;;  %v95_v9 = vld [vmem:[%s7561_s0 + $0x250] sm:$0x3]  ;;  %7787 = vst [vmem:[#allocation60_spill] sm:$0xff] %v4589_v12 }
  0x52   :  { %675 = vrot.lane.b32.xlu0 %v4544_v41, %s3944_s11  ;;  %v339_v41 = vrot.slane %v95_v9, 1  ;;  %v4611_v9 = vsel %vm225_vm0, %v336_v17, %v337_v51 }
  0x53   :  { %7790 = vst [vmem:[#allocation63_spill] sm:$0xff] %v4611_v9 }
  0x54   :  { %v4608_v50 = vsel %vm225_vm0, %v337_v51, %v339_v41  ;;  %v347_v41 = vrot.slane %v100_v4, 1  ;;  %v103_v51 = vld [vmem:[%s7561_s0 + $0x290] sm:$0xff]  ;;  %v106_v4 = vld [vmem:[%s7561_s0 + $0x2a8] sm:$0xff] }
  0x55   :  { %681 = vrot.lane.b32.xlu1 %v4567_v49, %s3944_s11  ;;  %v98_v49 = vld [vmem:[%s7561_s0 + $0x268] sm:$0x3]  ;;  %7789 = vst [vmem:[#allocation62_spill] sm:$0xff] %v4608_v50 }
  0x56   :  { %679 = vrot.lane.b32.xlu0 %v4572_v36, %s3944_s11  ;;  %v96_v36 = vld [vmem:[%s7561_s0 + $0x258] sm:$0xff]  ;;  %v344_v25 = vrot.slane %v98_v49, 1 }
  0x57   :  { %v341_v44 = vrot.slane %v96_v36, 1 }
  0x58   :  { %v4627_v28 = vsel %vm225_vm0, %v342_v60, %v344_v25 }
  0x59   :  { %685 = vrot.lane.b32.xlu1 %v4589_v12, %s3944_s11  ;;  %v101_v12 = vld [vmem:[%s7561_s0 + $0x280] sm:$0x3]  ;;  %7791 = vst [vmem:[#allocation64_spill] sm:$0xff] %v4627_v28  ;;  %v4630_v36 = vsel %vm225_vm0, %v341_v44, %v342_v60 }
  0x5a   :  { %683 = vrot.lane.b32.xlu0 %v4592_v21, %s3944_s11  ;;  %v99_v21 = vld [vmem:[%s7561_s0 + $0x270] sm:$0xff]  ;;  %v349_v17 = vrot.slane %v101_v12, 1  ;;  %7792 = vst [vmem:[#allocation65_spill] sm:$0xff] %v4630_v36  ;;  %v352_v12 = vrot.slane %v103_v51, 1  ;;  %v109_v51 = vld [vmem:[%s7561_s0 + $0x2c0] sm:$0xff] }
  0x5b   :  { %v346_v49 = vrot.slane %v99_v21, 1 }
  0x5c   :  { %v4646_v21 = vsel %vm225_vm0, %v347_v41, %v349_v17 }
  0x5d   :  { %689 = vrot.lane.b32.xlu1 %v4608_v50, %s3944_s11  ;;  %v104_v50 = vld [vmem:[%s7561_s0 + $0x298] sm:$0x3]  ;;  %7793 = vst [vmem:[#allocation66_spill] sm:$0xff] %v4646_v21  ;;  %v4649_v25 = vsel %vm225_vm0, %v346_v49, %v347_v41 }
  0x5e   :  { %687 = vrot.lane.b32.xlu0 %v4611_v9, %s3944_s11  ;;  %v102_v9 = vld [vmem:[%s7561_s0 + $0x288] sm:$0xff]  ;;  %v354_v60 = vrot.slane %v104_v50, 1  ;;  %7794 = vst [vmem:[#allocation67_spill] sm:$0xff] %v4649_v25 }
  0x5f   :  { %v351_v44 = vrot.slane %v102_v9, 1  ;;  %v357_v9 = vrot.slane %v106_v4, 1  ;;  %v112_v4 = vld [vmem:[%s7561_s0 + $0x2d8] sm:$0xff] }
  0x60   :  { %v4665_v50 = vsel %vm225_vm0, %v352_v12, %v354_v60 }
  0x61   :  { %693 = vrot.lane.b32.xlu1 %v4627_v28, %s3944_s11  ;;  %v107_v28 = vld [vmem:[%s7561_s0 + $0x2b0] sm:$0x3]  ;;  %7795 = vst [vmem:[#allocation68_spill] sm:$0xff] %v4665_v50  ;;  %v4668_v17 = vsel %vm225_vm0, %v351_v44, %v352_v12 }
  0x62   :  { %691 = vrot.lane.b32.xlu0 %v4630_v36, %s3944_s11  ;;  %v105_v36 = vld [vmem:[%s7561_s0 + $0x2a0] sm:$0xff]  ;;  %v359_v41 = vrot.slane %v107_v28, 1  ;;  %7796 = vst [vmem:[#allocation69_spill] sm:$0xff] %v4668_v17 }
  0x63   :  { %v356_v49 = vrot.slane %v105_v36, 1  ;;  %v362_v36 = vrot.slane %v109_v51, 1  ;;  %v115_v51 = vld [vmem:[%s7561_s0 + $0x2f0] sm:$0xff] }
  0x64   :  { %v4684_v28 = vsel %vm225_vm0, %v357_v9, %v359_v41 }
  0x65   :  { %697 = vrot.lane.b32.xlu1 %v4646_v21, %s3944_s11  ;;  %v110_v21 = vld [vmem:[%s7561_s0 + $0x2c8] sm:$0x3]  ;;  %7797 = vst [vmem:[#allocation70_spill] sm:$0xff] %v4684_v28  ;;  %v4687_v60 = vsel %vm225_vm0, %v356_v49, %v357_v9 }
  0x66   :  { %695 = vrot.lane.b32.xlu0 %v4649_v25, %s3944_s11  ;;  %v108_v25 = vld [vmem:[%s7561_s0 + $0x2b8] sm:$0xff]  ;;  %v364_v12 = vrot.slane %v110_v21, 1  ;;  %7798 = vst [vmem:[#allocation71_spill] sm:$0xff] %v4687_v60 }
  0x67   :  { %v361_v44 = vrot.slane %v108_v25, 1  ;;  %v367_v25 = vrot.slane %v112_v4, 1  ;;  %v118_v4 = vld [vmem:[%s7561_s0 + $0x308] sm:$0xff] }
  0x68   :  { %v4703_v21 = vsel %vm225_vm0, %v362_v36, %v364_v12 }
  0x69   :  { %701 = vrot.lane.b32.xlu1 %v4665_v50, %s3944_s11  ;;  %v113_v50 = vld [vmem:[%s7561_s0 + $0x2e0] sm:$0x3]  ;;  %7799 = vst [vmem:[#allocation72_spill] sm:$0xff] %v4703_v21  ;;  %v4706_v41 = vsel %vm225_vm0, %v361_v44, %v362_v36 }
  0x6a   :  { %699 = vrot.lane.b32.xlu0 %v4668_v17, %s3944_s11  ;;  %v111_v17 = vld [vmem:[%s7561_s0 + $0x2d0] sm:$0xff]  ;;  %v369_v9 = vrot.slane %v113_v50, 1  ;;  %7800 = vst [vmem:[#allocation73_spill] sm:$0xff] %v4706_v41 }
  0x6b   :  { %v366_v49 = vrot.slane %v111_v17, 1  ;;  %v372_v17 = vrot.slane %v115_v51, 1 }
  0x6c   :  { %v4722_v50 = vsel %vm225_vm0, %v367_v25, %v369_v9 }
  0x6d   :  { %705 = vrot.lane.b32.xlu1 %v4684_v28, %s3944_s11  ;;  %v116_v28 = vld [vmem:[%s7561_s0 + $0x2f8] sm:$0x3]  ;;  %7801 = vst [vmem:[#allocation74_spill] sm:$0xff] %v4722_v50  ;;  %v4725_v12 = vsel %vm225_vm0, %v366_v49, %v367_v25 }
  0x6e   :  { %703 = vrot.lane.b32.xlu0 %v4687_v60, %s3944_s11  ;;  %v114_v60 = vld [vmem:[%s7561_s0 + $0x2e8] sm:$0xff]  ;;  %v374_v36 = vrot.slane %v116_v28, 1  ;;  %7802 = vst [vmem:[#allocation75_spill] sm:$0xff] %v4725_v12 }
  0x6f   :  { %v371_v44 = vrot.slane %v114_v60, 1  ;;  %v377_v60 = vrot.slane %v118_v4, 1 }
  0x70   :  { %v4741_v28 = vsel %vm225_vm0, %v372_v17, %v374_v36 }
  0x71   :  { %709 = vrot.lane.b32.xlu1 %v4703_v21, %s3944_s11  ;;  %v119_v21 = vld [vmem:[%s7561_s0 + $0x310] sm:$0x3]  ;;  %7803 = vst [vmem:[#allocation76_spill] sm:$0xff] %v4741_v28  ;;  %v4746_v49 = vsel %vm225_vm0, %v371_v44, %v372_v17  ;;  %v382_v17 = vrot.slane %v121_v20, 1  ;;  %v388_v20 = vrot.slane %v4005_v5, 2 }
  0x72   :  { %707 = vrot.lane.b32.xlu0 %v4706_v41, %s3944_s11  ;;  %v117_v41 = vld [vmem:[%s7561_s0 + $0x300] sm:$0xff]  ;;  %v379_v25 = vrot.slane %v119_v21, 1  ;;  %7805 = vst [vmem:[#allocation78_spill] sm:$0xff] %v4746_v49  ;;  %v120_v21 = vld [vmem:[%s7561_s0 + $0x318] sm:$0xff] }
  0x73   :  { %v376_v51 = vrot.slane %v117_v41, 1 }
  0x74   :  { %v4764_v41 = vsel %vm225_vm0, %v377_v60, %v379_v25 }
  0x75   :  { %713 = vrot.lane.b32.xlu1 %v4722_v50, %s3944_s11  ;;  %v122_v50 = vld [vmem:[%s7561_s0 + $0x328] sm:$0x3]  ;;  %7807 = vst [vmem:[#allocation80_spill] sm:$0xff] %v4764_v41  ;;  %v4769_v4 = vsel %vm225_vm0, %v376_v51, %v377_v60  ;;  %v387_v51 = vrot.slane %v3998_v2, 2  ;;  %v392_v2 = vrot.slane %v3988_v0, 2  ;;  %v397_v0 = vrot.slane %v4037_v15, 2 }
  0x76   :  { %711 = vrot.lane.b32.xlu0 %v4725_v12, %s3944_s11  ;;  %v384_v36 = vrot.slane %v122_v50, 1  ;;  %7808 = vst [vmem:[#allocation81_spill] sm:$0xff] %v4769_v4  ;;  %v390_v50 = vrot.slane %v4018_v10, 2  ;;  %v393_v10 = vrot.slane %v3993_v1, 2  ;;  %v398_v1 = vrot.slane %v4023_v11, 2 }
  0x77   :  { %v4743_v9 = vpop.permute.xlu1 %603  ;;  %v403_v11 = vrot.slane %v4053_v22, 2  ;;  %v402_v15 = vrot.slane %v4063_v24, 2  ;;  %v408_v22 = vrot.slane %v4080_v30, 2  ;;  %v407_v24 = vrot.slane %v4090_v32, 2 }
  0x78   :  { %7804 = vst [vmem:[#allocation77_spill] sm:$0xff] %v4743_v9  ;;  %v4754_v12 = vpop.permute.xlu0 %599  ;;  %v381_v9 = vrot.slane %v120_v21, 1  ;;  %v391_v5 = vsel %vm386_vm1, %v388_v20, %v390_v50  ;;  %v413_v30 = vrot.slane %v4108_v38, 2  ;;  %v412_v32 = vrot.slane %v4118_v40, 2 }
  0x79   :  { %7806 = vst [vmem:[#allocation79_spill] sm:$0xff] %v4754_v12  ;;  %717 = vrot.lane.b32.xlu1 %v4741_v28, %s3944_s11  ;;  %v4778_v28 = vsel %vm225_vm0, %v382_v17, %v384_v36  ;;  %v395_v36 = vrot.slane %v4011_v7, 2  ;;  %v400_v7 = vrot.slane %v4032_v14, 2  ;;  %v405_v14 = vrot.slane %v4058_v23, 2 }
  0x7a   :  { %715 = vrot.lane.b32.xlu0 %v4746_v49, %s3944_s11  ;;  %7809 = vst [vmem:[#allocation82_spill] sm:$0xff] %v4778_v28  ;;  %v4785_v60 = vsel %vm225_vm0, %v381_v9, %v382_v17  ;;  %v389_v9 = vsel %vm386_vm1, %v387_v51, %v388_v20  ;;  %v4813_v20 = vsel %vm386_vm1, %v392_v2, %v393_v10  ;;  %v410_v23 = vrot.slane %v4085_v31, 2 }
  0x7b   :  { %v4766_v44 = vpop.permute.xlu1 %605  ;;  %7810 = vst [vmem:[#allocation83_spill] sm:$0xff] %v4785_v60  ;;  %v4840_v2 = vsel %vm386_vm1, %v403_v11, %v405_v14  ;;  %v415_v31 = vrot.slane %v4113_v39, 2  ;;  %v418_v38 = vrot.slane %v4136_v46, 2  ;;  %v420_v39 = vrot.slane %v4141_v47, 2 }
  0x7c   :  { %v4771_v12 = vpop.permute.xlu0 %601  ;;  %v4857_v14 = vsel %vm386_vm1, %v408_v22, %v410_v23  ;;  %v417_v40 = vrot.slane %v4146_v48, 2  ;;  %v423_v46 = vrot.slane %v4164_v54, 2  ;;  %v425_v47 = vrot.slane %v4169_v55, 2 }
  0x7d   :  { %721 = vrot.lane.b32.xlu1 %v4764_v41, %s3944_s11  ;;  %v4874_v23 = vsel %vm386_vm1, %v413_v30, %v415_v31  ;;  %v4891_v31 = vsel %vm386_vm1, %v418_v38, %v420_v39  ;;  %v422_v48 = vrot.slane %v4174_v56, 2  ;;  %v428_v54 = vrot.slane %v4192_v62, 2 }
  0x7e   :  { %719 = vrot.lane.b32.xlu0 %v4769_v4, %s3944_s11  ;;  %v4908_v39 = vsel %vm386_vm1, %v423_v46, %v425_v47  ;;  %v430_v55 = vrot.slane %v4197_v63, 2  ;;  %v427_v56 = vrot.slane %v4202_v3, 2  ;;  %v433_v62 = vrot.slane %v4220_v16, 2 }
  0x7f   :  { %v4782_v25 = vpop.permute.xlu1 %609  ;;  %v435_v63 = vrot.slane %v4225_v18, 2  ;;  %v432_v3 = vrot.slane %v4230_v19, 2  ;;  %v438_v16 = vrot.slane %v4248_v34, 2  ;;  %v440_v18 = vrot.slane %v4253_v35, 2 }
  0x80   :  { %v4788_v21 = vpop.permute.xlu0 %607  ;;  %v4925_v47 = vsel %vm386_vm1, %v428_v54, %v430_v55  ;;  %v437_v19 = vrot.slane %v4258_v37, 2  ;;  %v443_v34 = vrot.slane %v4276_v53, 2  ;;  %v445_v35 = vrot.slane %v4281_v58, 2 }
  0x81   :  { %725 = vrot.lane.b32.xlu1 %v4778_v28, %s3944_s11  ;;  %v4806_v28 = vsel %vm386_vm1, %v393_v10, %v395_v36  ;;  %v4830_v10 = vsel %vm386_vm1, %v397_v0, %v398_v1  ;;  %v4942_v55 = vsel %vm386_vm1, %v433_v62, %v435_v63  ;;  %v4959_v63 = vsel %vm386_vm1, %v438_v16, %v440_v18 }
  0x82   :  { %723 = vrot.lane.b32.xlu0 %v4785_v60, %s3944_s11  ;;  %v442_v37 = vrot.slane %v4286_v59, 2  ;;  %v4976_v18 = vsel %vm386_vm1, %v443_v34, %v445_v35  ;;  %v448_v53 = vrot.slane %v4304_v26, 2  ;;  %v450_v58 = vrot.slane %v4309_v29, 2 }
  0x83   :  { %v4797_v41 = vpop.permute.xlu1 %613  ;;  %v447_v59 = vrot.slane %v4314_v45, 2  ;;  %v453_v26 = vrot.slane %v4332_v27, 2  ;;  %v455_v29 = vrot.slane %v4337_v61, 2  ;;  %v452_v45 = vrot.slane %v4342_v8, 2 }
  0x84   :  { %v4801_v17 = vpop.permute.xlu0 %611  ;;  %v4993_v35 = vsel %vm386_vm1, %v448_v53, %v450_v58  ;;  %v458_v27 = vrot.slane %v4360_v57, 2  ;;  %v460_v61 = vrot.slane %v4365_v43, 2  ;;  %v457_v8 = vrot.slane %v4370_v42, 2 }
  0x85   :  { %793 = vrot.lane.b32.xlu1 %v391_v5, %s3945_s18  ;;  %v4823_v5 = vsel %vm386_vm1, %v398_v1, %v400_v7  ;;  %v4847_v1 = vsel %vm386_vm1, %v402_v15, %v403_v11  ;;  %v4864_v11 = vsel %vm386_vm1, %v407_v24, %v408_v22  ;;  %v4881_v22 = vsel %vm386_vm1, %v412_v32, %v413_v30 }
  0x86   :  { %791 = vrot.lane.b32.xlu0 %v389_v9, %s3945_s18  ;;  %v4898_v30 = vsel %vm386_vm1, %v417_v40, %v418_v38  ;;  %v4915_v38 = vsel %vm386_vm1, %v422_v48, %v423_v46  ;;  %v4932_v46 = vsel %vm386_vm1, %v427_v56, %v428_v54  ;;  %v4949_v54 = vsel %vm386_vm1, %v432_v3, %v433_v62 }
  0x87   :  { %v4810_v50 = vpop.permute.xlu1 %617  ;;  %v4966_v62 = vsel %vm386_vm1, %v437_v19, %v438_v16  ;;  %v4983_v16 = vsel %vm386_vm1, %v442_v37, %v443_v34  ;;  %v5000_v34 = vsel %vm386_vm1, %v447_v59, %v448_v53  ;;  %v5010_v58 = vsel %vm386_vm1, %v453_v26, %v455_v29 }
  0x88   :  { %v4816_v51 = vpop.permute.xlu0 %615  ;;  %7830 = vst [vmem:[#allocation103_spill] sm:$0xff] %v5010_v58  ;;  %v5017_v53 = vsel %vm386_vm1, %v452_v45, %v453_v26  ;;  %v5027_v29 = vsel %vm386_vm1, %v458_v27, %v460_v61  ;;  %v463_v57 = vrot.slane %v4388_v52, 2  ;;  %v465_v43 = vrot.slane %v4393_v6, 2  ;;  %v7839_v6 = vld [vmem:[#allocation33_spill] sm:$0xff] }
  0x89   :  { %797 = vrot.lane.b32.xlu1 %v4806_v28, %s3945_s18  ;;  %7832 = vst [vmem:[#allocation105_spill] sm:$0xff] %v5017_v53  ;;  %7834 = vst [vmem:[#allocation107_spill] sm:$0xff] %v5027_v29  ;;  %v5034_v26 = vsel %vm386_vm1, %v457_v8, %v458_v27  ;;  %v462_v42 = vrot.slane %v4398_v13, 2  ;;  %v468_v52 = vrot.slane %v4416_v33, 2  ;;  %v7842_v13 = vld [vmem:[#allocation34_spill] sm:$0xff]  ;;  %v7844_v33 = vld [vmem:[#allocation37_spill] sm:$0xff] }
  0x8a   :  { %795 = vrot.lane.b32.xlu0 %v4813_v20, %s3945_s18  ;;  %7836 = vst [vmem:[#allocation109_spill] sm:$0xff] %v5034_v26  ;;  %v5044_v61 = vsel %vm386_vm1, %v463_v57, %v465_v43  ;;  %v467_v8 = vrot.slane %v7842_v13, 2 }
  0x8b   :  { %v4827_v36 = vpop.permute.xlu1 %621  ;;  %7838 = vst [vmem:[#allocation111_spill] sm:$0xff] %v5044_v61  ;;  %v5051_v27 = vsel %vm386_vm1, %v462_v42, %v463_v57  ;;  %v7847_v42 = vld [vmem:[#allocation39_spill] sm:$0xff] }
  0x8c   :  { %v4833_v9 = vpop.permute.xlu0 %619  ;;  %7841 = vst [vmem:[#allocation112_spill] sm:$0xff] %v5051_v27  ;;  %v469_v57 = vsel %vm386_vm1, %v467_v8, %v468_v52  ;;  %v472_v13 = vrot.slane %v7847_v42, 2 }
  0x8d   :  { %801 = vrot.lane.b32.xlu1 %v4823_v5, %s3945_s18 }
  0x8e   :  { %799 = vrot.lane.b32.xlu0 %v4830_v10, %s3945_s18 }
  0x8f   :  { %v4844_v7 = vpop.permute.xlu1 %625 }
  0x90   :  { %7811 = vst [vmem:[#allocation84_spill] sm:$0xff] %v4844_v7  ;;  %v4850_v0 = vpop.permute.xlu0 %623 }
  0x91   :  { %805 = vrot.lane.b32.xlu1 %v4840_v2, %s3945_s18 }
  0x92   :  { %803 = vrot.lane.b32.xlu0 %v4847_v1, %s3945_s18 }
  0x93   :  { %v4861_v60 = vpop.permute.xlu1 %629 }
  0x94   :  { %7812 = vst [vmem:[#allocation85_spill] sm:$0xff] %v4861_v60  ;;  %v4867_v15 = vpop.permute.xlu0 %627 }
  0x95   :  { %7813 = vst [vmem:[#allocation86_spill] sm:$0xff] %v4867_v15  ;;  %809 = vrot.lane.b32.xlu1 %v4857_v14, %s3945_s18 }
  0x96   :  { %807 = vrot.lane.b32.xlu0 %v4864_v11, %s3945_s18 }
  0x97   :  { %v4878_v4 = vpop.permute.xlu1 %633 }
  0x98   :  { %7814 = vst [vmem:[#allocation87_spill] sm:$0xff] %v4878_v4  ;;  %v4884_v24 = vpop.permute.xlu0 %631 }
  0x99   :  { %7815 = vst [vmem:[#allocation88_spill] sm:$0xff] %v4884_v24  ;;  %813 = vrot.lane.b32.xlu1 %v4874_v23, %s3945_s18 }
  0x9a   :  { %811 = vrot.lane.b32.xlu0 %v4881_v22, %s3945_s18 }
  0x9b   :  { %v4895_v49 = vpop.permute.xlu1 %637 }
  0x9c   :  { %7816 = vst [vmem:[#allocation89_spill] sm:$0xff] %v4895_v49  ;;  %v4901_v32 = vpop.permute.xlu0 %635 }
  0x9d   :  { %7817 = vst [vmem:[#allocation90_spill] sm:$0xff] %v4901_v32  ;;  %817 = vrot.lane.b32.xlu1 %v4891_v31, %s3945_s18 }
  0x9e   :  { %815 = vrot.lane.b32.xlu0 %v4898_v30, %s3945_s18 }
  0x9f   :  { %v4912_v49 = vpop.permute.xlu1 %641 }
  0xa0   :  { %7818 = vst [vmem:[#allocation91_spill] sm:$0xff] %v4912_v49  ;;  %v4918_v40 = vpop.permute.xlu0 %639 }
  0xa1   :  { %7819 = vst [vmem:[#allocation92_spill] sm:$0xff] %v4918_v40  ;;  %821 = vrot.lane.b32.xlu1 %v4908_v39, %s3945_s18 }
  0xa2   :  { %819 = vrot.lane.b32.xlu0 %v4915_v38, %s3945_s18 }
  0xa3   :  { %v4929_v49 = vpop.permute.xlu1 %645 }
  0xa4   :  { %7820 = vst [vmem:[#allocation93_spill] sm:$0xff] %v4929_v49  ;;  %v4935_v48 = vpop.permute.xlu0 %643 }
  0xa5   :  { %7821 = vst [vmem:[#allocation94_spill] sm:$0xff] %v4935_v48  ;;  %825 = vrot.lane.b32.xlu1 %v4925_v47, %s3945_s18 }
  0xa6   :  { %823 = vrot.lane.b32.xlu0 %v4932_v46, %s3945_s18 }
  0xa7   :  { %v4946_v49 = vpop.permute.xlu1 %649 }
  0xa8   :  { %7822 = vst [vmem:[#allocation95_spill] sm:$0xff] %v4946_v49  ;;  %v4952_v56 = vpop.permute.xlu0 %647 }
  0xa9   :  { %7823 = vst [vmem:[#allocation96_spill] sm:$0xff] %v4952_v56  ;;  %829 = vrot.lane.b32.xlu1 %v4942_v55, %s3945_s18 }
  0xaa   :  { %827 = vrot.lane.b32.xlu0 %v4949_v54, %s3945_s18 }
  0xab   :  { %v4963_v49 = vpop.permute.xlu1 %653 }
  0xac   :  { %7824 = vst [vmem:[#allocation97_spill] sm:$0xff] %v4963_v49  ;;  %v4969_v3 = vpop.permute.xlu0 %651 }
  0xad   :  { %7825 = vst [vmem:[#allocation98_spill] sm:$0xff] %v4969_v3  ;;  %833 = vrot.lane.b32.xlu1 %v4959_v63, %s3945_s18 }
  0xae   :  { %831 = vrot.lane.b32.xlu0 %v4966_v62, %s3945_s18 }
  0xaf   :  { %v4980_v49 = vpop.permute.xlu1 %657 }
  0xb0   :  { %7826 = vst [vmem:[#allocation99_spill] sm:$0xff] %v4980_v49  ;;  %v4986_v19 = vpop.permute.xlu0 %655 }
  0xb1   :  { %7827 = vst [vmem:[#allocation100_spill] sm:$0xff] %v4986_v19  ;;  %837 = vrot.lane.b32.xlu1 %v4976_v18, %s3945_s18 }
  0xb2   :  { %835 = vrot.lane.b32.xlu0 %v4983_v16, %s3945_s18 }
  0xb3   :  { %v4997_v49 = vpop.permute.xlu1 %661 }
  0xb4   :  { %7828 = vst [vmem:[#allocation101_spill] sm:$0xff] %v4997_v49  ;;  %v5003_v37 = vpop.permute.xlu0 %659 }
  0xb5   :  { %7829 = vst [vmem:[#allocation102_spill] sm:$0xff] %v5003_v37  ;;  %841 = vrot.lane.b32.xlu1 %v4993_v35, %s3945_s18  ;;  %v473_v37 = vrot.slane %v7844_v33, 2  ;;  %v7851_v33 = vld [vmem:[#allocation41_spill] sm:$0xff] }
  0xb6   :  { %839 = vrot.lane.b32.xlu0 %v5000_v34, %s3945_s18  ;;  %v480_v48 = vrot.slane %v7851_v33, 2 }
  0xb7   :  { %v5014_v49 = vpop.permute.xlu1 %665 }
  0xb8   :  { %7831 = vst [vmem:[#allocation104_spill] sm:$0xff] %v5014_v49  ;;  %v5020_v59 = vpop.permute.xlu0 %663 }
  0xb9   :  { %7833 = vst [vmem:[#allocation106_spill] sm:$0xff] %v5020_v59  ;;  %845 = vrot.lane.b32.xlu1 %v5010_v58, %s3945_s18 }
  0xba   :  { %843 = vrot.lane.b32.xlu0 %v5017_v53, %s3945_s18  ;;  %v7941_v53 = vld [vmem:[#allocation79_spill] sm:$0xff] }
  0xbb   :  { %v5031_v49 = vpop.permute.xlu1 %669 }
  0xbc   :  { %7835 = vst [vmem:[#allocation108_spill] sm:$0xff] %v5031_v49  ;;  %v5037_v45 = vpop.permute.xlu0 %667  ;;  %v470_v49 = vrot.slane %v7839_v6, 2  ;;  %v7845_v6 = vld [vmem:[#allocation38_spill] sm:$0xff] }
  0xbd   :  { %7837 = vst [vmem:[#allocation110_spill] sm:$0xff] %v5037_v45  ;;  %849 = vrot.lane.b32.xlu1 %v5027_v29, %s3945_s18  ;;  %v475_v19 = vrot.slane %v7845_v6, 2 }
  0xbe   :  { %847 = vrot.lane.b32.xlu0 %v5034_v26, %s3945_s18  ;;  %v471_v43 = vsel %vm386_vm1, %v468_v52, %v470_v49  ;;  %v7850_v49 = vld [vmem:[#allocation40_spill] sm:$0xff]  ;;  %v7854_v52 = vld [vmem:[#allocation42_spill] sm:$0xff]  ;;  %v7914_v26 = vld [vmem:[#allocation11_spill] sm:$0xff] }
  0xbf   :  { %v5048_v59 = vpop.permute.xlu1 %673  ;;  %v478_v56 = vrot.slane %v7850_v49, 2  ;;  %v477_v8 = vrot.slane %v7854_v52, 2  ;;  %v7858_v49 = vld [vmem:[#allocation46_spill] sm:$0xff] }
  0xc0   :  { %7840 = vst [vmem:[#allocation33_spill] sm:$0xff] %v5048_v59  ;;  %v5054_v45 = vpop.permute.xlu0 %671  ;;  %v485_v33 = vrot.slane %v7858_v49, 2 }
  0xc1   :  { %7843 = vst [vmem:[#allocation34_spill] sm:$0xff] %v5054_v45  ;;  %853 = vrot.lane.b32.xlu1 %v5044_v61, %s3945_s18  ;;  %v5072_v45 = vsel %vm386_vm1, %v473_v37, %v475_v19  ;;  %v5089_v19 = vsel %vm386_vm1, %v478_v56, %v480_v48 }
  0xc2   :  { %851 = vrot.lane.b32.xlu0 %v5051_v27, %s3945_s18  ;;  %7849 = vst [vmem:[#allocation39_spill] sm:$0xff] %v5072_v45  ;;  %7856 = vst [vmem:[#allocation113_spill] sm:$0xff] %v5089_v19 }
  0xc3   :  { %v5063_v59 = vpop.permute.xlu1 %677 }
  0xc4   :  { %7846 = vst [vmem:[#allocation37_spill] sm:$0xff] %v5063_v59  ;;  %v5067_v3 = vpop.permute.xlu0 %675  ;;  %v5079_v59 = vsel %vm386_vm1, %v472_v13, %v473_v37  ;;  %v5096_v37 = vsel %vm386_vm1, %v477_v8, %v478_v56  ;;  %v7861_v13 = vld [vmem:[#allocation47_spill] sm:$0xff]  ;;  %v7868_v8 = vld [vmem:[#allocation52_spill] sm:$0xff] }
  0xc5   :  { %7848 = vst [vmem:[#allocation38_spill] sm:$0xff] %v5067_v3  ;;  %857 = vrot.lane.b32.xlu1 %v471_v43, %s3945_s18  ;;  %7853 = vst [vmem:[#allocation41_spill] sm:$0xff] %v5079_v59  ;;  %v7857_v43 = vld [vmem:[#allocation45_spill] sm:$0xff]  ;;  %v482_v52 = vrot.slane %v7861_v13, 2  ;;  %v7865_v3 = vld [vmem:[#allocation51_spill] sm:$0xff]  ;;  %v487_v13 = vrot.slane %v7868_v8, 2 }
  0xc6   :  { %855 = vrot.lane.b32.xlu0 %v469_v57, %s3945_s18  ;;  %v483_v57 = vrot.slane %v7857_v43, 2  ;;  %7860 = vst [vmem:[#allocation46_spill] sm:$0xff] %v5096_v37  ;;  %v7864_v43 = vld [vmem:[#allocation50_spill] sm:$0xff] }
  0xc7   :  { %v5076_v6 = vpop.permute.xlu1 %681  ;;  %v488_v49 = vrot.slane %v7864_v43, 2  ;;  %v7871_v43 = vld [vmem:[#allocation55_spill] sm:$0xff] }
  0xc8   :  { %7852 = vst [vmem:[#allocation40_spill] sm:$0xff] %v5076_v6  ;;  %v5082_v42 = vpop.permute.xlu0 %679  ;;  %v5106_v48 = vsel %vm386_vm1, %v483_v57, %v485_v33  ;;  %v5113_v56 = vsel %vm386_vm1, %v482_v52, %v483_v57  ;;  %v7875_v52 = vld [vmem:[#allocation57_spill] sm:$0xff] }
  0xc9   :  { %7855 = vst [vmem:[#allocation42_spill] sm:$0xff] %v5082_v42  ;;  %861 = vrot.lane.b32.xlu1 %v5072_v45, %s3945_s18  ;;  %7863 = vst [vmem:[#allocation114_spill] sm:$0xff] %v5106_v48  ;;  %v5130_v57 = vsel %vm386_vm1, %v487_v13, %v488_v49  ;;  %v492_v8 = vrot.slane %v7875_v52, 2 }
  0xca   :  { %859 = vrot.lane.b32.xlu0 %v5079_v59, %s3945_s18  ;;  %7867 = vst [vmem:[#allocation51_spill] sm:$0xff] %v5113_v56  ;;  %v7900_v59 = vld [vmem:[#allocation9_spill] sm:$0xff] }
  0xcb   :  { %v5093_v6 = vpop.permute.xlu1 %685 }
  0xcc   :  { %7859 = vst [vmem:[#allocation45_spill] sm:$0xff] %v5093_v6  ;;  %v5099_v42 = vpop.permute.xlu0 %683  ;;  %v490_v6 = vrot.slane %v7865_v3, 2  ;;  %v493_v3 = vrot.slane %v7871_v43, 2 }
  0xcd   :  { %7862 = vst [vmem:[#allocation47_spill] sm:$0xff] %v5099_v42  ;;  %865 = vrot.lane.b32.xlu1 %v5089_v19, %s3945_s18  ;;  %v7872_v19 = vld [vmem:[#allocation56_spill] sm:$0xff] }
  0xce   :  { %863 = vrot.lane.b32.xlu0 %v5096_v37, %s3945_s18  ;;  %v5123_v33 = vsel %vm386_vm1, %v488_v49, %v490_v6  ;;  %7874 = vst [vmem:[#allocation56_spill] sm:$0xff] %v5130_v57 }
  0xcf   :  { %v5110_v45 = vpop.permute.xlu1 %689  ;;  %7870 = vst [vmem:[#allocation115_spill] sm:$0xff] %v5123_v33 }
  0xd0   :  { %7866 = vst [vmem:[#allocation50_spill] sm:$0xff] %v5110_v45  ;;  %v5116_v42 = vpop.permute.xlu0 %687  ;;  %v495_v45 = vrot.slane %v7872_v19, 2  ;;  %v5145_v19 = vsel %vm386_vm1, %v492_v8, %v493_v3 }
  0xd1   :  { %7869 = vst [vmem:[#allocation52_spill] sm:$0xff] %v5116_v42  ;;  %869 = vrot.lane.b32.xlu1 %v5106_v48, %s3945_s18  ;;  %7879 = vst [vmem:[#allocation118_spill] sm:$0xff] %v5145_v19 }
  0xd2   :  { %867 = vrot.lane.b32.xlu0 %v5113_v56, %s3945_s18  ;;  %v5140_v6 = vsel %vm386_vm1, %v493_v3, %v495_v45  ;;  %v5160_v45 = vld [vmem:[%s7561_s0 + $0x20] sm:$0xff]  ;;  %v5167_v3 = vld [vmem:[%s7561_s0 + $0x18] sm:$0xff] }
  0xd3   :  { %v5127_v37 = vpop.permute.xlu1 %693  ;;  %7877 = vst [vmem:[#allocation116_spill] sm:$0xff] %v5140_v6 }
  0xd4   :  { %7873 = vst [vmem:[#allocation55_spill] sm:$0xff] %v5127_v37  ;;  %v5133_v42 = vpop.permute.xlu0 %691 }
  0xd5   :  { %7876 = vst [vmem:[#allocation57_spill] sm:$0xff] %v5133_v42  ;;  %873 = vrot.lane.b32.xlu1 %v5123_v33, %s3945_s18 }
  0xd6   :  { %871 = vrot.lane.b32.xlu0 %v5130_v57, %s3945_s18 }
  0xd7   :  { %v5142_v43 = vpop.permute.xlu1 %697 }
  0xd8   :  { %7878 = vst [vmem:[#allocation117_spill] sm:$0xff] %v5142_v43  ;;  %v5147_v49 = vpop.permute.xlu0 %695  ;;  %v7886_v43 = vld [vmem:[#allocation5_spill] sm:$0xff] }
  0xd9   :  { %7880 = vst [vmem:[#allocation119_spill] sm:$0xff] %v5147_v49  ;;  %877 = vrot.lane.b32.xlu1 %v5140_v6, %s3945_s18 }
  0xda   :  { %875 = vrot.lane.b32.xlu0 %v5145_v19, %s3945_s18  ;;  %v5279_v19 = vld [vmem:[%s7561_s0 + $0x50] sm:$0xff] }
  0xdb   :  { %v5153_v13 = vpop.permute.xlu1 %701 }
  0xdc   :  { %7881 = vst [vmem:[#allocation120_spill] sm:$0xff] %v5153_v13  ;;  %v5155_v52 = vpop.permute.xlu0 %699 }
  0xdd   :  { %7882 = vst [vmem:[#allocation121_spill] sm:$0xff] %v5155_v52  ;;  %985 = vrot.lane.b32.xlu1 %v5160_v45, %s3946_s20  ;;  %v7885_v52 = vld [vmem:[#allocation6_spill] sm:$0xff] }
  0xde   :  { %983 = vrot.lane.b32.xlu0 %v5167_v3, %s3946_s20 }
  0xdf   :  { %v5171_v8 = vpop.permute.xlu1 %705 }
  0xe0   :  { %7883 = vst [vmem:[#allocation122_spill] sm:$0xff] %v5171_v8  ;;  %v5173_v13 = vpop.permute.xlu0 %703 }
  0xe1   :  { %7884 = vst [vmem:[#allocation123_spill] sm:$0xff] %v5173_v13  ;;  %1177 = vrot.lane.b32.xlu1 %v7885_v52, %s3947_s23  ;;  %v5194_v52 = vld [vmem:[%s7561_s0 + $0x30] sm:$0xff] }
  0xe2   :  { %1175 = vrot.lane.b32.xlu0 %v7886_v43, %s3947_s23  ;;  %v2658_v43 = vld [vmem:[%s7562_s1 + $0x18] sm:$0x7] }
  0xe3   :  { %v5179_v49 = vpop.permute.xlu1 %709  ;;  %3718 = vmatprep.subr.msk.mxu0 %vm2859_vm2, %v2658_v43  ;;  %3827 = vmatprep.subr.msk.mxu1 %vm2859_vm2, %v2658_v43 }
  0xe4   :  { %7887 = vst [vmem:[#allocation6_spill] sm:$0xff] %v5179_v49  ;;  %v5181_v37 = vpop.permute.xlu0 %707  ;;  %3719 = vmatpush3.msk.msra.mxu0 %vm2859_vm2, %v2658_v43  ;;  %3831 = vmatpush3.msk.msra.mxu1 %vm2859_vm2, %v2658_v43  ;;  %v2656_v49 = vld [vmem:[%s7562_s1 + $0x8] sm:$0xff]  ;;  %v2655_v43 = vld [vmem:[%s7562_s1] sm:$0xff]  ;;  %vm3564_vm2 = vcmask 8192  }
  0xe5   :  { %7888 = vst [vmem:[#allocation5_spill] sm:$0xff] %v5181_v37  ;;  %1369 = vrot.lane.b32.xlu1 %v4806_v28, %s3948_s24  ;;  %v2657_v28 = vld [vmem:[%s7562_s1 + $0x10] sm:$0xff]  ;;  %v5218_v37 = vld [vmem:[%s7561_s0 + $0x38] sm:$0xff]  ;;  %s3951_s1 = smov 24  }
  0xe6   :  { %1367 = vrot.lane.b32.xlu0 %v4813_v20, %s3948_s24  ;;  %3720 = vmatprep.subr.mxu0 %v2657_v28 }
  0xe7   :  { %v5187_v8 = vpop.permute.xlu1 %713  ;;  %3721 = vmatpush3.msra.mxu0 %v2657_v28  ;;  %3828 = vmatprep.subr.mxu1 %v2657_v28 }
  0xe8   :  { %7889 = vst [vmem:[#allocation124_spill] sm:$0xff] %v5187_v8  ;;  %v5189_v13 = vpop.permute.xlu0 %711  ;;  %3722 = vmatprep.subr.mxu0 %v2656_v49  ;;  %3832 = vmatpush3.msra.mxu1 %v2657_v28  ;;  %v7898_v28 = vld [vmem:[#allocation7_spill] sm:$0xff] }
  0xe9   :  { %7890 = vst [vmem:[#allocation125_spill] sm:$0xff] %v5189_v13  ;;  %987 = vrot.lane.b32.xlu1 %v5194_v52, %s3946_s20  ;;  %v7893_v13 = vld [vmem:[#allocation8_spill] sm:$0xff]  ;;  %3723 = vmatpush3.msra.mxu0 %v2656_v49 }
  0xea   :  { %1559 = vrot.lane.b32.xlu0 %v5194_v52, %s3949_s29  ;;  %3724 = vmatprep.subr.mxu0 %v2655_v43 }
  0xeb   :  { %v5206_v20 = vpop.permute.xlu1 %717  ;;  %3725 = vmatpush3.msra.mxu0 %v2655_v43  ;;  %3829 = vmatprep.subr.mxu1 %v2656_v49 }
  0xec   :  { %7891 = vst [vmem:[#allocation126_spill] sm:$0xff] %v5206_v20  ;;  %v5208_v8 = vpop.permute.xlu0 %715  ;;  %3833 = vmatpush3.msra.mxu1 %v2656_v49 }
  0xed   :  { %7892 = vst [vmem:[#allocation127_spill] sm:$0xff] %v5208_v8  ;;  %1751 = vrot.lane.b32.xlu1 %v7893_v13, %s3950_s7  ;;  %3830 = vmatprep.subr.mxu1 %v2655_v43 }
  0xee   :  { %1561 = vrot.lane.b32.xlu0 %v5218_v37, %s3949_s29  ;;  %3834 = vmatpush3.msra.mxu1 %v2655_v43 }
  0xef   :  { %v5225_v20 = vpop.permute.xlu1 %721 }
  0xf0   :  { %7894 = vst [vmem:[#allocation8_spill] sm:$0xff] %v5225_v20  ;;  %v5227_v8 = vpop.permute.xlu0 %719 }
  0xf1   :  { %7895 = vst [vmem:[#allocation128_spill] sm:$0xff] %v5227_v8  ;;  %1179 = vrot.lane.b32.xlu1 %v7893_v13, %s3947_s23 }
  0xf2   :  { %989 = vrot.lane.b32.xlu0 %v5218_v37, %s3946_s20 }
  0xf3   :  { %v5233_v42 = vpop.permute.xlu1 %725 }
  0xf4   :  { %7896 = vst [vmem:[#allocation129_spill] sm:$0xff] %v5233_v42  ;;  %v5235_v6 = vpop.permute.xlu0 %723 }
  0xf5   :  { %7897 = vst [vmem:[#allocation130_spill] sm:$0xff] %v5235_v6  ;;  %1943 = vrot.lane.b32.xlu1 %v4830_v10, %s3951_s1 }
  0xf6   :  { %1753 = vrot.lane.b32.xlu0 %v7898_v28, %s3950_s7 }
  0xf7   :  { %v5241_v13 = vpop.permute.xlu1 %793 }
  0xf8   :  { %v5243_v20 = vpop.permute.xlu0 %791 }
  0xf9   :  { %1371 = vrot.lane.b32.xlu1 %v4830_v10, %s3948_s24  ;;  %v5264_v10 = vld [vmem:[%s7561_s0 + $0x48] sm:$0xff] }
  0xfa   :  { %1181 = vrot.lane.b32.xlu0 %v7898_v28, %s3947_s23 }
  0xfb   :  { %v5249_v49 = vpop.permute.xlu1 %797 }
  0xfc   :  { %v5251_v6 = vpop.permute.xlu0 %795 }
  0xfd   :  { %1373 = vrot.lane.b32.xlu1 %v4823_v5, %s3948_s24 }
  0xfe   :  { %1945 = vrot.lane.b32.xlu0 %v4823_v5, %s3951_s1  ;;  %v7899_v5 = vld [vmem:[#allocation10_spill] sm:$0xff] }
  0xff   :  { %v5257_v43 = vpop.permute.xlu1 %801 }
 0x100   :  { %v5259_v42 = vpop.permute.xlu0 %799 }
 0x101   :  { %991 = vrot.lane.b32.xlu1 %v5264_v10, %s3946_s20 }
 0x102   :  { %1563 = vrot.lane.b32.xlu0 %v5264_v10, %s3949_s29 }
 0x103   :  { %v5270_v28 = vpop.permute.xlu1 %805 }
 0x104   :  { %v5272_v8 = vpop.permute.xlu0 %803 }
 0x105   :  { %1755 = vrot.lane.b32.xlu1 %v7899_v5, %s3950_s7 }
 0x106   :  { %1565 = vrot.lane.b32.xlu0 %v5279_v19, %s3949_s29 }
 0x107   :  { %v5283_v33 = vpop.permute.xlu1 %809 }
 0x108   :  { %v5285_v57 = vpop.permute.xlu0 %807 }
 0x109   :  { %1183 = vrot.lane.b32.xlu1 %v7899_v5, %s3947_s23 }
 0x10a   :  { %993 = vrot.lane.b32.xlu0 %v5279_v19, %s3946_s20 }
 0x10b   :  { %v5291_v48 = vpop.permute.xlu1 %813 }
 0x10c   :  { %v5293_v56 = vpop.permute.xlu0 %811 }
 0x10d   :  { %1947 = vrot.lane.b32.xlu1 %v4847_v1, %s3951_s1 }
 0x10e   :  { %1757 = vrot.lane.b32.xlu0 %v7900_v59, %s3950_s7 }
 0x10f   :  { %v5299_v40 = vpop.permute.xlu1 %817 }
 0x110   :  { %7901 = vst [vmem:[#allocation7_spill] sm:$0xff] %v5299_v40  ;;  %v5301_v32 = vpop.permute.xlu0 %815  ;;  %v5483_v40 = vld [vmem:[%s7561_s0 + $0xa8] sm:$0xff] }
 0x111   :  { %7902 = vst [vmem:[#allocation10_spill] sm:$0xff] %v5301_v32  ;;  %1375 = vrot.lane.b32.xlu1 %v4847_v1, %s3948_s24  ;;  %v5322_v1 = vld [vmem:[%s7561_s0 + $0x60] sm:$0xff] }
 0x112   :  { %1185 = vrot.lane.b32.xlu0 %v7900_v59, %s3947_s23 }
 0x113   :  { %v5307_v5 = vpop.permute.xlu1 %821 }
 0x114   :  { %7903 = vst [vmem:[#allocation9_spill] sm:$0xff] %v5307_v5  ;;  %v5309_v61 = vpop.permute.xlu0 %819 }
 0x115   :  { %7904 = vst [vmem:[#allocation131_spill] sm:$0xff] %v5309_v61  ;;  %1377 = vrot.lane.b32.xlu1 %v4840_v2, %s3948_s24 }
 0x116   :  { %1949 = vrot.lane.b32.xlu0 %v4840_v2, %s3951_s1  ;;  %v7909_v2 = vld [vmem:[#allocation12_spill] sm:$0xff] }
 0x117   :  { %v5315_v27 = vpop.permute.xlu1 %825 }
 0x118   :  { %7905 = vst [vmem:[#allocation132_spill] sm:$0xff] %v5315_v27  ;;  %v5317_v4 = vpop.permute.xlu0 %823  ;;  %v5337_v27 = vld [vmem:[%s7561_s0 + $0x68] sm:$0xff] }
 0x119   :  { %7906 = vst [vmem:[#allocation133_spill] sm:$0xff] %v5317_v4  ;;  %995 = vrot.lane.b32.xlu1 %v5322_v1, %s3946_s20 }
 0x11a   :  { %1567 = vrot.lane.b32.xlu0 %v5322_v1, %s3949_s29 }
 0x11b   :  { %v5328_v59 = vpop.permute.xlu1 %829 }
 0x11c   :  { %7907 = vst [vmem:[#allocation134_spill] sm:$0xff] %v5328_v59  ;;  %v5330_v24 = vpop.permute.xlu0 %827 }
 0x11d   :  { %7908 = vst [vmem:[#allocation135_spill] sm:$0xff] %v5330_v24  ;;  %1759 = vrot.lane.b32.xlu1 %v7909_v2, %s3950_s7 }
 0x11e   :  { %1569 = vrot.lane.b32.xlu0 %v5337_v27, %s3949_s29 }
 0x11f   :  { %v5341_v4 = vpop.permute.xlu1 %833 }
 0x120   :  { %7910 = vst [vmem:[#allocation12_spill] sm:$0xff] %v5341_v4  ;;  %v5343_v29 = vpop.permute.xlu0 %831 }
 0x121   :  { %7911 = vst [vmem:[#allocation136_spill] sm:$0xff] %v5343_v29  ;;  %1187 = vrot.lane.b32.xlu1 %v7909_v2, %s3947_s23 }
 0x122   :  { %997 = vrot.lane.b32.xlu0 %v5337_v27, %s3946_s20 }
 0x123   :  { %v5349_v59 = vpop.permute.xlu1 %837 }
 0x124   :  { %7912 = vst [vmem:[#allocation137_spill] sm:$0xff] %v5349_v59  ;;  %v5351_v24 = vpop.permute.xlu0 %835 }
 0x125   :  { %7913 = vst [vmem:[#allocation138_spill] sm:$0xff] %v5351_v24  ;;  %1951 = vrot.lane.b32.xlu1 %v4864_v11, %s3951_s1 }
 0x126   :  { %1761 = vrot.lane.b32.xlu0 %v7914_v26, %s3950_s7 }
 0x127   :  { %v5357_v5 = vpop.permute.xlu1 %841 }
 0x128   :  { %7915 = vst [vmem:[#allocation11_spill] sm:$0xff] %v5357_v5  ;;  %v5359_v4 = vpop.permute.xlu0 %839 }
 0x129   :  { %7916 = vst [vmem:[#allocation139_spill] sm:$0xff] %v5359_v4  ;;  %1379 = vrot.lane.b32.xlu1 %v4864_v11, %s3948_s24  ;;  %v5380_v11 = vld [vmem:[%s7561_s0 + $0x78] sm:$0xff]  ;;  %v7928_v4 = vld [vmem:[#allocation13_spill] sm:$0xff] }
 0x12a   :  { %1189 = vrot.lane.b32.xlu0 %v7914_v26, %s3947_s23 }
 0x12b   :  { %v5365_v2 = vpop.permute.xlu1 %845 }
 0x12c   :  { %7917 = vst [vmem:[#allocation140_spill] sm:$0xff] %v5365_v2  ;;  %v5367_v59 = vpop.permute.xlu0 %843 }
 0x12d   :  { %7918 = vst [vmem:[#allocation141_spill] sm:$0xff] %v5367_v59  ;;  %1381 = vrot.lane.b32.xlu1 %v4857_v14, %s3948_s24 }
 0x12e   :  { %1953 = vrot.lane.b32.xlu0 %v4857_v14, %s3951_s1  ;;  %v7923_v14 = vld [vmem:[#allocation14_spill] sm:$0xff] }
 0x12f   :  { %v5373_v24 = vpop.permute.xlu1 %849 }
 0x130   :  { %7919 = vst [vmem:[#allocation142_spill] sm:$0xff] %v5373_v24  ;;  %v5375_v5 = vpop.permute.xlu0 %847  ;;  %v5395_v24 = vld [vmem:[%s7561_s0 + $0x80] sm:$0xff] }
 0x131   :  { %7920 = vst [vmem:[#allocation143_spill] sm:$0xff] %v5375_v5  ;;  %999 = vrot.lane.b32.xlu1 %v5380_v11, %s3946_s20 }
 0x132   :  { %1571 = vrot.lane.b32.xlu0 %v5380_v11, %s3949_s29 }
 0x133   :  { %v5386_v26 = vpop.permute.xlu1 %853 }
 0x134   :  { %7921 = vst [vmem:[#allocation144_spill] sm:$0xff] %v5386_v26  ;;  %v5388_v2 = vpop.permute.xlu0 %851 }
 0x135   :  { %7922 = vst [vmem:[#allocation145_spill] sm:$0xff] %v5388_v2  ;;  %1763 = vrot.lane.b32.xlu1 %v7923_v14, %s3950_s7 }
 0x136   :  { %1573 = vrot.lane.b32.xlu0 %v5395_v24, %s3949_s29 }
 0x137   :  { %v5399_v5 = vpop.permute.xlu1 %857 }
 0x138   :  { %7924 = vst [vmem:[#allocation14_spill] sm:$0xff] %v5399_v5  ;;  %v5401_v59 = vpop.permute.xlu0 %855 }
 0x139   :  { %7925 = vst [vmem:[#allocation146_spill] sm:$0xff] %v5401_v59  ;;  %1191 = vrot.lane.b32.xlu1 %v7923_v14, %s3947_s23 }
 0x13a   :  { %1001 = vrot.lane.b32.xlu0 %v5395_v24, %s3946_s20 }
 0x13b   :  { %v5407_v26 = vpop.permute.xlu1 %861 }
 0x13c   :  { %7926 = vst [vmem:[#allocation147_spill] sm:$0xff] %v5407_v26  ;;  %v5409_v2 = vpop.permute.xlu0 %859 }
 0x13d   :  { %7927 = vst [vmem:[#allocation148_spill] sm:$0xff] %v5409_v2  ;;  %1955 = vrot.lane.b32.xlu1 %v4881_v22, %s3951_s1 }
 0x13e   :  { %1765 = vrot.lane.b32.xlu0 %v7928_v4, %s3950_s7 }
 0x13f   :  { %v5415_v29 = vpop.permute.xlu1 %865 }
 0x140   :  { %7929 = vst [vmem:[#allocation13_spill] sm:$0xff] %v5415_v29  ;;  %v5417_v5 = vpop.permute.xlu0 %863 }
 0x141   :  { %7930 = vst [vmem:[#allocation149_spill] sm:$0xff] %v5417_v5  ;;  %1383 = vrot.lane.b32.xlu1 %v4881_v22, %s3948_s24  ;;  %v5438_v22 = vld [vmem:[%s7561_s0 + $0x90] sm:$0xff] }
 0x142   :  { %1193 = vrot.lane.b32.xlu0 %v7928_v4, %s3947_s23  ;;  %7935 = vst [vmem:[#allocation154_spill] sm:$0xff] %v5438_v22  ;;  %v7940_v5 = vld [vmem:[#allocation15_spill] sm:$0xff] }
 0x143   :  { %v5423_v14 = vpop.permute.xlu1 %869 }
 0x144   :  { %7931 = vst [vmem:[#allocation150_spill] sm:$0xff] %v5423_v14  ;;  %v5425_v26 = vpop.permute.xlu0 %867 }
 0x145   :  { %7932 = vst [vmem:[#allocation151_spill] sm:$0xff] %v5425_v26  ;;  %1385 = vrot.lane.b32.xlu1 %v4874_v23, %s3948_s24 }
 0x146   :  { %1957 = vrot.lane.b32.xlu0 %v4874_v23, %s3951_s1  ;;  %v7938_v23 = vld [vmem:[#allocation16_spill] sm:$0xff] }
 0x147   :  { %v5431_v2 = vpop.permute.xlu1 %873 }
 0x148   :  { %7933 = vst [vmem:[#allocation152_spill] sm:$0xff] %v5431_v2  ;;  %v5433_v29 = vpop.permute.xlu0 %871  ;;  %v5453_v2 = vld [vmem:[%s7561_s0 + $0x98] sm:$0xff] }
 0x149   :  { %7934 = vst [vmem:[#allocation153_spill] sm:$0xff] %v5433_v29  ;;  %1003 = vrot.lane.b32.xlu1 %v5438_v22, %s3946_s20  ;;  %7939 = vst [vmem:[#allocation16_spill] sm:$0xff] %v5453_v2 }
 0x14a   :  { %1575 = vrot.lane.b32.xlu0 %v5438_v22, %s3949_s29  ;;  %v7942_v22 = vld [vmem:[#allocation18_spill] sm:$0xff] }
 0x14b   :  { %v5444_v4 = vpop.permute.xlu1 %877 }
 0x14c   :  { %7936 = vst [vmem:[#allocation155_spill] sm:$0xff] %v5444_v4  ;;  %v5446_v14 = vpop.permute.xlu0 %875 }
 0x14d   :  { %7937 = vst [vmem:[#allocation156_spill] sm:$0xff] %v5446_v14  ;;  %1767 = vrot.lane.b32.xlu1 %v7938_v23, %s3950_s7 }
 0x14e   :  { %1577 = vrot.lane.b32.xlu0 %v5453_v2, %s3949_s29 }
 0x14f   :  { %v986_v29 = vpop.permute.xlu1 %985 }
 0x150   :  { %v984_v26 = vpop.permute.xlu0 %983 }
 0x151   :  { %1195 = vrot.lane.b32.xlu1 %v7938_v23, %s3947_s23 }
 0x152   :  { %1005 = vrot.lane.b32.xlu0 %v5453_v2, %s3946_s20 }
 0x153   :  { %v1178_v4 = vpop.permute.xlu1 %1177 }
 0x154   :  { %v1176_v14 = vpop.permute.xlu0 %1175 }
 0x155   :  { %1959 = vrot.lane.b32.xlu1 %v4898_v30, %s3951_s1 }
 0x156   :  { %1769 = vrot.lane.b32.xlu0 %v7940_v5, %s3950_s7 }
 0x157   :  { %v1370_v59 = vpop.permute.xlu1 %1369 }
 0x158   :  { %v1368_v60 = vpop.permute.xlu0 %1367 }
 0x159   :  { %1387 = vrot.lane.b32.xlu1 %v4898_v30, %s3948_s24  ;;  %v3858_v30 = vld [vmem:[%s7561_s0] sm:$0xff] }
 0x15a   :  { %1197 = vrot.lane.b32.xlu0 %v7940_v5, %s3947_s23  ;;  %v2136_v5 = vsel %vm2135_vm3, %v3858_v30, %v7941_v53 }
 0x15b   :  { %v5469_v23 = vpop.permute.xlu1 %987 }
 0x15c   :  { %v1560_v61 = vpop.permute.xlu0 %1559 }
 0x15d   :  { %1389 = vrot.lane.b32.xlu1 %v4891_v31, %s3948_s24 }
 0x15e   :  { %1961 = vrot.lane.b32.xlu0 %v4891_v31, %s3951_s1  ;;  %v2201_v31 = vsel %vm2200_vm4, %v2136_v5, %v5243_v20  ;;  %v5502_v5 = vld [vmem:[%s7561_s0 + $0xb0] sm:$0xff] }
 0x15f   :  { %v1752_v15 = vpop.permute.xlu1 %1751  ;;  %v2266_v2 = vsel %vm2265_vm5, %v2201_v31, %v984_v26 }
 0x160   :  { %v1562_v58 = vpop.permute.xlu0 %1561  ;;  %v2331_v30 = vsel %vm2330_vm6, %v2266_v2, %v1176_v14 }
 0x161   :  { %1007 = vrot.lane.b32.xlu1 %v5483_v40, %s3946_s20  ;;  %v2396_v32 = vsel %vm2395_vm7, %v2331_v30, %v1368_v60 }
 0x162   :  { %1579 = vrot.lane.b32.xlu0 %v5483_v40, %s3949_s29  ;;  %v2461_v20 = vsel %vm2460_vm8, %v2396_v32, %v1560_v61  ;;  %v3861_v32 = vld [vmem:[%s7561_s0 + $0x8] sm:$0xff] }
 0x163   :  { %v1180_v53 = vpop.permute.xlu1 %1179  ;;  %v2526_v2 = vsel %vm2525_vm9, %v2461_v20, %v1752_v15  ;;  %v2137_v61 = vsel %vm2135_vm3, %v3861_v32, %v4771_v12 }
 0x164   :  { %v5493_v7 = vpop.permute.xlu0 %989  ;;  %v2202_v15 = vsel %vm2200_vm4, %v2137_v61, %v5241_v13 }
 0x165   :  { %1771 = vrot.lane.b32.xlu1 %v7942_v22, %s3950_s7  ;;  %v2267_v30 = vsel %vm2265_vm5, %v2202_v15, %v986_v29 }
 0x166   :  { %1581 = vrot.lane.b32.xlu0 %v5502_v5, %s3949_s29 }
 0x167   :  { %v1944_v26 = vpop.permute.xlu1 %1943 }
 0x168   :  { %v1754_v14 = vpop.permute.xlu0 %1753  ;;  %v2591_v60 = vsel %vm2590_vm10, %v2526_v2, %v1944_v26  ;;  %v7943_v26 = vld [vmem:[#allocation17_spill] sm:$0xff] }
 0x169   :  { %1199 = vrot.lane.b32.xlu1 %v7942_v22, %s3947_s23  ;;  %3726 = vmatprep.mubr.msk.f32.mxu0 %vm2666_vm11, %v2591_v60  ;;  %v2332_v22 = vsel %vm2330_vm6, %v2267_v30, %v1178_v4 }
 0x16a   :  { %1009 = vrot.lane.b32.xlu0 %v5502_v5, %s3946_s20  ;;  %v2397_v2 = vsel %vm2395_vm7, %v2332_v22, %v1370_v59 }
 0x16b   :  { %v1372_v31 = vpop.permute.xlu1 %1371  ;;  %v2462_v12 = vsel %vm2460_vm8, %v2397_v2, %v1562_v58 }
 0x16c   :  { %v1182_v20 = vpop.permute.xlu0 %1181  ;;  %v2527_v32 = vsel %vm2525_vm9, %v2462_v12, %v1754_v14  ;;  %v7944_v14 = vld [vmem:[#allocation77_spill] sm:$0xff]  ;;  %v7945_v12 = vld [vmem:[#allocation20_spill] sm:$0xff] }
 0x16d   :  { %1963 = vrot.lane.b32.xlu1 %v4915_v38, %s3951_s1  ;;  %v2138_v15 = vsel %vm2135_vm3, %v5167_v3, %v7944_v14 }
 0x16e   :  { %1773 = vrot.lane.b32.xlu0 %v7943_v26, %s3950_s7  ;;  %v2203_v30 = vsel %vm2200_vm4, %v2138_v15, %v5251_v6  ;;  %v5563_v6 = vld [vmem:[%s7561_s0 + $0xc8] sm:$0xff] }
 0x16f   :  { %v1374_v60 = vpop.permute.xlu1 %1373 }
 0x170   :  { %v1946_v13 = vpop.permute.xlu0 %1945 }
 0x171   :  { %v2592_v61 = vsel %vm2590_vm10, %v2527_v32, %v1946_v13  ;;  %1391 = vrot.lane.b32.xlu1 %v4915_v38, %s3948_s24  ;;  %v5545_v38 = vld [vmem:[%s7561_s0 + $0xc0] sm:$0xff] }
 0x172   :  { %1201 = vrot.lane.b32.xlu0 %v7943_v26, %s3947_s23  ;;  %3727 = vmatmul.mubr.msk.f32.vlgmr.msra.gmra.mxu0 %vm2666_vm11, %v2592_v61 }
 0x173   :  { %v992_v29 = vpop.permute.xlu1 %991 }
 0x174   :  { %v1564_v59 = vpop.permute.xlu0 %1563 }
 0x175   :  { %1393 = vrot.lane.b32.xlu1 %v4908_v39, %s3948_s24 }
 0x176   :  { %1965 = vrot.lane.b32.xlu0 %v4908_v39, %s3951_s1  ;;  %v2268_v39 = vsel %vm2265_vm5, %v2203_v30, %v5469_v23 }
 0x177   :  { %v1756_v58 = vpop.permute.xlu1 %1755  ;;  %v2333_v3 = vsel %vm2330_vm6, %v2268_v39, %v1180_v53 }
 0x178   :  { %v1566_v4 = vpop.permute.xlu0 %1565  ;;  %v2398_v26 = vsel %vm2395_vm7, %v2333_v3, %v1372_v31  ;;  %v2139_v31 = vsel %vm2135_vm3, %v5160_v45, %v4766_v44  ;;  %v7946_v44 = vld [vmem:[#allocation19_spill] sm:$0xff] }
 0x179   :  { %1011 = vrot.lane.b32.xlu1 %v5545_v38, %s3946_s20  ;;  %v2463_v32 = vsel %vm2460_vm8, %v2398_v26, %v1564_v59  ;;  %v2204_v59 = vsel %vm2200_vm4, %v2139_v31, %v5249_v49 }
 0x17a   :  { %1583 = vrot.lane.b32.xlu0 %v5545_v38, %s3949_s29  ;;  %v2528_v23 = vsel %vm2525_vm9, %v2463_v32, %v1756_v58  ;;  %v2269_v14 = vsel %vm2265_vm5, %v2204_v59, %v5493_v7  ;;  %v2140_v32 = vsel %vm2135_vm3, %v5194_v52, %v4788_v21 }
 0x17b   :  { %v1184_v22 = vpop.permute.xlu1 %1183  ;;  %v2334_v30 = vsel %vm2330_vm6, %v2269_v14, %v1182_v20 }
 0x17c   :  { %v994_v2 = vpop.permute.xlu0 %993  ;;  %v2399_v39 = vsel %vm2395_vm7, %v2334_v30, %v1374_v60 }
 0x17d   :  { %1775 = vrot.lane.b32.xlu1 %v7945_v12, %s3950_s7  ;;  %v2464_v45 = vsel %vm2460_vm8, %v2399_v39, %v1566_v4 }
 0x17e   :  { %1585 = vrot.lane.b32.xlu0 %v5563_v6, %s3949_s29 }
 0x17f   :  { %v1948_v13 = vpop.permute.xlu1 %1947 }
 0x180   :  { %v2593_v53 = vsel %vm2590_vm10, %v2528_v23, %v1948_v13  ;;  %v1758_v61 = vpop.permute.xlu0 %1757  ;;  %v2205_v23 = vsel %vm2200_vm4, %v2140_v32, %v5259_v42  ;;  %v5622_v42 = vld [vmem:[%s7561_s0 + $0xe0] sm:$0xff]  ;;  %v2142_v32 = vsel %vm2135_vm3, %v5264_v10, %v4801_v17 }
 0x181   :  { %1203 = vrot.lane.b32.xlu1 %v7945_v12, %s3947_s23  ;;  %3729 = vmatprep.mubr.msk.f32.mxu0 %vm2666_vm11, %v2593_v53  ;;  %v2529_v49 = vsel %vm2525_vm9, %v2464_v45, %v1758_v61  ;;  %v7947_v61 = vld [vmem:[#allocation22_spill] sm:$0xff] }
 0x182   :  { %1013 = vrot.lane.b32.xlu0 %v5563_v6, %s3946_s20 }
 0x183   :  { %v1376_v58 = vpop.permute.xlu1 %1375 }
 0x184   :  { %v1186_v15 = vpop.permute.xlu0 %1185 }
 0x185   :  { %1967 = vrot.lane.b32.xlu1 %v4932_v46, %s3951_s1 }
 0x186   :  { %1777 = vrot.lane.b32.xlu0 %v7946_v44, %s3950_s7 }
 0x187   :  { %v1378_v3 = vpop.permute.xlu1 %1377 }
 0x188   :  { %v1950_v26 = vpop.permute.xlu0 %1949 }
 0x189   :  { %v2594_v12 = vsel %vm2590_vm10, %v2529_v49, %v1950_v26  ;;  %1395 = vrot.lane.b32.xlu1 %v4932_v46, %s3948_s24  ;;  %v5605_v46 = vld [vmem:[%s7561_s0 + $0xd8] sm:$0xff] }
 0x18a   :  { %1205 = vrot.lane.b32.xlu0 %v7946_v44, %s3947_s23  ;;  %3730 = vmatmul.mubr.msk.f32.gmra.mxu0 %vm2666_vm11, %v2594_v12  ;;  %v7948_v12 = vld [vmem:[#allocation21_spill] sm:$0xff] }
 0x18b   :  { %v996_v7 = vpop.permute.xlu1 %995 }
 0x18c   :  { %v1568_v20 = vpop.permute.xlu0 %1567 }
 0x18d   :  { %1397 = vrot.lane.b32.xlu1 %v4925_v47, %s3948_s24 }
 0x18e   :  { %1969 = vrot.lane.b32.xlu0 %v4925_v47, %s3951_s1  ;;  %v2270_v47 = vsel %vm2265_vm5, %v2205_v23, %v992_v29  ;;  %v2207_v23 = vsel %vm2200_vm4, %v2142_v32, %v5272_v8  ;;  %v5680_v8 = vld [vmem:[%s7561_s0 + $0xf8] sm:$0xff] }
 0x18f   :  { %v1760_v60 = vpop.permute.xlu1 %1759  ;;  %v2335_v53 = vsel %vm2330_vm6, %v2270_v47, %v1184_v22 }
 0x190   :  { %v1570_v4 = vpop.permute.xlu0 %1569  ;;  %v2400_v52 = vsel %vm2395_vm7, %v2335_v53, %v1376_v58  ;;  %v2141_v58 = vsel %vm2135_vm3, %v5218_v37, %v4782_v25 }
 0x191   :  { %1015 = vrot.lane.b32.xlu1 %v5605_v46, %s3946_s20  ;;  %v2465_v31 = vsel %vm2460_vm8, %v2400_v52, %v1568_v20  ;;  %v2206_v30 = vsel %vm2200_vm4, %v2141_v58, %v5257_v43  ;;  %v7949_v52 = vld [vmem:[#allocation24_spill] sm:$0xff] }
 0x192   :  { %1587 = vrot.lane.b32.xlu0 %v5605_v46, %s3949_s29  ;;  %v2530_v29 = vsel %vm2525_vm9, %v2465_v31, %v1760_v60  ;;  %v2271_v44 = vsel %vm2265_vm5, %v2206_v30, %v994_v2 }
 0x193   :  { %v1188_v13 = vpop.permute.xlu1 %1187  ;;  %v2336_v49 = vsel %vm2330_vm6, %v2271_v44, %v1186_v15 }
 0x194   :  { %v998_v21 = vpop.permute.xlu0 %997  ;;  %v2401_v26 = vsel %vm2395_vm7, %v2336_v49, %v1378_v3  ;;  %v7950_v49 = vld [vmem:[#allocation23_spill] sm:$0xff] }
 0x195   :  { %1779 = vrot.lane.b32.xlu1 %v7947_v61, %s3950_s7  ;;  %v2466_v25 = vsel %vm2460_vm8, %v2401_v26, %v1570_v4 }
 0x196   :  { %1589 = vrot.lane.b32.xlu0 %v5622_v42, %s3949_s29 }
 0x197   :  { %v1952_v59 = vpop.permute.xlu1 %1951 }
 0x198   :  { %v2595_v22 = vsel %vm2590_vm10, %v2530_v29, %v1952_v59  ;;  %v1762_v14 = vpop.permute.xlu0 %1761  ;;  %v2143_v59 = vsel %vm2135_vm3, %v5279_v19, %v4797_v41 }
 0x199   :  { %1207 = vrot.lane.b32.xlu1 %v7947_v61, %s3947_s23  ;;  %3732 = vmatprep.mubr.msk.f32.mxu0 %vm2666_vm11, %v2595_v22  ;;  %v2531_v20 = vsel %vm2525_vm9, %v2466_v25, %v1762_v14  ;;  %v2208_v22 = vsel %vm2200_vm4, %v2143_v59, %v5270_v28 }
 0x19a   :  { %1017 = vrot.lane.b32.xlu0 %v5622_v42, %s3946_s20  ;;  %v2273_v58 = vsel %vm2265_vm5, %v2208_v22, %v998_v21 }
 0x19b   :  { %v1380_v39 = vpop.permute.xlu1 %1379 }
 0x19c   :  { %v1190_v45 = vpop.permute.xlu0 %1189 }
 0x19d   :  { %1971 = vrot.lane.b32.xlu1 %v4949_v54, %s3951_s1 }
 0x19e   :  { %1781 = vrot.lane.b32.xlu0 %v7948_v12, %s3950_s7 }
 0x19f   :  { %v1382_v37 = vpop.permute.xlu1 %1381 }
 0x1a0   :  { %v1954_v43 = vpop.permute.xlu0 %1953 }
 0x1a1   :  { %v2596_v60 = vsel %vm2590_vm10, %v2531_v20, %v1954_v43  ;;  %1399 = vrot.lane.b32.xlu1 %v4949_v54, %s3948_s24  ;;  %v5663_v54 = vld [vmem:[%s7561_s0 + $0xf0] sm:$0xff]  ;;  %v2144_v20 = vsel %vm2135_vm3, %v5322_v1, %v4816_v51 }
 0x1a2   :  { %1209 = vrot.lane.b32.xlu0 %v7948_v12, %s3947_s23  ;;  %3733 = vmatmul.mubr.msk.f32.gmra.mxu0 %vm2666_vm11, %v2596_v60  ;;  %v2209_v43 = vsel %vm2200_vm4, %v2144_v20, %v5285_v57  ;;  %v5738_v57 = vld [vmem:[%s7561_s0 + $0x110] sm:$0xff] }
 0x1a3   :  { %v1000_v2 = vpop.permute.xlu1 %999 }
 0x1a4   :  { %v1572_v15 = vpop.permute.xlu0 %1571 }
 0x1a5   :  { %1401 = vrot.lane.b32.xlu1 %v4942_v55, %s3948_s24 }
 0x1a6   :  { %1973 = vrot.lane.b32.xlu0 %v4942_v55, %s3951_s1  ;;  %v2272_v55 = vsel %vm2265_vm5, %v2207_v23, %v996_v7 }
 0x1a7   :  { %v1764_v3 = vpop.permute.xlu1 %1763  ;;  %v2337_v53 = vsel %vm2330_vm6, %v2272_v55, %v1188_v13 }
 0x1a8   :  { %v1574_v4 = vpop.permute.xlu0 %1573  ;;  %v2402_v10 = vsel %vm2395_vm7, %v2337_v53, %v1380_v39  ;;  %v2338_v39 = vsel %vm2330_vm6, %v2273_v58, %v1190_v45 }
 0x1a9   :  { %1019 = vrot.lane.b32.xlu1 %v5663_v54, %s3946_s20  ;;  %v2467_v61 = vsel %vm2460_vm8, %v2402_v10, %v1572_v15  ;;  %v2403_v44 = vsel %vm2395_vm7, %v2338_v39, %v1382_v37 }
 0x1aa   :  { %1591 = vrot.lane.b32.xlu0 %v5663_v54, %s3949_s29  ;;  %v2532_v7 = vsel %vm2525_vm9, %v2467_v61, %v1764_v3  ;;  %v2468_v41 = vsel %vm2460_vm8, %v2403_v44, %v1574_v4  ;;  %v7951_v3 = vld [vmem:[#allocation26_spill] sm:$0xff] }
 0x1ab   :  { %v1192_v47 = vpop.permute.xlu1 %1191 }
 0x1ac   :  { %v1002_v17 = vpop.permute.xlu0 %1001 }
 0x1ad   :  { %1783 = vrot.lane.b32.xlu1 %v7949_v52, %s3950_s7 }
 0x1ae   :  { %1593 = vrot.lane.b32.xlu0 %v5680_v8, %s3949_s29 }
 0x1af   :  { %v1956_v31 = vpop.permute.xlu1 %1955 }
 0x1b0   :  { %v2597_v13 = vsel %vm2590_vm10, %v2532_v7, %v1956_v31  ;;  %v1766_v29 = vpop.permute.xlu0 %1765 }
 0x1b1   :  { %1211 = vrot.lane.b32.xlu1 %v7949_v52, %s3947_s23  ;;  %3735 = vmatprep.mubr.msk.f32.mxu0 %vm2666_vm11, %v2597_v13  ;;  %v2533_v26 = vsel %vm2525_vm9, %v2468_v41, %v1766_v29  ;;  %v7952_v13 = vld [vmem:[#allocation25_spill] sm:$0xff]  ;;  %v7953_v41 = vld [vmem:[#allocation28_spill] sm:$0xff] }
 0x1b2   :  { %1021 = vrot.lane.b32.xlu0 %v5680_v8, %s3946_s20 }
 0x1b3   :  { %v1384_v14 = vpop.permute.xlu1 %1383 }
 0x1b4   :  { %v1194_v30 = vpop.permute.xlu0 %1193 }
 0x1b5   :  { %1975 = vrot.lane.b32.xlu1 %v4966_v62, %s3951_s1 }
 0x1b6   :  { %1785 = vrot.lane.b32.xlu0 %v7950_v49, %s3950_s7 }
 0x1b7   :  { %v1386_v19 = vpop.permute.xlu1 %1385 }
 0x1b8   :  { %v1958_v28 = vpop.permute.xlu0 %1957 }
 0x1b9   :  { %v2598_v12 = vsel %vm2590_vm10, %v2533_v26, %v1958_v28  ;;  %1403 = vrot.lane.b32.xlu1 %v4966_v62, %s3948_s24  ;;  %v5721_v62 = vld [vmem:[%s7561_s0 + $0x108] sm:$0xff] }
 0x1ba   :  { %1213 = vrot.lane.b32.xlu0 %v7950_v49, %s3947_s23  ;;  %3736 = vmatmul.mubr.msk.f32.gmra.mxu0 %vm2666_vm11, %v2598_v12 }
 0x1bb   :  { %v1004_v21 = vpop.permute.xlu1 %1003 }
 0x1bc   :  { %v1576_v45 = vpop.permute.xlu0 %1575 }
 0x1bd   :  { %1405 = vrot.lane.b32.xlu1 %v4959_v63, %s3948_s24 }
 0x1be   :  { %1977 = vrot.lane.b32.xlu0 %v4959_v63, %s3951_s1  ;;  %v2274_v63 = vsel %vm2265_vm5, %v2209_v43, %v1000_v2 }
 0x1bf   :  { %v1768_v25 = vpop.permute.xlu1 %1767  ;;  %v2339_v15 = vsel %vm2330_vm6, %v2274_v63, %v1192_v47  ;;  %v2145_v47 = vsel %vm2135_vm3, %v5337_v27, %v4810_v50 }
 0x1c0   :  { %v1578_v37 = vpop.permute.xlu0 %1577  ;;  %v2404_v1 = vsel %vm2395_vm7, %v2339_v15, %v1384_v14  ;;  %v2210_v53 = vsel %vm2200_vm4, %v2145_v47, %v5283_v33  ;;  %v7954_v15 = vld [vmem:[#allocation27_spill] sm:$0xff]  ;;  %v7956_v47 = vld [vmem:[#allocation10_spill] sm:$0xff] }
 0x1c1   :  { %1023 = vrot.lane.b32.xlu1 %v5721_v62, %s3946_s20  ;;  %v2469_v4 = vsel %vm2460_vm8, %v2404_v1, %v1576_v45  ;;  %v2275_v52 = vsel %vm2265_vm5, %v2210_v53, %v1002_v17  ;;  %v2147_v45 = vsel %vm2135_vm3, %v5395_v24, %v4827_v36 }
 0x1c2   :  { %1595 = vrot.lane.b32.xlu0 %v5721_v62, %s3949_s29  ;;  %v2534_v2 = vsel %vm2525_vm9, %v2469_v4, %v1768_v25  ;;  %v2340_v7 = vsel %vm2330_vm6, %v2275_v52, %v1194_v30  ;;  %v2146_v30 = vsel %vm2135_vm3, %v5380_v11, %v4833_v9  ;;  %v2212_v25 = vsel %vm2200_vm4, %v2147_v45, %v5291_v48 }
 0x1c3   :  { %v1196_v60 = vpop.permute.xlu1 %1195  ;;  %v2405_v31 = vsel %vm2395_vm7, %v2340_v7, %v1386_v19  ;;  %v2211_v39 = vsel %vm2200_vm4, %v2146_v30, %v5293_v56  ;;  %v5796_v56 = vld [vmem:[%s7561_s0 + $0x128] sm:$0xff] }
 0x1c4   :  { %v1006_v51 = vpop.permute.xlu0 %1005  ;;  %v2470_v50 = vsel %vm2460_vm8, %v2405_v31, %v1578_v37  ;;  %v7957_v7 = vld [vmem:[#allocation30_spill] sm:$0xff] }
 0x1c5   :  { %1787 = vrot.lane.b32.xlu1 %v7951_v3, %s3950_s7  ;;  %v2277_v20 = vsel %vm2265_vm5, %v2212_v25, %v1006_v51  ;;  %v7963_v25 = vld [vmem:[#allocation103_spill] sm:$0xff] }
 0x1c6   :  { %1597 = vrot.lane.b32.xlu0 %v5738_v57, %s3949_s29 }
 0x1c7   :  { %v1960_v32 = vpop.permute.xlu1 %1959 }
 0x1c8   :  { %v2599_v23 = vsel %vm2590_vm10, %v2534_v2, %v1960_v32  ;;  %v1770_v55 = vpop.permute.xlu0 %1769 }
 0x1c9   :  { %1215 = vrot.lane.b32.xlu1 %v7951_v3, %s3947_s23  ;;  %3738 = vmatprep.mubr.msk.f32.mxu0 %vm2666_vm11, %v2599_v23  ;;  %v2535_v29 = vsel %vm2525_vm9, %v2470_v50, %v1770_v55  ;;  %v7955_v23 = vld [vmem:[#allocation154_spill] sm:$0xff] }
 0x1ca   :  { %1025 = vrot.lane.b32.xlu0 %v5738_v57, %s3946_s20  ;;  %v2148_v55 = vsel %vm2135_vm3, %v7955_v23, %v4850_v0 }
 0x1cb   :  { %v1388_v10 = vpop.permute.xlu1 %1387  ;;  %v2213_v53 = vsel %vm2200_vm4, %v2148_v55, %v7956_v47 }
 0x1cc   :  { %v1198_v61 = vpop.permute.xlu0 %1197 }
 0x1cd   :  { %1979 = vrot.lane.b32.xlu1 %v4983_v16, %s3951_s1  ;;  %v2342_v63 = vsel %vm2330_vm6, %v2277_v20, %v1198_v61 }
 0x1ce   :  { %1789 = vrot.lane.b32.xlu0 %v7952_v13, %s3950_s7 }
 0x1cf   :  { %v1390_v27 = vpop.permute.xlu1 %1389 }
 0x1d0   :  { %v1962_v33 = vpop.permute.xlu0 %1961 }
 0x1d1   :  { %v2600_v59 = vsel %vm2590_vm10, %v2535_v29, %v1962_v33  ;;  %1407 = vrot.lane.b32.xlu1 %v4983_v16, %s3948_s24  ;;  %v5779_v16 = vld [vmem:[%s7561_s0 + $0x120] sm:$0xff] }
 0x1d2   :  { %1217 = vrot.lane.b32.xlu0 %v7952_v13, %s3947_s23  ;;  %3739 = vmatmul.mubr.msk.f32.gmra.mxu0 %vm2666_vm11, %v2600_v59  ;;  %v5854_v13 = vld [vmem:[%s7561_s0 + $0x140] sm:$0xff] }
 0x1d3   :  { %v1008_v17 = vpop.permute.xlu1 %1007  ;;  %v7958_v59 = vld [vmem:[#allocation84_spill] sm:$0xff] }
 0x1d4   :  { %v1580_v22 = vpop.permute.xlu0 %1579 }
 0x1d5   :  { %1409 = vrot.lane.b32.xlu1 %v4976_v18, %s3948_s24 }
 0x1d6   :  { %1981 = vrot.lane.b32.xlu0 %v4976_v18, %s3951_s1  ;;  %v2276_v18 = vsel %vm2265_vm5, %v2211_v39, %v1004_v21 }
 0x1d7   :  { %v1772_v14 = vpop.permute.xlu1 %1771  ;;  %v2341_v49 = vsel %vm2330_vm6, %v2276_v18, %v1196_v60  ;;  %v2407_v60 = vsel %vm2395_vm7, %v2342_v63, %v1390_v27 }
 0x1d8   :  { %v1582_v58 = vpop.permute.xlu0 %1581  ;;  %v2406_v11 = vsel %vm2395_vm7, %v2341_v49, %v1388_v10  ;;  %v7961_v49 = vld [vmem:[#allocation105_spill] sm:$0xff] }
 0x1d9   :  { %1027 = vrot.lane.b32.xlu1 %v5779_v16, %s3946_s20  ;;  %v2471_v19 = vsel %vm2460_vm8, %v2406_v11, %v1580_v22  ;;  %v2472_v36 = vsel %vm2460_vm8, %v2407_v60, %v1582_v58  ;;  %v5895_v60 = vld [vmem:[%s7561_s0 + $0x150] sm:$0xff] }
 0x1da   :  { %1599 = vrot.lane.b32.xlu0 %v5779_v16, %s3949_s29  ;;  %v2536_v26 = vsel %vm2525_vm9, %v2471_v19, %v1772_v14  ;;  %v7960_v14 = vld [vmem:[#allocation7_spill] sm:$0xff] }
 0x1db   :  { %v1200_v44 = vpop.permute.xlu1 %1199 }
 0x1dc   :  { %v1010_v9 = vpop.permute.xlu0 %1009 }
 0x1dd   :  { %1791 = vrot.lane.b32.xlu1 %v7953_v41, %s3950_s7 }
 0x1de   :  { %1601 = vrot.lane.b32.xlu0 %v5796_v56, %s3949_s29 }
 0x1df   :  { %v1964_v28 = vpop.permute.xlu1 %1963 }
 0x1e0   :  { %v2601_v12 = vsel %vm2590_vm10, %v2536_v26, %v1964_v28  ;;  %v1774_v21 = vpop.permute.xlu0 %1773 }
 0x1e1   :  { %1219 = vrot.lane.b32.xlu1 %v7953_v41, %s3947_s23  ;;  %3741 = vmatprep.mubr.msk.f32.mxu0 %vm2666_vm11, %v2601_v12  ;;  %v2537_v1 = vsel %vm2525_vm9, %v2472_v36, %v1774_v21  ;;  %v7962_v41 = vld [vmem:[#allocation29_spill] sm:$0xff] }
 0x1e2   :  { %1029 = vrot.lane.b32.xlu0 %v5796_v56, %s3946_s20 }
 0x1e3   :  { %v1392_v37 = vpop.permute.xlu1 %1391 }
 0x1e4   :  { %v1202_v43 = vpop.permute.xlu0 %1201 }
 0x1e5   :  { %1983 = vrot.lane.b32.xlu1 %v5000_v34, %s3951_s1 }
 0x1e6   :  { %1793 = vrot.lane.b32.xlu0 %v7954_v15, %s3950_s7 }
 0x1e7   :  { %v1394_v24 = vpop.permute.xlu1 %1393 }
 0x1e8   :  { %v1966_v48 = vpop.permute.xlu0 %1965 }
 0x1e9   :  { %v2602_v3 = vsel %vm2590_vm10, %v2537_v1, %v1966_v48  ;;  %1411 = vrot.lane.b32.xlu1 %v5000_v34, %s3948_s24  ;;  %v5837_v34 = vld [vmem:[%s7561_s0 + $0x138] sm:$0xff] }
 0x1ea   :  { %1221 = vrot.lane.b32.xlu0 %v7954_v15, %s3947_s23  ;;  %3742 = vmatmul.mubr.msk.f32.gmra.mxu0 %vm2666_vm11, %v2602_v3  ;;  %v7965_v15 = vld [vmem:[#allocation131_spill] sm:$0xff] }
 0x1eb   :  { %v1012_v51 = vpop.permute.xlu1 %1011 }
 0x1ec   :  { %v1584_v4 = vpop.permute.xlu0 %1583 }
 0x1ed   :  { %1413 = vrot.lane.b32.xlu1 %v4993_v35, %s3948_s24 }
 0x1ee   :  { %1985 = vrot.lane.b32.xlu0 %v4993_v35, %s3951_s1  ;;  %v2278_v35 = vsel %vm2265_vm5, %v2213_v53, %v1008_v17  ;;  %v7959_v17 = vld [vmem:[#allocation16_spill] sm:$0xff]  ;;  %v7967_v53 = vld [vmem:[#allocation85_spill] sm:$0xff] }
 0x1ef   :  { %v1776_v2 = vpop.permute.xlu1 %1775  ;;  %v2343_v52 = vsel %vm2330_vm6, %v2278_v35, %v1200_v44  ;;  %v2149_v22 = vsel %vm2135_vm3, %v7959_v17, %v7958_v59  ;;  %v2151_v35 = vsel %vm2135_vm3, %v5502_v5, %v7967_v53 }
 0x1f0   :  { %v1586_v32 = vpop.permute.xlu0 %1585  ;;  %v2408_v61 = vsel %vm2395_vm7, %v2343_v52, %v1392_v37  ;;  %v2214_v58 = vsel %vm2200_vm4, %v2149_v22, %v7960_v14 }
 0x1f1   :  { %1031 = vrot.lane.b32.xlu1 %v5837_v34, %s3946_s20  ;;  %v2473_v31 = vsel %vm2460_vm8, %v2408_v61, %v1584_v4  ;;  %v2279_v39 = vsel %vm2265_vm5, %v2214_v58, %v1010_v9  ;;  %v7966_v4 = vld [vmem:[#allocation32_spill] sm:$0xff] }
 0x1f2   :  { %1603 = vrot.lane.b32.xlu0 %v5837_v34, %s3949_s29  ;;  %v2538_v50 = vsel %vm2525_vm9, %v2473_v31, %v1776_v2  ;;  %v2344_v44 = vsel %vm2330_vm6, %v2279_v39, %v1202_v43  ;;  %v7964_v43 = vld [vmem:[#allocation86_spill] sm:$0xff] }
 0x1f3   :  { %v1204_v10 = vpop.permute.xlu1 %1203  ;;  %v2409_v11 = vsel %vm2395_vm7, %v2344_v44, %v1394_v24  ;;  %v2150_v63 = vsel %vm2135_vm3, %v5483_v40, %v7964_v43  ;;  %v7972_v44 = vld [vmem:[#allocation88_spill] sm:$0xff] }
 0x1f4   :  { %v1014_v0 = vpop.permute.xlu0 %1013  ;;  %v2474_v19 = vsel %vm2460_vm8, %v2409_v11, %v1586_v32  ;;  %v2215_v36 = vsel %vm2200_vm4, %v2150_v63, %v7965_v15  ;;  %v5912_v32 = vld [vmem:[%s7561_s0 + $0x158] sm:$0xff]  ;;  %v5955_v11 = vld [vmem:[%s7561_s0 + $0x168] sm:$0xff] }
 0x1f5   :  { %1795 = vrot.lane.b32.xlu1 %v7957_v7, %s3950_s7  ;;  %v2280_v24 = vsel %vm2265_vm5, %v2215_v36, %v1012_v51  ;;  %v7975_v15 = vld [vmem:[#allocation87_spill] sm:$0xff] }
 0x1f6   :  { %1605 = vrot.lane.b32.xlu0 %v5854_v13, %s3949_s29  ;;  %v2345_v48 = vsel %vm2330_vm6, %v2280_v24, %v1204_v10  ;;  %v7968_v10 = vld [vmem:[#allocation9_spill] sm:$0xff]  ;;  %v2153_v36 = vsel %vm2135_vm3, %v5563_v6, %v7975_v15  ;;  %v7976_v24 = vld [vmem:[#allocation132_spill] sm:$0xff]  ;;  %v7978_v6 = vld [vmem:[#allocation35_spill] sm:$0xff] }
 0x1f7   :  { %v1968_v27 = vpop.permute.xlu1 %1967  ;;  %v2216_v52 = vsel %vm2200_vm4, %v2151_v35, %v7968_v10 }
 0x1f8   :  { %v2603_v29 = vsel %vm2590_vm10, %v2538_v50, %v1968_v27  ;;  %v1778_v33 = vpop.permute.xlu0 %1777  ;;  %v7969_v27 = vld [vmem:[#allocation109_spill] sm:$0xff] }
 0x1f9   :  { %1223 = vrot.lane.b32.xlu1 %v7957_v7, %s3947_s23  ;;  %3744 = vmatprep.mubr.msk.f32.mxu0 %vm2666_vm11, %v2603_v29  ;;  %v2539_v28 = vsel %vm2525_vm9, %v2474_v19, %v1778_v33  ;;  %v2281_v7 = vsel %vm2265_vm5, %v2216_v52, %v1014_v0  ;;  %v7970_v33 = vld [vmem:[#allocation31_spill] sm:$0xff] }
 0x1fa   :  { %1033 = vrot.lane.b32.xlu0 %v5854_v13, %s3946_s20 }
 0x1fb   :  { %v1396_v30 = vpop.permute.xlu1 %1395 }
 0x1fc   :  { %v1206_v18 = vpop.permute.xlu0 %1205  ;;  %v2410_v3 = vsel %vm2395_vm7, %v2345_v48, %v1396_v30  ;;  %v7971_v30 = vld [vmem:[#allocation107_spill] sm:$0xff] }
 0x1fd   :  { %1987 = vrot.lane.b32.xlu1 %v7961_v49, %s3951_s1  ;;  %v2346_v50 = vsel %vm2330_vm6, %v2281_v7, %v1206_v18 }
 0x1fe   :  { %1797 = vrot.lane.b32.xlu0 %v7962_v41, %s3950_s7 }
 0x1ff   :  { %v1398_v26 = vpop.permute.xlu1 %1397 }
 0x200   :  { %v1970_v12 = vpop.permute.xlu0 %1969  ;;  %v2411_v29 = vsel %vm2395_vm7, %v2346_v50, %v1398_v26  ;;  %v6021_v50 = vld [vmem:[%s7561_s0 + $0x188] sm:$0xff] }
 0x201   :  { %v2604_v21 = vsel %vm2590_vm10, %v2539_v28, %v1970_v12  ;;  %1415 = vrot.lane.b32.xlu1 %v7961_v49, %s3948_s24  ;;  %v2152_v49 = vsel %vm2135_vm3, %v5545_v38, %v7972_v44 }
 0x202   :  { %1225 = vrot.lane.b32.xlu0 %v7962_v41, %s3947_s23  ;;  %3745 = vmatmul.mubr.msk.f32.gmra.mxu0 %vm2666_vm11, %v2604_v21  ;;  %v7973_v41 = vld [vmem:[#allocation133_spill] sm:$0xff] }
 0x203   :  { %v1016_v9 = vpop.permute.xlu1 %1015  ;;  %v2217_v19 = vsel %vm2200_vm4, %v2152_v49, %v7973_v41  ;;  %v7981_v41 = vld [vmem:[#allocation135_spill] sm:$0xff] }
 0x204   :  { %v1588_v45 = vpop.permute.xlu0 %1587  ;;  %v2282_v26 = vsel %vm2265_vm5, %v2217_v19, %v1016_v9 }
 0x205   :  { %1417 = vrot.lane.b32.xlu1 %v7963_v25, %s3948_s24  ;;  %v2475_v2 = vsel %vm2460_vm8, %v2410_v3, %v1588_v45  ;;  %v7974_v45 = vld [vmem:[#allocation36_spill] sm:$0xff] }
 0x206   :  { %1989 = vrot.lane.b32.xlu0 %v7963_v25, %s3951_s1 }
 0x207   :  { %v1780_v37 = vpop.permute.xlu1 %1779 }
 0x208   :  { %v1590_v20 = vpop.permute.xlu0 %1589  ;;  %v2540_v51 = vsel %vm2525_vm9, %v2475_v2, %v1780_v37  ;;  %v5974_v37 = vld [vmem:[%s7561_s0 + $0x170] sm:$0xff] }
 0x209   :  { %1035 = vrot.lane.b32.xlu1 %v5895_v60, %s3946_s20  ;;  %v2476_v5 = vsel %vm2460_vm8, %v2411_v29, %v1590_v20 }
 0x20a   :  { %1607 = vrot.lane.b32.xlu0 %v5895_v60, %s3949_s29 }
 0x20b   :  { %v1208_v1 = vpop.permute.xlu1 %1207 }
 0x20c   :  { %v1018_v40 = vpop.permute.xlu0 %1017  ;;  %v2347_v12 = vsel %vm2330_vm6, %v2282_v26, %v1208_v1  ;;  %v2218_v1 = vsel %vm2200_vm4, %v2153_v36, %v7976_v24 }
 0x20d   :  { %1799 = vrot.lane.b32.xlu1 %v7966_v4, %s3950_s7  ;;  %v2283_v3 = vsel %vm2265_vm5, %v2218_v1, %v1018_v40  ;;  %v6004_v40 = vld [vmem:[%s7563_s2] ss:$0 sm:$0xff] }
 0x20e   :  { %1609 = vrot.lane.b32.xlu0 %v5912_v32, %s3949_s29 }
 0x20f   :  { %v1972_v23 = vpop.permute.xlu1 %1971 }
 0x210   :  { %v2605_v55 = vsel %vm2590_vm10, %v2540_v51, %v1972_v23  ;;  %v1782_v47 = vpop.permute.xlu0 %1781  ;;  %v7977_v51 = vld [vmem:[#allocation112_spill] sm:$0xff] }
 0x211   :  { %1227 = vrot.lane.b32.xlu1 %v7966_v4, %s3947_s23  ;;  %3747 = vmatprep.mubr.msk.f32.mxu0 %vm2666_vm11, %v2605_v55  ;;  %v2541_v17 = vsel %vm2525_vm9, %v2476_v5, %v1782_v47 }
 0x212   :  { %1037 = vrot.lane.b32.xlu0 %v5912_v32, %s3946_s20 }
 0x213   :  { %v1400_v61 = vpop.permute.xlu1 %1399 }
 0x214   :  { %v1210_v31 = vpop.permute.xlu0 %1209  ;;  %v2412_v21 = vsel %vm2395_vm7, %v2347_v12, %v1400_v61 }
 0x215   :  { %1991 = vrot.lane.b32.xlu1 %v7969_v27, %s3951_s1  ;;  %v2348_v2 = vsel %vm2330_vm6, %v2283_v3, %v1210_v31  ;;  %v69_v31 = vld [vmem:[%s7561_s0 + $0x180] sm:$0xff] }
 0x216   :  { %1801 = vrot.lane.b32.xlu0 %v7970_v33, %s3950_s7 }
 0x217   :  { %v1402_v59 = vpop.permute.xlu1 %1401 }
 0x218   :  { %v1974_v22 = vpop.permute.xlu0 %1973  ;;  %v2413_v23 = vsel %vm2395_vm7, %v2348_v2, %v1402_v59  ;;  %v7979_v59 = vld [vmem:[#allocation111_spill] sm:$0xff] }
 0x219   :  { %v2606_v14 = vsel %vm2590_vm10, %v2541_v17, %v1974_v22  ;;  %1419 = vrot.lane.b32.xlu1 %v7969_v27, %s3948_s24  ;;  %v553_v17 = vrot.slane %v69_v31, 1  ;;  %v554_v22 = vrot.slane %v6021_v50, 1 }
 0x21a   :  { %1229 = vrot.lane.b32.xlu0 %v7970_v33, %s3947_s23  ;;  %3748 = vmatmul.mubr.msk.f32.gmra.mxu0 %vm2666_vm11, %v2606_v14 }
 0x21b   :  { %v5943_v0 = vpop.permute.xlu1 %1019  ;;  %v555_v12 = vsel %vm225_vm0, %v553_v17, %v554_v22 }
 0x21c   :  { %v1592_v58 = vpop.permute.xlu0 %1591 }
 0x21d   :  { %1421 = vrot.lane.b32.xlu1 %v7971_v30, %s3948_s24  ;;  %v2477_v25 = vsel %vm2460_vm8, %v2412_v21, %v1592_v58 }
 0x21e   :  { %1993 = vrot.lane.b32.xlu0 %v7971_v30, %s3951_s1 }
 0x21f   :  { %v1784_v39 = vpop.permute.xlu1 %1783 }
 0x220   :  { %v1594_v18 = vpop.permute.xlu0 %1593  ;;  %v2542_v9 = vsel %vm2525_vm9, %v2477_v25, %v1784_v39  ;;  %v7980_v39 = vld [vmem:[#allocation90_spill] sm:$0xff] }
 0x221   :  { %1039 = vrot.lane.b32.xlu1 %v5955_v11, %s3946_s20  ;;  %v2478_v55 = vsel %vm2460_vm8, %v2413_v23, %v1594_v18  ;;  %v2154_v18 = vsel %vm2135_vm3, %v5605_v46, %v7980_v39 }
 0x222   :  { %1611 = vrot.lane.b32.xlu0 %v5955_v11, %s3949_s29  ;;  %v2219_v19 = vsel %vm2200_vm4, %v2154_v18, %v7981_v41  ;;  %v7984_v41 = vld [vmem:[#allocation92_spill] sm:$0xff] }
 0x223   :  { %v1212_v28 = vpop.permute.xlu1 %1211  ;;  %v2284_v21 = vsel %vm2265_vm5, %v2219_v19, %v5943_v0  ;;  %v564_v0 = vrot.slane %v6021_v50, 2  ;;  %v2156_v19 = vsel %vm2135_vm3, %v5663_v54, %v7984_v41  ;;  %v7990_v41 = vld [vmem:[#allocation41_spill] sm:$0xff] }
 0x224   :  { %v5965_v38 = vpop.permute.xlu0 %1021  ;;  %v2349_v46 = vsel %vm2330_vm6, %v2284_v21, %v1212_v28  ;;  %v6110_v21 = vld [vmem:[%s7561_s0 + $0x1c8] sm:$0xff] }
 0x225   :  { %1803 = vrot.lane.b32.xlu1 %v7974_v45, %s3950_s7 }
 0x226   :  { %1613 = vrot.lane.b32.xlu0 %v5974_v37, %s3949_s29 }
 0x227   :  { %v1976_v20 = vpop.permute.xlu1 %1975 }
 0x228   :  { %v2607_v43 = vsel %vm2590_vm10, %v2542_v9, %v1976_v20  ;;  %v1786_v63 = vpop.permute.xlu0 %1785  ;;  %v71_v9 = vld [vmem:[%s7561_s0 + $0x190] sm:$0x3] }
 0x229   :  { %1231 = vrot.lane.b32.xlu1 %v7974_v45, %s3947_s23  ;;  %3750 = vmatprep.mubr.msk.f32.mxu0 %vm2666_vm11, %v2607_v43  ;;  %v2543_v53 = vsel %vm2525_vm9, %v2478_v55, %v1786_v63  ;;  %v563_v63 = vrot.slane %v69_v31, 2  ;;  %v556_v36 = vrot.slane %v71_v9, 1 }
 0x22a   :  { %1041 = vrot.lane.b32.xlu0 %v5974_v37, %s3946_s20 }
 0x22b   :  { %v1404_v48 = vpop.permute.xlu1 %1403  ;;  %v565_v2 = vsel %vm386_vm1, %v563_v63, %v564_v0  ;;  %v557_v55 = vsel %vm225_vm0, %v554_v22, %v556_v36 }
 0x22c   :  { %v5991_v4 = vpop.permute.xlu0 %1213  ;;  %v2414_v20 = vsel %vm2395_vm7, %v2349_v46, %v1404_v48  ;;  %v7982_v48 = vld [vmem:[#allocation89_spill] sm:$0xff]  ;;  %v7985_v46 = vld [vmem:[#allocation136_spill] sm:$0xff] }
 0x22d   :  { %1995 = vrot.lane.b32.xlu1 %v7977_v51, %s3951_s1  ;;  %v2155_v3 = vsel %vm2135_vm3, %v5622_v42, %v7982_v48 }
 0x22e   :  { %1805 = vrot.lane.b32.xlu0 %v7978_v6, %s3950_s7 }
 0x22f   :  { %v1406_v47 = vpop.permute.xlu1 %1405 }
 0x230   :  { %v1978_v35 = vpop.permute.xlu0 %1977 }
 0x231   :  { %v2608_v10 = vsel %vm2590_vm10, %v2543_v53, %v1978_v35  ;;  %1423 = vrot.lane.b32.xlu1 %v7977_v51, %s3948_s24  ;;  %v7983_v51 = vld [vmem:[#allocation134_spill] sm:$0xff] }
 0x232   :  { %v3728_v52 = vpop.f32.mrf.mxu0  ;;  %1233 = vrot.lane.b32.xlu0 %v7978_v6, %s3947_s23  ;;  %3751 = vmatmul.mubr.msk.f32.gmra.mxu0 %vm2666_vm11, %v2608_v10  ;;  %v2220_v23 = vsel %vm2200_vm4, %v2155_v3, %v7983_v51 }
 0x233   :  { %v2935_v61 = vadd.f32 %v3728_v52, %v6004_v40  ;;  %v6013_v7 = vpop.permute.xlu1 %1023  ;;  %v2285_v53 = vsel %vm2265_vm5, %v2220_v23, %v5965_v38  ;;  %v566_v52 = vrot.slane %v71_v9, 2  ;;  %v2221_v9 = vsel %vm2200_vm4, %v2156_v19, %v7985_v46 }
 0x234   :  { %v2929_v27 = vpop.f32.mrf.mxu0  ;;  %v1596_v29 = vpop.permute.xlu0 %1595  ;;  %v2350_v10 = vsel %vm2330_vm6, %v2285_v53, %v5991_v4  ;;  %v2286_v54 = vsel %vm2265_vm5, %v2221_v9, %v6013_v7 }
 0x235   :  { %v3249_v33 = vmax.f32 %v2935_v61, 0.0  ;;  %v2930_v5 = vadd.f32 %v6004_v40, %v2929_v27  ;;  %1425 = vrot.lane.b32.xlu1 %v7979_v59, %s3948_s24  ;;  %v2479_v43 = vsel %vm2460_vm8, %v2414_v20, %v1596_v29  ;;  %v2415_v42 = vsel %vm2395_vm7, %v2350_v10, %v1406_v47  ;;  %v6148_v10 = vld [vmem:[%s7561_s0 + $0x1d0] sm:$0xff] }
 0x236   :  { %1997 = vrot.lane.b32.xlu0 %v7979_v59, %s3951_s1  ;;  %v567_v4 = vsel %vm386_vm1, %v564_v0, %v566_v52  ;;  %v6097_v59 = vld [vmem:[%s7561_s0 + $0x1a0] sm:$0xff] }
 0x237   :  { %v3248_v14 = vmax.f32 %v2930_v5, 0.0  ;;  %v1788_v58 = vpop.permute.xlu1 %1787  ;;  %v3314_v44 = vsel %vm3312_vm12, %v3249_v33, 0.0  ;;  %v72_v5 = vld [vmem:[%s7561_s0 + $0x198] sm:$0xff]  ;;  %v590_v48 = vrot.slane %v6097_v59, 2 }
 0x238   :  { %v1598_v30 = vpop.permute.xlu0 %1597  ;;  %v2544_v28 = vsel %vm2525_vm9, %v2479_v43, %v1788_v58  ;;  %v579_v58 = vrot.slane %v72_v5, 1  ;;  %v7988_v52 = vld [vmem:[#allocation12_spill] sm:$0xff] }
 0x239   :  { %v3313_v49 = vsel %vm3312_vm12, %v3248_v14, 0.0  ;;  %1043 = vrot.lane.b32.xlu1 %v69_v31, %s3946_s20  ;;  %v2480_v61 = vsel %vm2460_vm8, %v2415_v42, %v1598_v30  ;;  %v580_v30 = vrot.slane %v6097_v59, 1 }
 0x23a   :  { %v6037_v26 = vadd.f32 %v3314_v44, %v3313_v49  ;;  %1615 = vrot.lane.b32.xlu0 %v69_v31, %s3949_s29 }
 0x23b   :  { %v6043_v45 = vpop.permute.xlu1 %1215  ;;  %v581_v43 = vsel %vm225_vm0, %v579_v58, %v580_v30  ;;  %v6172_v58 = vld [vmem:[%s7561_s0 + $0x1e0] sm:$0xff] }
 0x23c   :  { %v6046_v25 = vpop.permute.xlu0 %1025 }
 0x23d   :  { %1807 = vrot.lane.b32.xlu1 %v555_v12, %s3950_s7 }
 0x23e   :  { %1617 = vrot.lane.b32.xlu0 %v6021_v50, %s3949_s29 }
 0x23f   :  { %v1980_v15 = vpop.permute.xlu1 %1979 }
 0x240   :  { %v2609_v24 = vsel %vm2590_vm10, %v2544_v28, %v1980_v15  ;;  %v1790_v1 = vpop.permute.xlu0 %1789  ;;  %v2351_v28 = vsel %vm2330_vm6, %v2286_v54, %v6043_v45 }
 0x241   :  { %1235 = vrot.lane.b32.xlu1 %v555_v12, %s3947_s23  ;;  %3753 = vmatprep.mubr.msk.f32.mxu0 %vm2666_vm11, %v2609_v24 }
 0x242   :  { %1045 = vrot.lane.b32.xlu0 %v6021_v50, %s3946_s20  ;;  %v2545_v50 = vsel %vm2525_vm9, %v2480_v61, %v1790_v1  ;;  %v589_v1 = vrot.slane %v72_v5, 2 }
 0x243   :  { %v1408_v6 = vpop.permute.xlu1 %1407 }
 0x244   :  { %v6072_v35 = vpop.permute.xlu0 %1217  ;;  %v2416_v24 = vsel %vm2395_vm7, %v2351_v28, %v1408_v6  ;;  %v7987_v6 = vld [vmem:[#allocation91_spill] sm:$0xff]  ;;  %v591_v42 = vsel %vm386_vm1, %v589_v1, %v590_v48  ;;  %v7993_v28 = vld [vmem:[#allocation138_spill] sm:$0xff] }
 0x245   :  { %1999 = vrot.lane.b32.xlu1 %v565_v2, %s3951_s1  ;;  %v2157_v53 = vsel %vm2135_vm3, %v5680_v8, %v7987_v6 }
 0x246   :  { %1809 = vrot.lane.b32.xlu0 %v557_v55, %s3950_s7  ;;  %v2222_v61 = vsel %vm2200_vm4, %v2157_v53, %v7988_v52 }
 0x247   :  { %v6080_v31 = vpop.permute.xlu1 %1409 }
 0x248   :  { %v1982_v27 = vpop.permute.xlu0 %1981 }
 0x249   :  { %v2610_v38 = vsel %vm2590_vm10, %v2545_v50, %v1982_v27  ;;  %1427 = vrot.lane.b32.xlu1 %v565_v2, %s3948_s24 }
 0x24a   :  { %v3731_v29 = vpop.f32.mrf.mxu0  ;;  %1237 = vrot.lane.b32.xlu0 %v557_v55, %s3947_s23  ;;  %3754 = vmatmul.mubr.msk.f32.gmra.mxu0 %vm2666_vm11, %v2610_v38  ;;  %v7986_v55 = vld [vmem:[#allocation44_spill] sm:$0xff]  ;;  %v2287_v38 = vsel %vm2265_vm5, %v2222_v61, %v6046_v25 }
 0x24b   :  { %v2945_v47 = vadd.f32 %v3731_v29, %v6004_v40  ;;  %v6089_v33 = vpop.permute.xlu1 %1027  ;;  %v2352_v29 = vsel %vm2330_vm6, %v2287_v38, %v6072_v35  ;;  %v7997_v61 = vld [vmem:[#allocation48_spill] sm:$0xff] }
 0x24c   :  { %v2939_v17 = vpop.f32.mrf.mxu0  ;;  %v1600_v22 = vpop.permute.xlu0 %1599 }
 0x24d   :  { %v2940_v14 = vadd.f32 %v6004_v40, %v2939_v17  ;;  %1429 = vrot.lane.b32.xlu1 %v567_v4, %s3948_s24  ;;  %v3251_v39 = vmax.f32 %v2945_v47, 0.0  ;;  %v2481_v7 = vsel %vm2460_vm8, %v2416_v24, %v1600_v22 }
 0x24e   :  { %2001 = vrot.lane.b32.xlu0 %v567_v4, %s3951_s1  ;;  %v2417_v4 = vsel %vm2395_vm7, %v2352_v29, %v6080_v31 }
 0x24f   :  { %v3250_v18 = vmax.f32 %v2940_v14, 0.0  ;;  %v1792_v44 = vpop.permute.xlu1 %1791  ;;  %v3318_v63 = vsel %vm3312_vm12, %v3251_v39, 0.0  ;;  %v7989_v14 = vld [vmem:[#allocation43_spill] sm:$0xff] }
 0x250   :  { %v1602_v49 = vpop.permute.xlu0 %1601  ;;  %v2546_v45 = vsel %vm2525_vm9, %v2481_v7, %v1792_v44  ;;  %v6196_v7 = vld [vmem:[%s7561_s0 + $0x1e8] sm:$0xff] }
 0x251   :  { %v3316_v12 = vsel %vm3312_vm12, %v3250_v18, 0.0  ;;  %1047 = vrot.lane.b32.xlu1 %v6110_v21, %s3946_s20 }
 0x252   :  { %v3317_v20 = vadd.f32 %v3316_v12, %v6037_v26  ;;  %1619 = vrot.lane.b32.xlu0 %v72_v5, %s3949_s29  ;;  %v74_v26 = vld [vmem:[%s7561_s0 + $0x1a8] sm:$0x3]  ;;  %v2482_v5 = vsel %vm2460_vm8, %v2417_v4, %v1602_v49 }
 0x253   :  { %v6122_v0 = vpop.permute.xlu1 %1219  ;;  %v582_v2 = vrot.slane %v74_v26, 1  ;;  %v592_v47 = vrot.slane %v74_v26, 2 }
 0x254   :  { %v6126_v15 = vpop.permute.xlu0 %1029  ;;  %v3319_v36 = vadd.f32 %v3318_v63, %v3317_v20  ;;  %v7991_v20 = vld [vmem:[#allocation94_spill] sm:$0xff]  ;;  %v7992_v63 = vld [vmem:[#allocation49_spill] sm:$0xff] }
 0x255   :  { %1811 = vrot.lane.b32.xlu1 %v581_v43, %s3950_s7  ;;  %v583_v27 = vsel %vm225_vm0, %v580_v30, %v582_v2  ;;  %v593_v31 = vsel %vm386_vm1, %v590_v48, %v592_v47  ;;  %v2158_v43 = vsel %vm2135_vm3, %v5721_v62, %v7991_v20 }
 0x256   :  { %1621 = vrot.lane.b32.xlu0 %v6097_v59, %s3949_s29  ;;  %v2223_v26 = vsel %vm2200_vm4, %v2158_v43, %v7993_v28  ;;  %v6261_v43 = vld [vmem:[%s7561_s0 + $0x200] sm:$0xff] }
 0x257   :  { %v1984_v3 = vpop.permute.xlu1 %1983  ;;  %v2288_v62 = vsel %vm2265_vm5, %v2223_v26, %v6089_v33 }
 0x258   :  { %v2611_v51 = vsel %vm2590_vm10, %v2546_v45, %v1984_v3  ;;  %v1794_v23 = vpop.permute.xlu0 %1793  ;;  %v2353_v45 = vsel %vm2330_vm6, %v2288_v62, %v6122_v0  ;;  %v7995_v0 = vld [vmem:[#allocation46_spill] sm:$0xff] }
 0x259   :  { %1239 = vrot.lane.b32.xlu1 %v7986_v55, %s3947_s23  ;;  %3756 = vmatprep.mubr.msk.f32.mxu0 %vm2666_vm11, %v2611_v51  ;;  %v2547_v17 = vsel %vm2525_vm9, %v2482_v5, %v1794_v23  ;;  %v7994_v23 = vld [vmem:[#allocation39_spill] sm:$0xff] }
 0x25a   :  { %1049 = vrot.lane.b32.xlu0 %v6148_v10, %s3946_s20 }
 0x25b   :  { %v1412_v50 = vpop.permute.xlu1 %1411 }
 0x25c   :  { %v1222_v8 = vpop.permute.xlu0 %1221  ;;  %v2418_v2 = vsel %vm2395_vm7, %v2353_v45, %v1412_v50  ;;  %v7998_v50 = vld [vmem:[#allocation137_spill] sm:$0xff] }
 0x25d   :  { %2003 = vrot.lane.b32.xlu1 %v591_v42, %s3951_s1  ;;  %v7996_v42 = vld [vmem:[#allocation93_spill] sm:$0xff] }
 0x25e   :  { %1813 = vrot.lane.b32.xlu0 %v583_v27, %s3950_s7  ;;  %v2159_v52 = vsel %vm2135_vm3, %v5738_v57, %v7996_v42 }
 0x25f   :  { %v1414_v59 = vpop.permute.xlu1 %1413  ;;  %v2224_v27 = vsel %vm2200_vm4, %v2159_v52, %v7998_v50 }
 0x260   :  { %v1986_v22 = vpop.permute.xlu0 %1985  ;;  %v2289_v29 = vsel %vm2265_vm5, %v2224_v27, %v6126_v15  ;;  %v6239_v15 = vld [vmem:[%s7561_s0 + $0x1f8] sm:$0xff] }
 0x261   :  { %v2612_v25 = vsel %vm2590_vm10, %v2547_v17, %v1986_v22  ;;  %1241 = vrot.lane.b32.xlu1 %v7989_v14, %s3947_s23  ;;  %v2354_v47 = vsel %vm2330_vm6, %v2289_v29, %v1222_v8  ;;  %v8005_v27 = vld [vmem:[#allocation51_spill] sm:$0xff] }
 0x262   :  { %v3734_v35 = vpop.f32.mrf.mxu0  ;;  %1051 = vrot.lane.b32.xlu0 %v6172_v58, %s3946_s20  ;;  %3757 = vmatmul.mubr.msk.f32.gmra.mxu0 %vm2666_vm11, %v2612_v25  ;;  %v2419_v5 = vsel %vm2395_vm7, %v2354_v47, %v1414_v59  ;;  %v7999_v59 = vld [vmem:[#allocation113_spill] sm:$0xff] }
 0x263   :  { %v2955_v30 = vadd.f32 %v3734_v35, %v6004_v40  ;;  %v6179_v39 = vpop.permute.xlu1 %1031 }
 0x264   :  { %v2949_v18 = vpop.f32.mrf.mxu0  ;;  %v1604_v44 = vpop.permute.xlu0 %1603 }
 0x265   :  { %v2950_v49 = vadd.f32 %v6004_v40, %v2949_v18  ;;  %2005 = vrot.lane.b32.xlu1 %v593_v31, %s3951_s1  ;;  %v3253_v19 = vmax.f32 %v2955_v30, 0.0  ;;  %v2483_v51 = vsel %vm2460_vm8, %v2418_v2, %v1604_v44 }
 0x266   :  { %1431 = vrot.lane.b32.xlu0 %v7990_v41, %s3948_s24 }
 0x267   :  { %v3252_v12 = vmax.f32 %v2950_v49, 0.0  ;;  %v1796_v46 = vpop.permute.xlu1 %1795  ;;  %v3322_v1 = vsel %vm3312_vm12, %v3253_v19, 0.0 }
 0x268   :  { %v1606_v9 = vpop.permute.xlu0 %1605  ;;  %v2548_v33 = vsel %vm2525_vm9, %v2483_v51, %v1796_v46  ;;  %v8000_v46 = vld [vmem:[#allocation96_spill] sm:$0xff]  ;;  %v8002_v51 = vld [vmem:[#allocation54_spill] sm:$0xff] }
 0x269   :  { %v3320_v54 = vsel %vm3312_vm12, %v3252_v12, 0.0  ;;  %1243 = vrot.lane.b32.xlu1 %v7992_v63, %s3947_s23  ;;  %v2484_v57 = vsel %vm2460_vm8, %v2419_v5, %v1606_v9  ;;  %v2160_v9 = vsel %vm2135_vm3, %v5779_v16, %v8000_v46  ;;  %v8009_v46 = vld [vmem:[#allocation141_spill] sm:$0xff] }
 0x26a   :  { %v3321_v24 = vadd.f32 %v3320_v54, %v3319_v36  ;;  %1053 = vrot.lane.b32.xlu0 %v6196_v7, %s3946_s20  ;;  %v8001_v54 = vld [vmem:[#allocation139_spill] sm:$0xff] }
 0x26b   :  { %v1224_v48 = vpop.permute.xlu1 %1223 }
 0x26c   :  { %v6205_v3 = vpop.permute.xlu0 %1033  ;;  %v3323_v36 = vadd.f32 %v3322_v1, %v3321_v24 }
 0x26d   :  { %1623 = vrot.lane.b32.xlu1 %v6172_v58, %s3949_s29 }
 0x26e   :  { %1433 = vrot.lane.b32.xlu0 %v7994_v23, %s3948_s24 }
 0x26f   :  { %v1988_v55 = vpop.permute.xlu1 %1987 }
 0x270   :  { %v2613_v6 = vsel %vm2590_vm10, %v2548_v33, %v1988_v55  ;;  %v1798_v53 = vpop.permute.xlu0 %1797 }
 0x271   :  { %1435 = vrot.lane.b32.xlu1 %v7995_v0, %s3948_s24  ;;  %3759 = vmatprep.mubr.msk.f32.mxu0 %vm2666_vm11, %v2613_v6  ;;  %v2549_v22 = vsel %vm2525_vm9, %v2484_v57, %v1798_v53  ;;  %v8004_v53 = vld [vmem:[#allocation11_spill] sm:$0xff] }
 0x272   :  { %1245 = vrot.lane.b32.xlu0 %v7997_v61, %s3947_s23 }
 0x273   :  { %v1416_v38 = vpop.permute.xlu1 %1415 }
 0x274   :  { %v1226_v4 = vpop.permute.xlu0 %1225 }
 0x275   :  { %1815 = vrot.lane.b32.xlu1 %v7992_v63, %s3950_s7  ;;  %v2225_v63 = vsel %vm2200_vm4, %v2160_v9, %v8001_v54 }
 0x276   :  { %1625 = vrot.lane.b32.xlu0 %v6196_v7, %s3949_s29  ;;  %v2290_v16 = vsel %vm2265_vm5, %v2225_v63, %v6179_v39 }
 0x277   :  { %v1418_v17 = vpop.permute.xlu1 %1417  ;;  %v2355_v62 = vsel %vm2330_vm6, %v2290_v16, %v1224_v48  ;;  %v8003_v48 = vld [vmem:[#allocation95_spill] sm:$0xff] }
 0x278   :  { %v1990_v25 = vpop.permute.xlu0 %1989  ;;  %v2420_v2 = vsel %vm2395_vm7, %v2355_v62, %v1416_v38  ;;  %v2161_v6 = vsel %vm2135_vm3, %v5796_v56, %v8003_v48  ;;  %v8006_v56 = vld [vmem:[#allocation53_spill] sm:$0xff] }
 0x279   :  { %v2614_v14 = vsel %vm2590_vm10, %v2549_v22, %v1990_v25  ;;  %1627 = vrot.lane.b32.xlu1 %v6239_v15, %s3949_s29 }
 0x27a   :  { %v3737_v8 = vpop.f32.mrf.mxu0  ;;  %1437 = vrot.lane.b32.xlu0 %v7999_v59, %s3948_s24  ;;  %3760 = vmatmul.mubr.msk.f32.gmra.mxu0 %vm2666_vm11, %v2614_v14 }
 0x27b   :  { %v2965_v35 = vadd.f32 %v3737_v8, %v6004_v40  ;;  %v6247_v31 = vpop.permute.xlu1 %1035 }
 0x27c   :  { %v2959_v30 = vpop.f32.mrf.mxu0  ;;  %v1608_v18 = vpop.permute.xlu0 %1607 }
 0x27d   :  { %v2960_v44 = vadd.f32 %v6004_v40, %v2959_v30  ;;  %2007 = vrot.lane.b32.xlu1 %v7995_v0, %s3951_s1  ;;  %v3255_v49 = vmax.f32 %v2965_v35, 0.0  ;;  %v2226_v0 = vsel %vm2200_vm4, %v2161_v6, %v8004_v53 }
 0x27e   :  { %1817 = vrot.lane.b32.xlu0 %v7997_v61, %s3950_s7  ;;  %v2291_v52 = vsel %vm2265_vm5, %v2226_v0, %v6205_v3 }
 0x27f   :  { %v3254_v41 = vmax.f32 %v2960_v44, 0.0  ;;  %v1800_v19 = vpop.permute.xlu1 %1799  ;;  %v3326_v26 = vsel %vm3312_vm12, %v3255_v49, 0.0  ;;  %v2356_v50 = vsel %vm2330_vm6, %v2291_v52, %v1226_v4  ;;  %v8008_v49 = vld [vmem:[#allocation98_spill] sm:$0xff]  ;;  %v8013_v52 = vld [vmem:[#allocation56_spill] sm:$0xff] }
 0x280   :  { %v1610_v12 = vpop.permute.xlu0 %1609  ;;  %v2421_v38 = vsel %vm2395_vm7, %v2356_v50, %v1418_v17 }
 0x281   :  { %v3324_v20 = vsel %vm3312_vm12, %v3254_v41, 0.0  ;;  %1629 = vrot.lane.b32.xlu1 %v6261_v43, %s3949_s29  ;;  %v2486_v29 = vsel %vm2460_vm8, %v2421_v38, %v1610_v12  ;;  %v2162_v41 = vsel %vm2135_vm3, %v5837_v34, %v8008_v49  ;;  %v6324_v12 = vld [vmem:[%s7561_s0 + $0x210] sm:$0xff] }
 0x282   :  { %v3325_v28 = vadd.f32 %v3324_v20, %v3323_v36  ;;  %1055 = vrot.lane.b32.xlu0 %v6239_v15, %s3946_s20  ;;  %v2485_v36 = vsel %vm2460_vm8, %v2420_v2, %v1608_v18  ;;  %v2227_v9 = vsel %vm2200_vm4, %v2162_v41, %v8009_v46  ;;  %v8010_v2 = vld [vmem:[#allocation59_spill] sm:$0xff] }
 0x283   :  { %v1228_v24 = vpop.permute.xlu1 %1227  ;;  %v2550_v39 = vsel %vm2525_vm9, %v2485_v36, %v1800_v19  ;;  %v2292_v34 = vsel %vm2265_vm5, %v2227_v9, %v6247_v31  ;;  %v6345_v36 = vld [vmem:[%s7561_s0 + $0x218] sm:$0xff] }
 0x284   :  { %v6273_v1 = vpop.permute.xlu0 %1037  ;;  %v3327_v45 = vadd.f32 %v3326_v26, %v3325_v28  ;;  %v2357_v28 = vsel %vm2330_vm6, %v2292_v34, %v1228_v24  ;;  %v8017_v49 = vld [vmem:[#allocation143_spill] sm:$0xff] }
 0x285   :  { %2009 = vrot.lane.b32.xlu1 %v7999_v59, %s3951_s1  ;;  %v8007_v59 = vld [vmem:[#allocation114_spill] sm:$0xff] }
 0x286   :  { %1819 = vrot.lane.b32.xlu0 %v8002_v51, %s3950_s7 }
 0x287   :  { %v1992_v23 = vpop.permute.xlu1 %1991 }
 0x288   :  { %v2615_v33 = vsel %vm2590_vm10, %v2550_v39, %v1992_v23  ;;  %v1802_v55 = vpop.permute.xlu0 %1801  ;;  %v8011_v23 = vld [vmem:[#allocation97_spill] sm:$0xff] }
 0x289   :  { %1247 = vrot.lane.b32.xlu1 %v8002_v51, %s3947_s23  ;;  %3762 = vmatprep.mubr.msk.f32.mxu0 %vm2666_vm11, %v2615_v33  ;;  %v2551_v5 = vsel %vm2525_vm9, %v2486_v29, %v1802_v55  ;;  %v2163_v33 = vsel %vm2135_vm3, %v5854_v13, %v8011_v23  ;;  %v8012_v55 = vld [vmem:[#allocation140_spill] sm:$0xff]  ;;  %v8014_v13 = vld [vmem:[#allocation58_spill] sm:$0xff] }
 0x28a   :  { %1057 = vrot.lane.b32.xlu0 %v6261_v43, %s3946_s20  ;;  %v2228_v48 = vsel %vm2200_vm4, %v2163_v33, %v8012_v55 }
 0x28b   :  { %v1420_v42 = vpop.permute.xlu1 %1419  ;;  %v2293_v53 = vsel %vm2265_vm5, %v2228_v48, %v6273_v1 }
 0x28c   :  { %v1230_v61 = vpop.permute.xlu0 %1229  ;;  %v2422_v62 = vsel %vm2395_vm7, %v2357_v28, %v1420_v42 }
 0x28d   :  { %2011 = vrot.lane.b32.xlu1 %v8005_v27, %s3951_s1  ;;  %v2358_v42 = vsel %vm2330_vm6, %v2293_v53, %v1230_v61  ;;  %v8021_v53 = vld [vmem:[#allocation118_spill] sm:$0xff] }
 0x28e   :  { %1821 = vrot.lane.b32.xlu0 %v8006_v56, %s3950_s7 }
 0x28f   :  { %v1422_v47 = vpop.permute.xlu1 %1421 }
 0x290   :  { %v1994_v57 = vpop.permute.xlu0 %1993  ;;  %v2423_v50 = vsel %vm2395_vm7, %v2358_v42, %v1422_v47 }
 0x291   :  { %v2616_v22 = vsel %vm2590_vm10, %v2551_v5, %v1994_v57  ;;  %1439 = vrot.lane.b32.xlu1 %v8005_v27, %s3948_s24 }
 0x292   :  { %v3740_v3 = vpop.f32.mrf.mxu0  ;;  %1249 = vrot.lane.b32.xlu0 %v8006_v56, %s3947_s23  ;;  %3763 = vmatmul.mubr.msk.f32.gmra.mxu0 %vm2666_vm11, %v2616_v22 }
 0x293   :  { %v2975_v4 = vadd.f32 %v3740_v3, %v6004_v40  ;;  %v6310_v17 = vpop.permute.xlu1 %1039 }
 0x294   :  { %v2969_v25 = vpop.f32.mrf.mxu0  ;;  %v1612_v14 = vpop.permute.xlu0 %1611 }
 0x295   :  { %v2970_v8 = vadd.f32 %v6004_v40, %v2969_v25  ;;  %1441 = vrot.lane.b32.xlu1 %v8007_v59, %s3948_s24  ;;  %v3257_v35 = vmax.f32 %v2975_v4, 0.0  ;;  %v8015_v4 = vld [vmem:[#allocation115_spill] sm:$0xff] }
 0x296   :  { %2013 = vrot.lane.b32.xlu0 %v8007_v59, %s3951_s1 }
 0x297   :  { %v3256_v30 = vmax.f32 %v2970_v8, 0.0  ;;  %v1804_v18 = vpop.permute.xlu1 %1803  ;;  %v3330_v54 = vsel %vm3312_vm12, %v3257_v35, 0.0  ;;  %v8016_v35 = vld [vmem:[#allocation100_spill] sm:$0xff] }
 0x298   :  { %v1614_v44 = vpop.permute.xlu0 %1613 }
 0x299   :  { %v3328_v19 = vsel %vm3312_vm12, %v3256_v30, 0.0  ;;  %1059 = vrot.lane.b32.xlu1 %v6324_v12, %s3946_s20  ;;  %v2488_v27 = vsel %vm2460_vm8, %v2423_v50, %v1614_v44  ;;  %v2164_v30 = vsel %vm2135_vm3, %v5895_v60, %v8016_v35  ;;  %v6392_v44 = vld [vmem:[%s7561_s0 + $0x228] sm:$0xff] }
 0x29a   :  { %v3329_v20 = vadd.f32 %v3328_v19, %v3327_v45  ;;  %1631 = vrot.lane.b32.xlu0 %v6324_v12, %s3949_s29  ;;  %v2487_v45 = vsel %vm2460_vm8, %v2422_v62, %v1612_v14  ;;  %v2229_v41 = vsel %vm2200_vm4, %v2164_v30, %v8017_v49  ;;  %v8018_v62 = vld [vmem:[#allocation61_spill] sm:$0xff] }
 0x29b   :  { %v1232_v63 = vpop.permute.xlu1 %1231  ;;  %v2552_v31 = vsel %vm2525_vm9, %v2487_v45, %v1804_v18  ;;  %v2294_v60 = vsel %vm2265_vm5, %v2229_v41, %v6310_v17  ;;  %v8025_v35 = vld [vmem:[#allocation145_spill] sm:$0xff] }
 0x29c   :  { %v6336_v16 = vpop.permute.xlu0 %1041  ;;  %v3331_v26 = vadd.f32 %v3330_v54, %v3329_v20  ;;  %v2359_v20 = vsel %vm2330_vm6, %v2294_v60, %v1232_v63 }
 0x29d   :  { %1823 = vrot.lane.b32.xlu1 %v8010_v2, %s3950_s7 }
 0x29e   :  { %1633 = vrot.lane.b32.xlu0 %v6345_v36, %s3949_s29 }
 0x29f   :  { %v1996_v24 = vpop.permute.xlu1 %1995 }
 0x2a0   :  { %v2617_v51 = vsel %vm2590_vm10, %v2552_v31, %v1996_v24  ;;  %v1806_v39 = vpop.permute.xlu0 %1805  ;;  %v8019_v24 = vld [vmem:[#allocation99_spill] sm:$0xff] }
 0x2a1   :  { %1251 = vrot.lane.b32.xlu1 %v8010_v2, %s3947_s23  ;;  %3765 = vmatprep.mubr.msk.f32.mxu0 %vm2666_vm11, %v2617_v51  ;;  %v2553_v56 = vsel %vm2525_vm9, %v2488_v27, %v1806_v39  ;;  %v6413_v2 = vld [vmem:[%s7561_s0 + $0x230] sm:$0xff]  ;;  %v2165_v51 = vsel %vm2135_vm3, %v5912_v32, %v8019_v24  ;;  %v8022_v32 = vld [vmem:[#allocation60_spill] sm:$0xff] }
 0x2a2   :  { %1061 = vrot.lane.b32.xlu0 %v6345_v36, %s3946_s20  ;;  %v8020_v39 = vld [vmem:[#allocation142_spill] sm:$0xff] }
 0x2a3   :  { %v1424_v6 = vpop.permute.xlu1 %1423  ;;  %v2230_v23 = vsel %vm2200_vm4, %v2165_v51, %v8020_v39  ;;  %v8028_v51 = vld [vmem:[#allocation144_spill] sm:$0xff] }
 0x2a4   :  { %v1234_v0 = vpop.permute.xlu0 %1233  ;;  %v2424_v28 = vsel %vm2395_vm7, %v2359_v20, %v1424_v6  ;;  %v2295_v55 = vsel %vm2265_vm5, %v2230_v23, %v6336_v16 }
 0x2a5   :  { %2015 = vrot.lane.b32.xlu1 %v8013_v52, %s3951_s1  ;;  %v2360_v6 = vsel %vm2330_vm6, %v2295_v55, %v1234_v0 }
 0x2a6   :  { %1825 = vrot.lane.b32.xlu0 %v8014_v13, %s3950_s7 }
 0x2a7   :  { %v1426_v38 = vpop.permute.xlu1 %1425 }
 0x2a8   :  { %v1998_v29 = vpop.permute.xlu0 %1997  ;;  %v2425_v42 = vsel %vm2395_vm7, %v2360_v6, %v1426_v38 }
 0x2a9   :  { %v2618_v5 = vsel %vm2590_vm10, %v2553_v56, %v1998_v29  ;;  %1443 = vrot.lane.b32.xlu1 %v8013_v52, %s3948_s24 }
 0x2aa   :  { %v3743_v1 = vpop.f32.mrf.mxu0  ;;  %1253 = vrot.lane.b32.xlu0 %v8014_v13, %s3947_s23  ;;  %3766 = vmatmul.mubr.msk.f32.gmra.mxu0 %vm2666_vm11, %v2618_v5 }
 0x2ab   :  { %v2985_v61 = vadd.f32 %v3743_v1, %v6004_v40  ;;  %v6378_v47 = vpop.permute.xlu1 %1043 }
 0x2ac   :  { %v2979_v57 = vpop.f32.mrf.mxu0  ;;  %v1616_v22 = vpop.permute.xlu0 %1615 }
 0x2ad   :  { %v2980_v3 = vadd.f32 %v6004_v40, %v2979_v57  ;;  %1445 = vrot.lane.b32.xlu1 %v8015_v4, %s3948_s24  ;;  %v3259_v25 = vmax.f32 %v2985_v61, 0.0  ;;  %v8023_v61 = vld [vmem:[#allocation116_spill] sm:$0xff] }
 0x2ae   :  { %2017 = vrot.lane.b32.xlu0 %v8015_v4, %s3951_s1 }
 0x2af   :  { %v3258_v14 = vmax.f32 %v2980_v3, 0.0  ;;  %v1808_v8 = vpop.permute.xlu1 %1807  ;;  %v3334_v46 = vsel %vm3312_vm12, %v3259_v25, 0.0  ;;  %v8024_v25 = vld [vmem:[#allocation102_spill] sm:$0xff] }
 0x2b0   :  { %v1618_v59 = vpop.permute.xlu0 %1617 }
 0x2b1   :  { %v3332_v18 = vsel %vm3312_vm12, %v3258_v14, 0.0  ;;  %1063 = vrot.lane.b32.xlu1 %v6392_v44, %s3946_s20  ;;  %v2490_v52 = vsel %vm2460_vm8, %v2425_v42, %v1618_v59  ;;  %v2166_v14 = vsel %vm2135_vm3, %v5955_v11, %v8024_v25  ;;  %v6460_v59 = vld [vmem:[%s7561_s0 + $0x240] sm:$0xff] }
 0x2b2   :  { %v3333_v19 = vadd.f32 %v3332_v18, %v3331_v26  ;;  %1635 = vrot.lane.b32.xlu0 %v6392_v44, %s3949_s29  ;;  %v2489_v26 = vsel %vm2460_vm8, %v2424_v28, %v1616_v22  ;;  %v2231_v30 = vsel %vm2200_vm4, %v2166_v14, %v8025_v35  ;;  %v8026_v28 = vld [vmem:[#allocation63_spill] sm:$0xff] }
 0x2b3   :  { %v1236_v9 = vpop.permute.xlu1 %1235  ;;  %v2554_v17 = vsel %vm2525_vm9, %v2489_v26, %v1808_v8  ;;  %v2296_v11 = vsel %vm2265_vm5, %v2231_v30, %v6378_v47  ;;  %v6483_v47 = vld [vmem:[%s7561_s0 + $0x248] sm:$0xff]  ;;  %v6536_v14 = vld [vmem:[%s7561_s0 + $0x258] sm:$0xff] }
 0x2b4   :  { %v6404_v34 = vpop.permute.xlu0 %1045  ;;  %v3335_v54 = vadd.f32 %v3334_v46, %v3333_v19  ;;  %v2361_v19 = vsel %vm2330_vm6, %v2296_v11, %v1236_v9  ;;  %v497_v9 = vrot.slane %v6460_v59, 2 }
 0x2b5   :  { %1827 = vrot.lane.b32.xlu1 %v8018_v62, %s3950_s7 }
 0x2b6   :  { %1637 = vrot.lane.b32.xlu0 %v6413_v2, %s3949_s29 }
 0x2b7   :  { %v2000_v63 = vpop.permute.xlu1 %1999 }
 0x2b8   :  { %v2619_v45 = vsel %vm2590_vm10, %v2554_v17, %v2000_v63  ;;  %v1810_v31 = vpop.permute.xlu0 %1809 }
 0x2b9   :  { %1255 = vrot.lane.b32.xlu1 %v8018_v62, %s3947_s23  ;;  %3768 = vmatprep.mubr.msk.f32.mxu0 %vm2666_vm11, %v2619_v45  ;;  %v2555_v13 = vsel %vm2525_vm9, %v2490_v52, %v1810_v31  ;;  %v498_v62 = vrot.slane %v6483_v47, 2  ;;  %v8027_v31 = vld [vmem:[#allocation101_spill] sm:$0xff] }
 0x2ba   :  { %1065 = vrot.lane.b32.xlu0 %v6413_v2, %s3946_s20  ;;  %v2167_v24 = vsel %vm2135_vm3, %v5974_v37, %v8027_v31 }
 0x2bb   :  { %v1428_v33 = vpop.permute.xlu1 %1427  ;;  %v2232_v39 = vsel %vm2200_vm4, %v2167_v24, %v8028_v51  ;;  %v499_v23 = vsel %vm386_vm1, %v497_v9, %v498_v62  ;;  %v8032_v9 = vld [vmem:[#allocation146_spill] sm:$0xff] }
 0x2bc   :  { %v1238_v48 = vpop.permute.xlu0 %1237  ;;  %v2426_v20 = vsel %vm2395_vm7, %v2361_v19, %v1428_v33  ;;  %v2297_v33 = vsel %vm2265_vm5, %v2232_v39, %v6404_v34  ;;  %v3890_v34 = vld [vmem:[%s7561_s0 + $0x250] sm:$0x3] }
 0x2bd   :  { %2019 = vrot.lane.b32.xlu1 %v8021_v53, %s3951_s1  ;;  %v2362_v37 = vsel %vm2330_vm6, %v2297_v33, %v1238_v48 }
 0x2be   :  { %1829 = vrot.lane.b32.xlu0 %v8022_v32, %s3950_s7 }
 0x2bf   :  { %v1430_v50 = vpop.permute.xlu1 %1429 }
 0x2c0   :  { %v2002_v27 = vpop.permute.xlu0 %2001 }
 0x2c1   :  { %v2620_v56 = vsel %vm2590_vm10, %v2555_v13, %v2002_v27  ;;  %1447 = vrot.lane.b32.xlu1 %v8021_v53, %s3948_s24  ;;  %v2427_v53 = vsel %vm2395_vm7, %v2362_v37, %v1430_v50  ;;  %v500_v27 = vrot.slane %v3890_v34, 2 }
 0x2c2   :  { %v3746_v16 = vpop.f32.mrf.mxu0  ;;  %1257 = vrot.lane.b32.xlu0 %v8022_v32, %s3947_s23  ;;  %3769 = vmatmul.mubr.msk.f32.gmra.mxu0 %vm2666_vm11, %v2620_v56  ;;  %v8029_v32 = vld [vmem:[#allocation62_spill] sm:$0xff] }
 0x2c3   :  { %v2995_v0 = vadd.f32 %v3746_v16, %v6004_v40  ;;  %v6446_v38 = vpop.permute.xlu1 %1047 }
 0x2c4   :  { %v2989_v29 = vpop.f32.mrf.mxu0  ;;  %v1620_v5 = vpop.permute.xlu0 %1619 }
 0x2c5   :  { %v2990_v1 = vadd.f32 %v6004_v40, %v2989_v29  ;;  %1449 = vrot.lane.b32.xlu1 %v8023_v61, %s3948_s24  ;;  %v3261_v57 = vmax.f32 %v2995_v0, 0.0  ;;  %v501_v29 = vsel %vm386_vm1, %v498_v62, %v500_v27 }
 0x2c6   :  { %2021 = vrot.lane.b32.xlu0 %v8023_v61, %s3951_s1 }
 0x2c7   :  { %v3260_v22 = vmax.f32 %v2990_v1, 0.0  ;;  %v1812_v3 = vpop.permute.xlu1 %1811  ;;  %v3338_v49 = vsel %vm3312_vm12, %v3261_v57, 0.0 }
 0x2c8   :  { %v1622_v4 = vpop.permute.xlu0 %1621 }
 0x2c9   :  { %v3336_v8 = vsel %vm3312_vm12, %v3260_v22, 0.0  ;;  %1067 = vrot.lane.b32.xlu1 %v6460_v59, %s3946_s20  ;;  %v2492_v42 = vsel %vm2460_vm8, %v2427_v53, %v1622_v4 }
 0x2ca   :  { %v3337_v18 = vadd.f32 %v3336_v8, %v3335_v54  ;;  %1639 = vrot.lane.b32.xlu0 %v6460_v59, %s3949_s29  ;;  %v2491_v54 = vsel %vm2460_vm8, %v2426_v20, %v1620_v5  ;;  %v8030_v20 = vld [vmem:[#allocation106_spill] sm:$0xff] }
 0x2cb   :  { %v6471_v41 = vpop.permute.xlu1 %1239  ;;  %v2556_v26 = vsel %vm2525_vm9, %v2491_v54, %v1812_v3  ;;  %v8031_v54 = vld [vmem:[#allocation65_spill] sm:$0xff] }
 0x2cc   :  { %v6474_v60 = vpop.permute.xlu0 %1049  ;;  %v3339_v46 = vadd.f32 %v3338_v49, %v3337_v18 }
 0x2cd   :  { %1831 = vrot.lane.b32.xlu1 %v8026_v28, %s3950_s7 }
 0x2ce   :  { %1641 = vrot.lane.b32.xlu0 %v6483_v47, %s3949_s29 }
 0x2cf   :  { %v2004_v17 = vpop.permute.xlu1 %2003 }
 0x2d0   :  { %v2621_v63 = vsel %vm2590_vm10, %v2556_v26, %v2004_v17  ;;  %v1814_v45 = vpop.permute.xlu0 %1813  ;;  %v6561_v26 = vld [vmem:[%s7561_s0 + $0x260] sm:$0xff]  ;;  %v502_v17 = vrot.slane %v6536_v14, 2 }
 0x2d1   :  { %1259 = vrot.lane.b32.xlu1 %v8026_v28, %s3947_s23  ;;  %3771 = vmatprep.mubr.msk.f32.mxu0 %vm2666_vm11, %v2621_v63  ;;  %v2557_v52 = vsel %vm2525_vm9, %v2492_v42, %v1814_v45  ;;  %v503_v63 = vrot.slane %v6561_v26, 2  ;;  %v3894_v42 = vld [vmem:[%s7561_s0 + $0x1b8] sm:$0xff] }
 0x2d2   :  { %1069 = vrot.lane.b32.xlu0 %v6483_v47, %s3946_s20 }
 0x2d3   :  { %v6504_v55 = vpop.permute.xlu1 %1241  ;;  %v504_v33 = vsel %vm386_vm1, %v502_v17, %v503_v63 }
 0x2d4   :  { %v6507_v6 = vpop.permute.xlu0 %1051 }
 0x2d5   :  { %2023 = vrot.lane.b32.xlu1 %v499_v23, %s3951_s1 }
 0x2d6   :  { %1833 = vrot.lane.b32.xlu0 %v8029_v32, %s3950_s7 }
 0x2d7   :  { %v2006_v13 = vpop.permute.xlu1 %2005 }
 0x2d8   :  { %v2622_v48 = vsel %vm2590_vm10, %v2557_v52, %v2006_v13  ;;  %v1432_v56 = vpop.permute.xlu0 %1431  ;;  %v8034_v13 = vld [vmem:[#allocation14_spill] sm:$0xff] }
 0x2d9   :  { %1451 = vrot.lane.b32.xlu1 %v499_v23, %s3948_s24  ;;  %3772 = vmatmul.mubr.msk.f32.gmra.mxu0 %vm2666_vm11, %v2622_v48  ;;  %v8035_v48 = vld [vmem:[#allocation64_spill] sm:$0xff] }
 0x2da   :  { %v3749_v50 = vpop.f32.mrf.mxu0  ;;  %1261 = vrot.lane.b32.xlu0 %v8029_v32, %s3947_s23  ;;  %v8033_v32 = vld [vmem:[#allocation104_spill] sm:$0xff] }
 0x2db   :  { %v3005_v16 = vadd.f32 %v3749_v50, %v6004_v40  ;;  %v6524_v0 = vpop.permute.xlu1 %1243  ;;  %v2169_v52 = vsel %vm2135_vm3, %v3894_v42, %v8033_v32 }
 0x2dc   :  { %v2999_v5 = vpop.f32.mrf.mxu0  ;;  %v6527_v1 = vpop.permute.xlu0 %1053  ;;  %v2234_v34 = vsel %vm2200_vm4, %v2169_v52, %v8034_v13 }
 0x2dd   :  { %v3000_v61 = vadd.f32 %v6004_v40, %v2999_v5  ;;  %879 = vrot.lane.b32.xlu1 %v499_v23, %s3945_s18  ;;  %v3263_v57 = vmax.f32 %v3005_v16, 0.0 }
 0x2de   :  { %2025 = vrot.lane.b32.xlu0 %v501_v29, %s3951_s1 }
 0x2df   :  { %v3262_v22 = vmax.f32 %v3000_v61, 0.0  ;;  %v1624_v3 = vpop.permute.xlu1 %1623  ;;  %v3342_v35 = vsel %vm3312_vm12, %v3263_v57, 0.0 }
 0x2e0   :  { %v1434_v4 = vpop.permute.xlu0 %1433 }
 0x2e1   :  { %v3340_v25 = vsel %vm3312_vm12, %v3262_v22, 0.0  ;;  %1643 = vrot.lane.b32.xlu1 %v6536_v14, %s3949_s29 }
 0x2e2   :  { %v3341_v8 = vadd.f32 %v3340_v25, %v3339_v46  ;;  %1453 = vrot.lane.b32.xlu0 %v501_v29, %s3948_s24  ;;  %v3892_v46 = vld [vmem:[%s7561_s0 + $0x1b0] sm:$0xff] }
 0x2e3   :  { %v6542_v30 = vpop.permute.xlu1 %1435  ;;  %v2168_v28 = vsel %vm2135_vm3, %v3892_v46, %v8030_v20 }
 0x2e4   :  { %v6544_v18 = vpop.permute.xlu0 %1245  ;;  %v3343_v11 = vadd.f32 %v3342_v35, %v3341_v8  ;;  %v2233_v62 = vsel %vm2200_vm4, %v2168_v28, %v8032_v9 }
 0x2e5   :  { %1071 = vrot.lane.b32.xlu1 %v6536_v14, %s3946_s20  ;;  %v2298_v45 = vsel %vm2265_vm5, %v2233_v62, %v6446_v38 }
 0x2e6   :  { %881 = vrot.lane.b32.xlu0 %v501_v29, %s3945_s18  ;;  %v2363_v24 = vsel %vm2330_vm6, %v2298_v45, %v6471_v41  ;;  %v3895_v29 = vld [vmem:[%s7561_s0 + $0x268] sm:$0x3] }
 0x2e7   :  { %v1816_v49 = vpop.permute.xlu1 %1815  ;;  %v2428_v39 = vsel %vm2395_vm7, %v2363_v24, %v1432_v56  ;;  %v2299_v56 = vsel %vm2265_vm5, %v2234_v34, %v6474_v60  ;;  %v505_v5 = vrot.slane %v3895_v29, 2  ;;  %v8040_v34 = vld [vmem:[#allocation67_spill] sm:$0xff] }
 0x2e8   :  { %v1626_v19 = vpop.permute.xlu0 %1625  ;;  %v2493_v23 = vsel %vm2460_vm8, %v2428_v39, %v1624_v3  ;;  %v2364_v61 = vsel %vm2330_vm6, %v2299_v56, %v6504_v55 }
 0x2e9   :  { %1835 = vrot.lane.b32.xlu1 %v8031_v54, %s3950_s7  ;;  %v2558_v38 = vsel %vm2525_vm9, %v2493_v23, %v1816_v49  ;;  %v2429_v3 = vsel %vm2395_vm7, %v2364_v61, %v1434_v4  ;;  %v506_v55 = vsel %vm386_vm1, %v503_v63, %v505_v5  ;;  %v8036_v4 = vld [vmem:[#allocation110_spill] sm:$0xff] }
 0x2ea   :  { %1645 = vrot.lane.b32.xlu0 %v6561_v26, %s3949_s29  ;;  %v2494_v60 = vsel %vm2460_vm8, %v2429_v3, %v1626_v19  ;;  %v8037_v19 = vld [vmem:[#allocation148_spill] sm:$0xff] }
 0x2eb   :  { %v1628_v31 = vpop.permute.xlu1 %1627 }
 0x2ec   :  { %v6571_v51 = vpop.permute.xlu0 %1437 }
 0x2ed   :  { %1263 = vrot.lane.b32.xlu1 %v8031_v54, %s3947_s23 }
 0x2ee   :  { %1073 = vrot.lane.b32.xlu0 %v6561_v26, %s3946_s20 }
 0x2ef   :  { %v2008_v37 = vpop.permute.xlu1 %2007 }
 0x2f0   :  { %v2623_v53 = vsel %vm2590_vm10, %v2558_v38, %v2008_v37  ;;  %v1818_v41 = vpop.permute.xlu0 %1817 }
 0x2f1   :  { %2027 = vrot.lane.b32.xlu1 %v504_v33, %s3951_s1  ;;  %3774 = vmatprep.mubr.msk.f32.mxu0 %vm2666_vm11, %v2623_v53  ;;  %v2559_v8 = vsel %vm2525_vm9, %v2494_v60, %v1818_v41 }
 0x2f2   :  { %v3752_v27 = vpop.f32.mrf.mxu0  ;;  %1837 = vrot.lane.b32.xlu0 %v8035_v48, %s3950_s7 }
 0x2f3   :  { %v3015_v50 = vadd.f32 %v3752_v27, %v6004_v40  ;;  %v1630_v16 = vpop.permute.xlu1 %1629  ;;  %v6665_v27 = vld [vmem:[%s7561_s0 + $0x278] sm:$0xff] }
 0x2f4   :  { %v3009_v57 = vpop.f32.mrf.mxu0  ;;  %v6601_v22 = vpop.permute.xlu0 %1055 }
 0x2f5   :  { %v3010_v25 = vadd.f32 %v6004_v40, %v3009_v57  ;;  %1455 = vrot.lane.b32.xlu1 %v504_v33, %s3948_s24  ;;  %v3265_v35 = vmax.f32 %v3015_v50, 0.0  ;;  %v2170_v40 = vsel %vm2135_vm3, %v6110_v21, %v8036_v4 }
 0x2f6   :  { %1265 = vrot.lane.b32.xlu0 %v8035_v48, %s3947_s23  ;;  %v2235_v9 = vsel %vm2200_vm4, %v2170_v40, %v8037_v19  ;;  %v508_v48 = vrot.slane %v6665_v27, 2  ;;  %v8042_v40 = vld [vmem:[#allocation34_spill] sm:$0xff] }
 0x2f7   :  { %v3264_v49 = vmax.f32 %v3010_v25, 0.0  ;;  %v2010_v46 = vpop.permute.xlu1 %2009  ;;  %v2300_v17 = vsel %vm2265_vm5, %v2235_v9, %v6507_v6  ;;  %v3346_v63 = vsel %vm3312_vm12, %v3265_v35, 0.0  ;;  %v8041_v35 = vld [vmem:[#allocation66_spill] sm:$0xff]  ;;  %v8043_v9 = vld [vmem:[#allocation149_spill] sm:$0xff] }
 0x2f8   :  { %v2624_v20 = vsel %vm2590_vm10, %v2559_v8, %v2010_v46  ;;  %v1820_v28 = vpop.permute.xlu0 %1819  ;;  %v2365_v21 = vsel %vm2330_vm6, %v2300_v17, %v6524_v0 }
 0x2f9   :  { %v3344_v54 = vsel %vm3312_vm12, %v3264_v49, 0.0  ;;  %883 = vrot.lane.b32.xlu1 %v504_v33, %s3945_s18  ;;  %3775 = vmatmul.mubr.msk.f32.gmra.mxu0 %vm2666_vm11, %v2624_v20  ;;  %v2430_v23 = vsel %vm2395_vm7, %v2365_v21, %v6542_v30  ;;  %v8038_v30 = vld [vmem:[#allocation108_spill] sm:$0xff] }
 0x2fa   :  { %v3345_v62 = vadd.f32 %v3344_v54, %v3343_v11  ;;  %2029 = vrot.lane.b32.xlu0 %v506_v55, %s3951_s1  ;;  %v6635_v11 = vld [vmem:[%s7561_s0 + $0x270] sm:$0xff]  ;;  %v2495_v6 = vsel %vm2460_vm8, %v2430_v23, %v1628_v31  ;;  %v2171_v53 = vsel %vm2135_vm3, %v6148_v10, %v8038_v30  ;;  %v3899_v20 = vld [vmem:[%s7561_s0 + $0x280] sm:$0x3]  ;;  %v2172_v54 = vsel %vm2135_vm3, %v6172_v58, %v8042_v40 }
 0x2fb   :  { %v6624_v45 = vpop.permute.xlu1 %1247  ;;  %v2560_v0 = vsel %vm2525_vm9, %v2495_v6, %v1820_v28  ;;  %v8039_v31 = vld [vmem:[#allocation147_spill] sm:$0xff]  ;;  %v510_v28 = vrot.slane %v3899_v20, 2 }
 0x2fc   :  { %v6628_v24 = vpop.permute.xlu0 %1057  ;;  %v3347_v39 = vadd.f32 %v3346_v63, %v3345_v62  ;;  %v2236_v41 = vsel %vm2200_vm4, %v2171_v53, %v8039_v31  ;;  %v2237_v62 = vsel %vm2200_vm4, %v2172_v54, %v8043_v9  ;;  %v8044_v31 = vld [vmem:[#allocation33_spill] sm:$0xff] }
 0x2fd   :  { %1647 = vrot.lane.b32.xlu1 %v6635_v11, %s3949_s29  ;;  %v2301_v32 = vsel %vm2265_vm5, %v2236_v41, %v6527_v1  ;;  %v507_v1 = vrot.slane %v6635_v11, 2  ;;  %v2302_v63 = vsel %vm2265_vm5, %v2237_v62, %v6601_v22  ;;  %v511_v6 = vsel %vm386_vm1, %v508_v48, %v510_v28 }
 0x2fe   :  { %1457 = vrot.lane.b32.xlu0 %v506_v55, %s3948_s24  ;;  %v2366_v13 = vsel %vm2330_vm6, %v2301_v32, %v6544_v18  ;;  %v2367_v58 = vsel %vm2330_vm6, %v2302_v63, %v6624_v45  ;;  %v6721_v45 = vld [vmem:[%s7561_s0 + $0x288] sm:$0xff]  ;;  %v2173_v41 = vsel %vm2135_vm3, %v6196_v7, %v8044_v31 }
 0x2ff   :  { %v2012_v33 = vpop.permute.xlu1 %2011  ;;  %v2431_v10 = vsel %vm2395_vm7, %v2366_v13, %v6571_v51  ;;  %v509_v61 = vsel %vm386_vm1, %v507_v1, %v508_v48 }
 0x300   :  { %v1822_v38 = vpop.permute.xlu0 %1821  ;;  %v2625_v37 = vsel %vm2590_vm10, %v2560_v0, %v2012_v33  ;;  %v2496_v18 = vsel %vm2460_vm8, %v2431_v10, %v1630_v16  ;;  %v6683_v16 = vld [vmem:[%s7563_s2] ss:$0 sm:$0xff] }
 0x301   :  { %1075 = vrot.lane.b32.xlu1 %v6635_v11, %s3946_s20  ;;  %3777 = vmatprep.mubr.msk.f32.mxu1 %vm2666_vm11, %v2625_v37  ;;  %v2561_v50 = vsel %vm2525_vm9, %v2496_v18, %v1822_v38 }
 0x302   :  { %885 = vrot.lane.b32.xlu0 %v506_v55, %s3945_s18 }
 0x303   :  { %v1440_v42 = vpop.permute.xlu1 %1439 }
 0x304   :  { %v6654_v52 = vpop.permute.xlu0 %1249  ;;  %v2432_v38 = vsel %vm2395_vm7, %v2367_v58, %v1440_v42  ;;  %v8045_v42 = vld [vmem:[#allocation13_spill] sm:$0xff] }
 0x305   :  { %1839 = vrot.lane.b32.xlu1 %v8040_v34, %s3950_s7  ;;  %v2238_v32 = vsel %vm2200_vm4, %v2173_v41, %v8045_v42  ;;  %v8050_v41 = vld [vmem:[#allocation37_spill] sm:$0xff] }
 0x306   :  { %1649 = vrot.lane.b32.xlu0 %v6665_v27, %s3949_s29  ;;  %v2175_v42 = vsel %vm2135_vm3, %v6261_v43, %v8050_v41  ;;  %v8056_v41 = vld [vmem:[#allocation40_spill] sm:$0xff] }
 0x307   :  { %v1442_v56 = vpop.permute.xlu1 %1441 }
 0x308   :  { %v2014_v29 = vpop.permute.xlu0 %2013 }
 0x309   :  { %v2626_v51 = vsel %vm2590_vm10, %v2561_v50, %v2014_v29  ;;  %1267 = vrot.lane.b32.xlu1 %v8040_v34, %s3947_s23  ;;  %v2303_v34 = vsel %vm2265_vm5, %v2238_v32, %v6628_v24  ;;  %v8046_v24 = vld [vmem:[#allocation69_spill] sm:$0xff]  ;;  %v8051_v32 = vld [vmem:[#allocation150_spill] sm:$0xff] }
 0x30a   :  { %v3755_v5 = vpop.f32.mrf.mxu0  ;;  %1077 = vrot.lane.b32.xlu0 %v6665_v27, %s3946_s20  ;;  %3778 = vmatmul.mubr.msk.f32.vlgmr.msra.gmra.mxu1 %vm2666_vm11, %v2626_v51  ;;  %v2368_v1 = vsel %vm2330_vm6, %v2303_v34, %v6654_v52  ;;  %v6748_v52 = vld [vmem:[%s7561_s0 + $0x290] sm:$0xff] }
 0x30b   :  { %v3025_v57 = vadd.f32 %v6683_v16, %v3755_v5  ;;  %v6686_v3 = vpop.permute.xlu1 %1059  ;;  %v2433_v48 = vsel %vm2395_vm7, %v2368_v1, %v1442_v56  ;;  %v512_v56 = vrot.slane %v6721_v45, 2 }
 0x30c   :  { %v3019_v25 = vpop.f32.mrf.mxu0  ;;  %v1632_v60 = vpop.permute.xlu0 %1631 }
 0x30d   :  { %v3020_v8 = vadd.f32 %v6683_v16, %v3019_v25  ;;  %2031 = vrot.lane.b32.xlu1 %v509_v61, %s3951_s1  ;;  %v3267_v49 = vmax.f32 %v3025_v57, 0.0 }
 0x30e   :  { %1841 = vrot.lane.b32.xlu0 %v8041_v35, %s3950_s7 }
 0x30f   :  { %v3266_v46 = vmax.f32 %v3020_v8, 0.0  ;;  %v1824_v55 = vpop.permute.xlu1 %1823  ;;  %v3350_v21 = vsel %vm3312_vm12, %v3267_v49, 0.0 }
 0x310   :  { %v1634_v4 = vpop.permute.xlu0 %1633 }
 0x311   :  { %v3348_v19 = vsel %vm3312_vm12, %v3266_v46, 0.0  ;;  %1459 = vrot.lane.b32.xlu1 %v509_v61, %s3948_s24  ;;  %v2498_v7 = vsel %vm2460_vm8, %v2433_v48, %v1634_v4  ;;  %v8047_v4 = vld [vmem:[#allocation38_spill] sm:$0xff] }
 0x312   :  { %v3349_v17 = vadd.f32 %v3348_v19, %v3347_v39  ;;  %1269 = vrot.lane.b32.xlu0 %v8041_v35, %s3947_s23  ;;  %v2497_v39 = vsel %vm2460_vm8, %v2432_v38, %v1632_v60  ;;  %v2174_v40 = vsel %vm2135_vm3, %v6239_v15, %v8047_v4  ;;  %v8048_v19 = vld [vmem:[#allocation151_spill] sm:$0xff] }
 0x313   :  { %v1252_v23 = vpop.permute.xlu1 %1251  ;;  %v2562_v22 = vsel %vm2525_vm9, %v2497_v39, %v1824_v55  ;;  %v2239_v9 = vsel %vm2200_vm4, %v2174_v40, %v8048_v19  ;;  %v3902_v15 = vld [vmem:[%s7561_s0 + $0x298] sm:$0x3]  ;;  %v8053_v40 = vld [vmem:[#allocation42_spill] sm:$0xff] }
 0x314   :  { %v6710_v0 = vpop.permute.xlu0 %1061  ;;  %v3351_v33 = vadd.f32 %v3350_v21, %v3349_v17  ;;  %v8049_v17 = vld [vmem:[#allocation68_spill] sm:$0xff]  ;;  %v2304_v63 = vsel %vm2265_vm5, %v2239_v9, %v6686_v3  ;;  %v515_v58 = vrot.slane %v3902_v15, 2  ;;  %v8054_v9 = vld [vmem:[#allocation153_spill] sm:$0xff] }
 0x315   :  { %887 = vrot.lane.b32.xlu1 %v509_v61, %s3945_s18  ;;  %v513_v61 = vrot.slane %v6748_v52, 2  ;;  %v2369_v38 = vsel %vm2330_vm6, %v2304_v63, %v1252_v23 }
 0x316   :  { %2033 = vrot.lane.b32.xlu0 %v511_v6, %s3951_s1 }
 0x317   :  { %v2016_v37 = vpop.permute.xlu1 %2015  ;;  %v514_v49 = vsel %vm386_vm1, %v512_v56, %v513_v61 }
 0x318   :  { %v2627_v30 = vsel %vm2590_vm10, %v2562_v22, %v2016_v37  ;;  %v1826_v53 = vpop.permute.xlu0 %1825 }
 0x319   :  { %1651 = vrot.lane.b32.xlu1 %v6721_v45, %s3949_s29  ;;  %3780 = vmatprep.mubr.msk.f32.mxu1 %vm2666_vm11, %v2627_v30  ;;  %v2563_v50 = vsel %vm2525_vm9, %v2498_v7, %v1826_v53  ;;  %v516_v53 = vsel %vm386_vm1, %v513_v61, %v515_v58 }
 0x31a   :  { %1461 = vrot.lane.b32.xlu0 %v511_v6, %s3948_s24 }
 0x31b   :  { %v1444_v13 = vpop.permute.xlu1 %1443 }
 0x31c   :  { %v1254_v10 = vpop.permute.xlu0 %1253 }
 0x31d   :  { %1079 = vrot.lane.b32.xlu1 %v6721_v45, %s3946_s20 }
 0x31e   :  { %889 = vrot.lane.b32.xlu0 %v511_v6, %s3945_s18 }
 0x31f   :  { %v1446_v18 = vpop.permute.xlu1 %1445 }
 0x320   :  { %v2018_v29 = vpop.permute.xlu0 %2017 }
 0x321   :  { %v2628_v51 = vsel %vm2590_vm10, %v2563_v50, %v2018_v29  ;;  %1843 = vrot.lane.b32.xlu1 %v8046_v24, %s3950_s7  ;;  %v6804_v50 = vld [vmem:[%s7561_s0 + $0x2a0] sm:$0xff] }
 0x322   :  { %v3758_v5 = vpop.f32.mrf.mxu0  ;;  %1653 = vrot.lane.b32.xlu0 %v6748_v52, %s3949_s29  ;;  %3781 = vmatmul.mubr.msk.f32.gmra.mxu1 %vm2666_vm11, %v2628_v51 }
 0x323   :  { %v3035_v57 = vadd.f32 %v6683_v16, %v3758_v5  ;;  %v6756_v25 = vpop.permute.xlu1 %1063 }
 0x324   :  { %v3029_v60 = vpop.f32.mrf.mxu0  ;;  %v1636_v8 = vpop.permute.xlu0 %1635 }
 0x325   :  { %v3030_v35 = vadd.f32 %v6683_v16, %v3029_v60  ;;  %1271 = vrot.lane.b32.xlu1 %v8046_v24, %s3947_s23  ;;  %v3269_v46 = vmax.f32 %v3035_v57, 0.0 }
 0x326   :  { %1081 = vrot.lane.b32.xlu0 %v6748_v52, %s3946_s20 }
 0x327   :  { %v3268_v55 = vmax.f32 %v3030_v35, 0.0  ;;  %v1828_v20 = vpop.permute.xlu1 %1827  ;;  %v3354_v21 = vsel %vm3312_vm12, %v3269_v46, 0.0  ;;  %v6826_v35 = vld [vmem:[%s7561_s0 + $0x2a8] sm:$0xff] }
 0x328   :  { %v1638_v28 = vpop.permute.xlu0 %1637  ;;  %v518_v46 = vrot.slane %v6826_v35, 2 }
 0x329   :  { %v3352_v54 = vsel %vm3312_vm12, %v3268_v55, 0.0  ;;  %2035 = vrot.lane.b32.xlu1 %v514_v49, %s3951_s1 }
 0x32a   :  { %v3353_v62 = vadd.f32 %v3352_v54, %v3351_v33  ;;  %1845 = vrot.lane.b32.xlu0 %v8049_v17, %s3950_s7  ;;  %v2434_v33 = vsel %vm2395_vm7, %v2369_v38, %v1444_v13  ;;  %v2240_v13 = vsel %vm2200_vm4, %v2175_v42, %v8051_v32  ;;  %v2176_v54 = vsel %vm2135_vm3, %v6324_v12, %v8053_v40  ;;  %v8057_v32 = vld [vmem:[#allocation152_spill] sm:$0xff] }
 0x32b   :  { %v1256_v6 = vpop.permute.xlu1 %1255  ;;  %v2499_v37 = vsel %vm2460_vm8, %v2434_v33, %v1636_v8  ;;  %v2305_v1 = vsel %vm2265_vm5, %v2240_v13, %v6710_v0  ;;  %v8052_v8 = vld [vmem:[#allocation71_spill] sm:$0xff]  ;;  %v2177_v42 = vsel %vm2135_vm3, %v6345_v36, %v8056_v41 }
 0x32c   :  { %v6780_v39 = vpop.permute.xlu0 %1065  ;;  %v3355_v22 = vadd.f32 %v3354_v21, %v3353_v62  ;;  %v2564_v3 = vsel %vm2525_vm9, %v2499_v37, %v1828_v20  ;;  %v2370_v7 = vsel %vm2330_vm6, %v2305_v1, %v1254_v10  ;;  %v2241_v62 = vsel %vm2200_vm4, %v2176_v54, %v8054_v9  ;;  %v6908_v54 = vld [vmem:[%s7561_s0 + $0x2c0] sm:$0xff] }
 0x32d   :  { %1463 = vrot.lane.b32.xlu1 %v514_v49, %s3948_s24  ;;  %v2435_v43 = vsel %vm2395_vm7, %v2370_v7, %v1446_v18  ;;  %v2306_v21 = vsel %vm2265_vm5, %v2241_v62, %v6756_v25  ;;  %v2242_v13 = vsel %vm2200_vm4, %v2177_v42, %v8057_v32  ;;  %v523_v9 = vrot.slane %v6908_v54, 2 }
 0x32e   :  { %1273 = vrot.lane.b32.xlu0 %v8049_v17, %s3947_s23  ;;  %v2500_v29 = vsel %vm2460_vm8, %v2435_v43, %v1638_v28  ;;  %v2371_v58 = vsel %vm2330_vm6, %v2306_v21, %v1256_v6  ;;  %v2307_v7 = vsel %vm2265_vm5, %v2242_v13, %v6780_v39  ;;  %v6887_v39 = vld [vmem:[%s7561_s0 + $0x2b8] sm:$0xff]  ;;  %v8062_v13 = vld [vmem:[#allocation45_spill] sm:$0xff] }
 0x32f   :  { %v2020_v30 = vpop.permute.xlu1 %2019 }
 0x330   :  { %v2629_v31 = vsel %vm2590_vm10, %v2564_v3, %v2020_v30  ;;  %v1830_v23 = vpop.permute.xlu0 %1829  ;;  %v8055_v3 = vld [vmem:[#allocation70_spill] sm:$0xff] }
 0x331   :  { %891 = vrot.lane.b32.xlu1 %v514_v49, %s3945_s18  ;;  %3783 = vmatprep.mubr.msk.f32.mxu1 %vm2666_vm11, %v2629_v31  ;;  %v2565_v0 = vsel %vm2525_vm9, %v2500_v29, %v1830_v23  ;;  %v517_v49 = vrot.slane %v6804_v50, 2 }
 0x332   :  { %2037 = vrot.lane.b32.xlu0 %v516_v53, %s3951_s1 }
 0x333   :  { %v1448_v34 = vpop.permute.xlu1 %1447  ;;  %v519_v63 = vsel %vm386_vm1, %v517_v49, %v518_v46 }
 0x334   :  { %v1258_v48 = vpop.permute.xlu0 %1257  ;;  %v2436_v37 = vsel %vm2395_vm7, %v2371_v58, %v1448_v34 }
 0x335   :  { %1655 = vrot.lane.b32.xlu1 %v6804_v50, %s3949_s29  ;;  %v2372_v29 = vsel %vm2330_vm6, %v2307_v7, %v1258_v48 }
 0x336   :  { %1465 = vrot.lane.b32.xlu0 %v516_v53, %s3948_s24 }
 0x337   :  { %v1450_v51 = vpop.permute.xlu1 %1449 }
 0x338   :  { %v2022_v24 = vpop.permute.xlu0 %2021  ;;  %v2437_v36 = vsel %vm2395_vm7, %v2372_v29, %v1450_v51 }
 0x339   :  { %v2630_v10 = vsel %vm2590_vm10, %v2565_v0, %v2022_v24  ;;  %1083 = vrot.lane.b32.xlu1 %v6804_v50, %s3946_s20 }
 0x33a   :  { %v3761_v5 = vpop.f32.mrf.mxu0  ;;  %893 = vrot.lane.b32.xlu0 %v516_v53, %s3945_s18  ;;  %3784 = vmatmul.mubr.msk.f32.gmra.mxu1 %vm2666_vm11, %v2630_v10  ;;  %v3905_v53 = vld [vmem:[%s7561_s0 + $0x2b0] sm:$0x3] }
 0x33b   :  { %v3045_v18 = vadd.f32 %v6683_v16, %v3761_v5  ;;  %v6818_v56 = vpop.permute.xlu1 %1067  ;;  %v520_v6 = vrot.slane %v3905_v53, 2 }
 0x33c   :  { %v3039_v61 = vpop.f32.mrf.mxu0  ;;  %v1640_v57 = vpop.permute.xlu0 %1639 }
 0x33d   :  { %v3040_v60 = vadd.f32 %v6683_v16, %v3039_v61  ;;  %1847 = vrot.lane.b32.xlu1 %v8052_v8, %s3950_s7  ;;  %v3271_v55 = vmax.f32 %v3045_v18, 0.0  ;;  %v521_v1 = vsel %vm386_vm1, %v518_v46, %v520_v6 }
 0x33e   :  { %1657 = vrot.lane.b32.xlu0 %v6826_v35, %s3949_s29 }
 0x33f   :  { %v3270_v20 = vmax.f32 %v3040_v60, 0.0  ;;  %v1832_v28 = vpop.permute.xlu1 %1831  ;;  %v3358_v15 = vsel %vm3312_vm12, %v3271_v55, 0.0 }
 0x340   :  { %v1642_v4 = vpop.permute.xlu0 %1641 }
 0x341   :  { %v3356_v19 = vsel %vm3312_vm12, %v3270_v20, 0.0  ;;  %1275 = vrot.lane.b32.xlu1 %v8052_v8, %s3947_s23  ;;  %v2502_v0 = vsel %vm2460_vm8, %v2437_v36, %v1642_v4  ;;  %v8058_v4 = vld [vmem:[#allocation73_spill] sm:$0xff] }
 0x342   :  { %v3357_v17 = vadd.f32 %v3356_v19, %v3355_v22  ;;  %1085 = vrot.lane.b32.xlu0 %v6826_v35, %s3946_s20  ;;  %v2501_v22 = vsel %vm2460_vm8, %v2436_v37, %v1640_v57  ;;  %v522_v19 = vrot.slane %v6887_v39, 2 }
 0x343   :  { %v6846_v12 = vpop.permute.xlu1 %1259  ;;  %v2566_v25 = vsel %vm2525_vm9, %v2501_v22, %v1832_v28 }
 0x344   :  { %v6849_v38 = vpop.permute.xlu0 %1069  ;;  %v3359_v33 = vadd.f32 %v3358_v15, %v3357_v17  ;;  %v8059_v15 = vld [vmem:[#allocation47_spill] sm:$0xff]  ;;  %v524_v22 = vsel %vm386_vm1, %v522_v19, %v523_v9 }
 0x345   :  { %2039 = vrot.lane.b32.xlu1 %v519_v63, %s3951_s1  ;;  %v2178_v58 = vsel %vm2135_vm3, %v6392_v44, %v8059_v15 }
 0x346   :  { %1849 = vrot.lane.b32.xlu0 %v8055_v3, %s3950_s7 }
 0x347   :  { %v2024_v30 = vpop.permute.xlu1 %2023 }
 0x348   :  { %v2631_v31 = vsel %vm2590_vm10, %v2566_v25, %v2024_v30  ;;  %v1834_v23 = vpop.permute.xlu0 %1833 }
 0x349   :  { %1467 = vrot.lane.b32.xlu1 %v519_v63, %s3948_s24  ;;  %3786 = vmatprep.mubr.msk.f32.mxu1 %vm2666_vm11, %v2631_v31  ;;  %v2567_v10 = vsel %vm2525_vm9, %v2502_v0, %v1834_v23  ;;  %v8061_v31 = vld [vmem:[#allocation72_spill] sm:$0xff] }
 0x34a   :  { %1277 = vrot.lane.b32.xlu0 %v8055_v3, %s3947_s23 }
 0x34b   :  { %v1452_v34 = vpop.permute.xlu1 %1451 }
 0x34c   :  { %v6873_v43 = vpop.permute.xlu0 %1261 }
 0x34d   :  { %895 = vrot.lane.b32.xlu1 %v519_v63, %s3945_s18 }
 0x34e   :  { %2041 = vrot.lane.b32.xlu0 %v521_v1, %s3951_s1 }
 0x34f   :  { %v6880_v24 = vpop.permute.xlu1 %879 }
 0x350   :  { %v2026_v5 = vpop.permute.xlu0 %2025 }
 0x351   :  { %v2632_v18 = vsel %vm2590_vm10, %v2567_v10, %v2026_v5  ;;  %1659 = vrot.lane.b32.xlu1 %v6887_v39, %s3949_s29 }
 0x352   :  { %v3764_v48 = vpop.f32.mrf.mxu0  ;;  %1469 = vrot.lane.b32.xlu0 %v521_v1, %s3948_s24  ;;  %3787 = vmatmul.mubr.msk.f32.gmra.mxu1 %vm2666_vm11, %v2632_v18 }
 0x353   :  { %v3055_v51 = vadd.f32 %v6683_v16, %v3764_v48  ;;  %v1644_v61 = vpop.permute.xlu1 %1643 }
 0x354   :  { %v3049_v57 = vpop.f32.mrf.mxu0  ;;  %v1454_v60 = vpop.permute.xlu0 %1453 }
 0x355   :  { %v3050_v8 = vadd.f32 %v6683_v16, %v3049_v57  ;;  %1087 = vrot.lane.b32.xlu1 %v6887_v39, %s3946_s20  ;;  %v3273_v49 = vmax.f32 %v3055_v51, 0.0 }
 0x356   :  { %897 = vrot.lane.b32.xlu0 %v521_v1, %s3945_s18  ;;  %v8063_v1 = vld [vmem:[#allocation155_spill] sm:$0xff] }
 0x357   :  { %v3272_v46 = vmax.f32 %v3050_v8, 0.0  ;;  %v6898_v55 = vpop.permute.xlu1 %1071  ;;  %v3362_v62 = vsel %vm3312_vm12, %v3273_v49, 0.0 }
 0x358   :  { %v6900_v20 = vpop.permute.xlu0 %881 }
 0x359   :  { %v3360_v28 = vsel %vm3312_vm12, %v3272_v46, 0.0  ;;  %1851 = vrot.lane.b32.xlu1 %v8058_v4, %s3950_s7 }
 0x35a   :  { %v3361_v40 = vadd.f32 %v3360_v28, %v3359_v33  ;;  %1661 = vrot.lane.b32.xlu0 %v6908_v54, %s3949_s29  ;;  %v8060_v33 = vld [vmem:[#allocation156_spill] sm:$0xff] }
 0x35b   :  { %v1836_v17 = vpop.permute.xlu1 %1835  ;;  %v2243_v37 = vsel %vm2200_vm4, %v2178_v58, %v8060_v33  ;;  %v8064_v58 = vld [vmem:[#allocation75_spill] sm:$0xff] }
 0x35c   :  { %v1646_v63 = vpop.permute.xlu0 %1645  ;;  %v3363_v21 = vadd.f32 %v3362_v62, %v3361_v40  ;;  %v2308_v3 = vsel %vm2265_vm5, %v2243_v37, %v6818_v56  ;;  %v3908_v56 = vld [vmem:[%s7561_s0 + $0x2c8] sm:$0x3]  ;;  %v6992_v33 = vld [vmem:[%s7561_s0 + $0x2d8] sm:$0xff] }
 0x35d   :  { %1279 = vrot.lane.b32.xlu1 %v8058_v4, %s3947_s23  ;;  %v2373_v30 = vsel %vm2330_vm6, %v2308_v3, %v6846_v12  ;;  %v525_v42 = vrot.slane %v3908_v56, 2  ;;  %v528_v37 = vrot.slane %v6992_v33, 2 }
 0x35e   :  { %1089 = vrot.lane.b32.xlu0 %v6908_v54, %s3946_s20  ;;  %v2438_v53 = vsel %vm2395_vm7, %v2373_v30, %v1452_v34  ;;  %v2179_v34 = vsel %vm2135_vm3, %v6413_v2, %v8062_v13  ;;  %v8065_v30 = vld [vmem:[#allocation52_spill] sm:$0xff] }
 0x35f   :  { %v6927_v25 = vpop.permute.xlu1 %1263  ;;  %v2503_v6 = vsel %vm2460_vm8, %v2438_v53, %v1644_v61  ;;  %v2244_v7 = vsel %vm2200_vm4, %v2179_v34, %v8063_v1  ;;  %v526_v36 = vsel %vm386_vm1, %v523_v9, %v525_v42  ;;  %v2180_v53 = vsel %vm2135_vm3, %v6460_v59, %v8065_v30 }
 0x360   :  { %v6931_v44 = vpop.permute.xlu0 %1073  ;;  %v2568_v23 = vsel %vm2525_vm9, %v2503_v6, %v1836_v17  ;;  %v2309_v0 = vsel %vm2265_vm5, %v2244_v7, %v6849_v38  ;;  %v2245_v6 = vsel %vm2200_vm4, %v2180_v53, %v6880_v24  ;;  %v8067_v7 = vld [vmem:[#allocation50_spill] sm:$0xff] }
 0x361   :  { %2043 = vrot.lane.b32.xlu1 %v524_v22, %s3951_s1  ;;  %v2374_v5 = vsel %vm2330_vm6, %v2309_v0, %v6873_v43 }
 0x362   :  { %1853 = vrot.lane.b32.xlu0 %v8061_v31, %s3950_s7  ;;  %v2439_v2 = vsel %vm2395_vm7, %v2374_v5, %v1454_v60  ;;  %v6972_v60 = vld [vmem:[%s7561_s0 + $0x2d0] sm:$0xff] }
 0x363   :  { %v2028_v41 = vpop.permute.xlu1 %2027  ;;  %v2504_v48 = vsel %vm2460_vm8, %v2439_v2, %v1646_v63 }
 0x364   :  { %v2633_v12 = vsel %vm2590_vm10, %v2568_v23, %v2028_v41  ;;  %v1838_v32 = vpop.permute.xlu0 %1837  ;;  %v2310_v23 = vsel %vm2265_vm5, %v2245_v6, %v6898_v55  ;;  %v3911_v55 = vld [vmem:[%s7561_s0 + $0x2e0] sm:$0x3] }
 0x365   :  { %1471 = vrot.lane.b32.xlu1 %v524_v22, %s3948_s24  ;;  %3789 = vmatprep.mubr.msk.f32.mxu1 %vm2666_vm11, %v2633_v12  ;;  %v2569_v38 = vsel %vm2525_vm9, %v2504_v48, %v1838_v32  ;;  %v2375_v56 = vsel %vm2330_vm6, %v2310_v23, %v6927_v25  ;;  %v8066_v12 = vld [vmem:[#allocation74_spill] sm:$0xff]  ;;  %v530_v34 = vrot.slane %v3911_v55, 2  ;;  %v8069_v23 = vld [vmem:[#allocation57_spill] sm:$0xff] }
 0x366   :  { %1281 = vrot.lane.b32.xlu0 %v8061_v31, %s3947_s23 }
 0x367   :  { %v1456_v29 = vpop.permute.xlu1 %1455 }
 0x368   :  { %v6955_v10 = vpop.permute.xlu0 %1265  ;;  %v2440_v42 = vsel %vm2395_vm7, %v2375_v56, %v1456_v29  ;;  %v2181_v29 = vsel %vm2135_vm3, %v6483_v47, %v8067_v7  ;;  %v2182_v56 = vsel %vm2135_vm3, %v6536_v14, %v8069_v23 }
 0x369   :  { %899 = vrot.lane.b32.xlu1 %v524_v22, %s3945_s18  ;;  %v2246_v0 = vsel %vm2200_vm4, %v2181_v29, %v6900_v20 }
 0x36a   :  { %v3767_v18 = vpop.f32.mrf.mxu0  ;;  %2045 = vrot.lane.b32.xlu0 %v526_v36, %s3951_s1  ;;  %v2311_v48 = vsel %vm2265_vm5, %v2246_v0, %v6931_v44 }
 0x36b   :  { %v3065_v51 = vadd.f32 %v6683_v16, %v3767_v18  ;;  %v6964_v61 = vpop.permute.xlu1 %883  ;;  %v531_v18 = vsel %vm386_vm1, %v528_v37, %v530_v34  ;;  %v2376_v47 = vsel %vm2330_vm6, %v2311_v48, %v6955_v10 }
 0x36c   :  { %v3059_v57 = vpop.f32.mrf.mxu0  ;;  %v2030_v8 = vpop.permute.xlu0 %2029 }
 0x36d   :  { %v3060_v49 = vadd.f32 %v6683_v16, %v3059_v57  ;;  %v2634_v43 = vsel %vm2590_vm10, %v2569_v38, %v2030_v8  ;;  %1663 = vrot.lane.b32.xlu1 %v6972_v60, %s3949_s29  ;;  %v3275_v46 = vmax.f32 %v3065_v51, 0.0 }
 0x36e   :  { %1473 = vrot.lane.b32.xlu0 %v526_v36, %s3948_s24  ;;  %3790 = vmatmul.mubr.msk.f32.gmra.mxu1 %vm2666_vm11, %v2634_v43 }
 0x36f   :  { %v3274_v28 = vmax.f32 %v3060_v49, 0.0  ;;  %v1648_v4 = vpop.permute.xlu1 %1647  ;;  %v3366_v62 = vsel %vm3312_vm12, %v3275_v46, 0.0 }
 0x370   :  { %v1458_v40 = vpop.permute.xlu0 %1457  ;;  %v2505_v24 = vsel %vm2460_vm8, %v2440_v42, %v1648_v4  ;;  %v2247_v42 = vsel %vm2200_vm4, %v2182_v56, %v6964_v61 }
 0x371   :  { %v3364_v19 = vsel %vm3312_vm12, %v3274_v28, 0.0  ;;  %1091 = vrot.lane.b32.xlu1 %v6972_v60, %s3946_s20  ;;  %v2441_v20 = vsel %vm2395_vm7, %v2376_v47, %v1458_v40 }
 0x372   :  { %v3365_v9 = vadd.f32 %v3364_v19, %v3363_v21  ;;  %901 = vrot.lane.b32.xlu0 %v526_v36, %s3945_s18  ;;  %v527_v21 = vrot.slane %v6972_v60, 2  ;;  %v7056_v19 = vld [vmem:[%s7561_s0 + $0x2e8] sm:$0xff] }
 0x373   :  { %v6983_v17 = vpop.permute.xlu1 %1075  ;;  %v532_v30 = vrot.slane %v7056_v19, 2 }
 0x374   :  { %v6985_v63 = vpop.permute.xlu0 %885  ;;  %v3367_v15 = vadd.f32 %v3366_v62, %v3365_v9  ;;  %v529_v31 = vsel %vm386_vm1, %v527_v21, %v528_v37 }
 0x375   :  { %1855 = vrot.lane.b32.xlu1 %v8064_v58, %s3950_s7 }
 0x376   :  { %1665 = vrot.lane.b32.xlu0 %v6992_v33, %s3949_s29 }
 0x377   :  { %v1840_v22 = vpop.permute.xlu1 %1839 }
 0x378   :  { %v1650_v3 = vpop.permute.xlu0 %1649  ;;  %v2570_v32 = vsel %vm2525_vm9, %v2505_v24, %v1840_v22 }
 0x379   :  { %1283 = vrot.lane.b32.xlu1 %v8064_v58, %s3947_s23  ;;  %v2506_v8 = vsel %vm2460_vm8, %v2441_v20, %v1650_v3  ;;  %v7075_v3 = vld [vmem:[%s7561_s0 + $0x2f0] sm:$0xff] }
 0x37a   :  { %1093 = vrot.lane.b32.xlu0 %v6992_v33, %s3946_s20  ;;  %v533_v53 = vrot.slane %v7075_v3, 2 }
 0x37b   :  { %v7010_v41 = vpop.permute.xlu1 %1267 }
 0x37c   :  { %v7014_v59 = vpop.permute.xlu0 %1077  ;;  %v534_v24 = vsel %vm386_vm1, %v532_v30, %v533_v53 }
 0x37d   :  { %2047 = vrot.lane.b32.xlu1 %v529_v31, %s3951_s1 }
 0x37e   :  { %1857 = vrot.lane.b32.xlu0 %v8066_v12, %s3950_s7 }
 0x37f   :  { %v2032_v13 = vpop.permute.xlu1 %2031 }
 0x380   :  { %v2635_v25 = vsel %vm2590_vm10, %v2570_v32, %v2032_v13  ;;  %v1842_v1 = vpop.permute.xlu0 %1841 }
 0x381   :  { %1475 = vrot.lane.b32.xlu1 %v529_v31, %s3948_s24  ;;  %3792 = vmatprep.mubr.msk.f32.mxu1 %vm2666_vm11, %v2635_v25  ;;  %v2571_v44 = vsel %vm2525_vm9, %v2506_v8, %v1842_v1  ;;  %v8070_v1 = vld [vmem:[#allocation76_spill] sm:$0xff] }
 0x382   :  { %v3770_v36 = vpop.f32.mrf.mxu0  ;;  %1285 = vrot.lane.b32.xlu0 %v8066_v12, %s3947_s23  ;;  %v2312_v12 = vsel %vm2265_vm5, %v2247_v42, %v6983_v17 }
 0x383   :  { %v3075_v5 = vadd.f32 %v6683_v16, %v3770_v36  ;;  %v1460_v2 = vpop.permute.xlu1 %1459  ;;  %v2377_v13 = vsel %vm2330_vm6, %v2312_v12, %v7010_v41  ;;  %v3914_v41 = vld [vmem:[%s7561_s0 + $0x2f8] sm:$0x3] }
 0x384   :  { %v3069_v51 = vpop.f32.mrf.mxu0  ;;  %v7039_v38 = vpop.permute.xlu0 %1269  ;;  %v2442_v55 = vsel %vm2395_vm7, %v2377_v13, %v1460_v2  ;;  %v535_v36 = vrot.slane %v3914_v41, 2 }
 0x385   :  { %v3070_v57 = vadd.f32 %v6683_v16, %v3069_v51  ;;  %903 = vrot.lane.b32.xlu1 %v529_v31, %s3945_s18  ;;  %v3277_v49 = vmax.f32 %v3075_v5, 0.0 }
 0x386   :  { %2049 = vrot.lane.b32.xlu0 %v531_v18, %s3951_s1 }
 0x387   :  { %v3276_v43 = vmax.f32 %v3070_v57, 0.0  ;;  %v7048_v46 = vpop.permute.xlu1 %887  ;;  %v3370_v9 = vsel %vm3312_vm12, %v3277_v49, 0.0 }
 0x388   :  { %v2034_v28 = vpop.permute.xlu0 %2033 }
 0x389   :  { %v3368_v4 = vsel %vm3312_vm12, %v3276_v43, 0.0  ;;  %v2636_v10 = vsel %vm2590_vm10, %v2571_v44, %v2034_v28  ;;  %1667 = vrot.lane.b32.xlu1 %v7056_v19, %s3949_s29 }
 0x38a   :  { %v3369_v40 = vadd.f32 %v3368_v4, %v3367_v15  ;;  %1477 = vrot.lane.b32.xlu0 %v531_v18, %s3948_s24  ;;  %3793 = vmatmul.mubr.msk.f32.gmra.mxu1 %vm2666_vm11, %v2636_v10  ;;  %v8068_v15 = vld [vmem:[#allocation78_spill] sm:$0xff] }
 0x38b   :  { %v1652_v62 = vpop.permute.xlu1 %1651 }
 0x38c   :  { %v1462_v58 = vpop.permute.xlu0 %1461  ;;  %v3371_v21 = vadd.f32 %v3370_v9, %v3369_v40  ;;  %v2507_v34 = vsel %vm2460_vm8, %v2442_v55, %v1652_v62  ;;  %v7140_v62 = vld [vmem:[%s7561_s0 + $0x300] sm:$0xff] }
 0x38d   :  { %1095 = vrot.lane.b32.xlu1 %v7056_v19, %s3946_s20 }
 0x38e   :  { %905 = vrot.lane.b32.xlu0 %v531_v18, %s3945_s18  ;;  %v8071_v18 = vld [vmem:[#allocation55_spill] sm:$0xff] }
 0x38f   :  { %v7066_v37 = vpop.permute.xlu1 %1079  ;;  %v2183_v48 = vsel %vm2135_vm3, %v6561_v26, %v8071_v18 }
 0x390   :  { %v7068_v22 = vpop.permute.xlu0 %889  ;;  %v2248_v57 = vsel %vm2200_vm4, %v2183_v48, %v6985_v63 }
 0x391   :  { %1859 = vrot.lane.b32.xlu1 %v8068_v15, %s3950_s7  ;;  %v2313_v8 = vsel %vm2265_vm5, %v2248_v57, %v7014_v59 }
 0x392   :  { %1669 = vrot.lane.b32.xlu0 %v7075_v3, %s3949_s29  ;;  %v2378_v26 = vsel %vm2330_vm6, %v2313_v8, %v7039_v38 }
 0x393   :  { %v1844_v6 = vpop.permute.xlu1 %1843  ;;  %v2443_v28 = vsel %vm2395_vm7, %v2378_v26, %v1462_v58 }
 0x394   :  { %v1654_v31 = vpop.permute.xlu0 %1653  ;;  %v2572_v17 = vsel %vm2525_vm9, %v2507_v34, %v1844_v6  ;;  %v7158_v6 = vld [vmem:[%s7561_s0 + $0x308] sm:$0xff] }
 0x395   :  { %1287 = vrot.lane.b32.xlu1 %v8068_v15, %s3947_s23  ;;  %v2508_v63 = vsel %vm2460_vm8, %v2443_v28, %v1654_v31  ;;  %v537_v31 = vrot.slane %v7140_v62, 2  ;;  %v538_v23 = vrot.slane %v7158_v6, 2 }
 0x396   :  { %1097 = vrot.lane.b32.xlu0 %v7075_v3, %s3946_s20 }
 0x397   :  { %v7093_v32 = vpop.permute.xlu1 %1271  ;;  %v539_v55 = vsel %vm386_vm1, %v537_v31, %v538_v23 }
 0x398   :  { %v7097_v14 = vpop.permute.xlu0 %1081 }
 0x399   :  { %2051 = vrot.lane.b32.xlu1 %v534_v24, %s3951_s1  ;;  %v3773_v61 = vpop.f32.mrf.mxu0 }
 0x39a   :  { %v3085_v25 = vadd.f32 %v6683_v16, %v3773_v61  ;;  %1861 = vrot.lane.b32.xlu0 %v8070_v1, %s3950_s7 }
 0x39b   :  { %v2036_v7 = vpop.permute.xlu1 %2035  ;;  %v3079_v29 = vpop.f32.mrf.mxu0 }
 0x39c   :  { %v2637_v0 = vsel %vm2590_vm10, %v2572_v17, %v2036_v7  ;;  %v3080_v5 = vadd.f32 %v6683_v16, %v3079_v29  ;;  %v1846_v2 = vpop.permute.xlu0 %1845  ;;  %v3279_v51 = vmax.f32 %v3085_v25, 0.0  ;;  %v536_v16 = vsel %vm386_vm1, %v533_v53, %v535_v36  ;;  %v8072_v53 = vld [vmem:[#allocation81_spill] sm:$0xff]  ;;  %v8074_v17 = vld [vmem:[#allocation80_spill] sm:$0xff] }
 0x39d   :  { %1479 = vrot.lane.b32.xlu1 %v534_v24, %s3948_s24  ;;  %3795 = vmatprep.mubr.msk.f32.mxu1 %vm2666_vm11, %v2637_v0  ;;  %v2573_v40 = vsel %vm2525_vm9, %v2508_v63, %v1846_v2  ;;  %v8075_v0 = vld [vmem:[#allocation117_spill] sm:$0xff] }
 0x39e   :  { %v3278_v47 = vmax.f32 %v3080_v5, 0.0  ;;  %1289 = vrot.lane.b32.xlu0 %v8070_v1, %s3947_s23  ;;  %v3374_v4 = vsel %vm3312_vm12, %v3279_v51, 0.0  ;;  %v2185_v5 = vsel %vm2135_vm3, %v6665_v27, %v8075_v0  ;;  %v7232_v63 = vld [vmem:[%s7561_s0 + $0x320] sm:$0xff] }
 0x39f   :  { %v1464_v20 = vpop.permute.xlu1 %1463  ;;  %v2250_v2 = vsel %vm2200_vm4, %v2185_v5, %v7068_v22 }
 0x3a0   :  { %v3372_v49 = vsel %vm3312_vm12, %v3278_v47, 0.0  ;;  %v1274_v43 = vpop.permute.xlu0 %1273  ;;  %v2315_v51 = vsel %vm2265_vm5, %v2250_v2, %v7097_v14  ;;  %v7214_v14 = vld [vmem:[%s7561_s0 + $0x318] sm:$0xff] }
 0x3a1   :  { %v3373_v44 = vadd.f32 %v3372_v49, %v3371_v21  ;;  %907 = vrot.lane.b32.xlu1 %v534_v24, %s3945_s18  ;;  %v8073_v24 = vld [vmem:[#allocation119_spill] sm:$0xff]  ;;  %v2380_v57 = vsel %vm2330_vm6, %v2315_v51, %v1274_v43 }
 0x3a2   :  { %2053 = vrot.lane.b32.xlu0 %v536_v16, %s3951_s1  ;;  %v2184_v12 = vsel %vm2135_vm3, %v6635_v11, %v8073_v24 }
 0x3a3   :  { %v7131_v10 = vadd.f32 %v3374_v4, %v3373_v44  ;;  %v7133_v59 = vpop.permute.xlu1 %891  ;;  %v2249_v13 = vsel %vm2200_vm4, %v2184_v12, %v7048_v46  ;;  %v8076_v4 = vld [vmem:[#allocation83_spill] sm:$0xff] }
 0x3a4   :  { %v2038_v9 = vpop.permute.xlu0 %2037  ;;  %v2314_v61 = vsel %vm2265_vm5, %v2249_v13, %v7066_v37  ;;  %v3917_v37 = vld [vmem:[%s7561_s0 + $0x310] sm:$0x3] }
 0x3a5   :  { %v2638_v38 = vsel %vm2590_vm10, %v2573_v40, %v2038_v9  ;;  %1671 = vrot.lane.b32.xlu1 %v7140_v62, %s3949_s29  ;;  %v2379_v25 = vsel %vm2330_vm6, %v2314_v61, %v7093_v32  ;;  %v540_v41 = vrot.slane %v3917_v37, 2  ;;  %v542_v40 = vrot.slane %v7214_v14, 2 }
 0x3a6   :  { %1481 = vrot.lane.b32.xlu0 %v536_v16, %s3948_s24  ;;  %3796 = vmatmul.mubr.msk.f32.gmra.mxu1 %vm2666_vm11, %v2638_v38  ;;  %v2444_v11 = vsel %vm2395_vm7, %v2379_v25, %v1464_v20  ;;  %v543_v9 = vrot.slane %v7232_v63, 2 }
 0x3a7   :  { %v1656_v58 = vpop.permute.xlu1 %1655  ;;  %v541_v48 = vsel %vm386_vm1, %v538_v23, %v540_v41 }
 0x3a8   :  { %v1466_v21 = vpop.permute.xlu0 %1465  ;;  %v2509_v46 = vsel %vm2460_vm8, %v2444_v11, %v1656_v58  ;;  %v544_v23 = vsel %vm386_vm1, %v542_v40, %v543_v9 }
 0x3a9   :  { %1099 = vrot.lane.b32.xlu1 %v7140_v62, %s3946_s20  ;;  %v2445_v20 = vsel %vm2395_vm7, %v2380_v57, %v1466_v21  ;;  %v8077_v21 = vld [vmem:[#allocation121_spill] sm:$0xff] }
 0x3aa   :  { %909 = vrot.lane.b32.xlu0 %v536_v16, %s3945_s18 }
 0x3ab   :  { %v7149_v15 = vpop.permute.xlu1 %1083 }
 0x3ac   :  { %v7151_v30 = vpop.permute.xlu0 %893 }
 0x3ad   :  { %1863 = vrot.lane.b32.xlu1 %v8072_v53, %s3950_s7 }
 0x3ae   :  { %1673 = vrot.lane.b32.xlu0 %v7158_v6, %s3949_s29 }
 0x3af   :  { %v1848_v56 = vpop.permute.xlu1 %1847 }
 0x3b0   :  { %v1658_v42 = vpop.permute.xlu0 %1657  ;;  %v2574_v7 = vsel %vm2525_vm9, %v2509_v46, %v1848_v56  ;;  %v8079_v46 = vld [vmem:[#allocation120_spill] sm:$0xff] }
 0x3b1   :  { %1291 = vrot.lane.b32.xlu1 %v8072_v53, %s3947_s23  ;;  %v2510_v27 = vsel %vm2460_vm8, %v2445_v20, %v1658_v42  ;;  %v2186_v53 = vsel %vm2135_vm3, %v6721_v45, %v8077_v21 }
 0x3b2   :  { %1101 = vrot.lane.b32.xlu0 %v7158_v6, %s3946_s20  ;;  %v2251_v31 = vsel %vm2200_vm4, %v2186_v53, %v7133_v59  ;;  %v8078_v59 = vld [vmem:[#allocation82_spill] sm:$0xff] }
 0x3b3   :  { %v1276_v34 = vpop.permute.xlu1 %1275  ;;  %v2316_v56 = vsel %vm2265_vm5, %v2251_v31, %v7149_v15  ;;  %v3920_v15 = vld [vmem:[%s7561_s0 + $0x328] sm:$0x3] }
 0x3b4   :  { %v7178_v1 = vpop.permute.xlu0 %1085  ;;  %v2381_v24 = vsel %vm2330_vm6, %v2316_v56, %v1276_v34  ;;  %v545_v25 = vrot.slane %v3920_v15, 2 }
 0x3b5   :  { %2055 = vrot.lane.b32.xlu1 %v539_v55, %s3951_s1 }
 0x3b6   :  { %1865 = vrot.lane.b32.xlu0 %v8074_v17, %s3950_s7  ;;  %v546_v37 = vsel %vm386_vm1, %v543_v9, %v545_v25 }
 0x3b7   :  { %v2040_v29 = vpop.permute.xlu1 %2039 }
 0x3b8   :  { %v2639_v32 = vsel %vm2590_vm10, %v2574_v7, %v2040_v29  ;;  %v1850_v36 = vpop.permute.xlu0 %1849 }
 0x3b9   :  { %1483 = vrot.lane.b32.xlu1 %v539_v55, %s3948_s24  ;;  %3798 = vmatprep.mubr.msk.f32.mxu1 %vm2666_vm11, %v2639_v32  ;;  %v2575_v22 = vsel %vm2525_vm9, %v2510_v27, %v1850_v36 }
 0x3ba   :  { %1293 = vrot.lane.b32.xlu0 %v8074_v17, %s3947_s23  ;;  %v2187_v17 = vsel %vm2135_vm3, %v6748_v52, %v8079_v46  ;;  %v127_v46 = vld [vmem:[%s7561_s0 + $0x350] sm:$0xff] }
 0x3bb   :  { %v1468_v18 = vpop.permute.xlu1 %1467  ;;  %v2252_v7 = vsel %vm2200_vm4, %v2187_v17, %v7151_v30  ;;  %v123_v30 = vld [vmem:[%s7561_s0 + $0x330] sm:$0xff]  ;;  %v128_v17 = vld [vmem:[%s7561_s0 + $0x358] sm:$0x3] }
 0x3bc   :  { %v1278_v47 = vpop.permute.xlu0 %1277  ;;  %v2446_v45 = vsel %vm2395_vm7, %v2381_v24, %v1468_v18  ;;  %v2317_v41 = vsel %vm2265_vm5, %v2252_v7, %v7178_v1  ;;  %v124_v1 = vld [vmem:[%s7561_s0 + $0x338] sm:$0xff]  ;;  %v558_v51 = vrot.slane %v123_v30, 1 }
 0x3bd   :  { %911 = vrot.lane.b32.xlu1 %v539_v55, %s3945_s18  ;;  %v2382_v36 = vsel %vm2330_vm6, %v2317_v41, %v1278_v47  ;;  %v559_v47 = vrot.slane %v124_v1, 1  ;;  %v585_v41 = vrot.slane %v127_v46, 1 }
 0x3be   :  { %2057 = vrot.lane.b32.xlu0 %v541_v48, %s3951_s1 }
 0x3bf   :  { %v7207_v16 = vpop.permute.xlu1 %895  ;;  %v560_v27 = vsel %vm225_vm0, %v558_v51, %v559_v47 }
 0x3c0   :  { %v2042_v8 = vpop.permute.xlu0 %2041 }
 0x3c1   :  { %v2640_v49 = vsel %vm2590_vm10, %v2575_v22, %v2042_v8  ;;  %1675 = vrot.lane.b32.xlu1 %v7214_v14, %s3949_s29 }
 0x3c2   :  { %1485 = vrot.lane.b32.xlu0 %v541_v48, %s3948_s24  ;;  %3799 = vmatmul.mubr.msk.f32.gmra.mxu1 %vm2666_vm11, %v2640_v49  ;;  %v125_v49 = vld [vmem:[%s7561_s0 + $0x340] sm:$0x3] }
 0x3c3   :  { %v1660_v43 = vpop.permute.xlu1 %1659  ;;  %v561_v40 = vrot.slane %v125_v49, 1 }
 0x3c4   :  { %v1470_v26 = vpop.permute.xlu0 %1469  ;;  %v2511_v13 = vsel %vm2460_vm8, %v2446_v45, %v1660_v43  ;;  %v568_v43 = vrot.slane %v123_v30, 2 }
 0x3c5   :  { %1103 = vrot.lane.b32.xlu1 %v7214_v14, %s3946_s20  ;;  %v2447_v52 = vsel %vm2395_vm7, %v2382_v36, %v1470_v26  ;;  %v569_v26 = vrot.slane %v124_v1, 2  ;;  %v562_v56 = vsel %vm225_vm0, %v559_v47, %v561_v40  ;;  %v587_v36 = vrot.slane %v128_v17, 1 }
 0x3c6   :  { %913 = vrot.lane.b32.xlu0 %v541_v48, %s3945_s18 }
 0x3c7   :  { %v7223_v44 = vpop.permute.xlu1 %1087  ;;  %v570_v53 = vsel %vm386_vm1, %v568_v43, %v569_v26 }
 0x3c8   :  { %v7225_v28 = vpop.permute.xlu0 %897 }
 0x3c9   :  { %1867 = vrot.lane.b32.xlu1 %v8076_v4, %s3950_s7 }
 0x3ca   :  { %1677 = vrot.lane.b32.xlu0 %v7232_v63, %s3949_s29 }
 0x3cb   :  { %v1852_v38 = vpop.permute.xlu1 %1851 }
 0x3cc   :  { %v1662_v58 = vpop.permute.xlu0 %1661  ;;  %v2576_v55 = vsel %vm2525_vm9, %v2511_v13, %v1852_v38  ;;  %v8080_v38 = vld [vmem:[#allocation123_spill] sm:$0xff]  ;;  %v571_v13 = vrot.slane %v125_v49, 2 }
 0x3cd   :  { %1295 = vrot.lane.b32.xlu1 %v8076_v4, %s3947_s23  ;;  %v2512_v0 = vsel %vm2460_vm8, %v2447_v52, %v1662_v58  ;;  %v2188_v58 = vsel %vm2135_vm3, %v6804_v50, %v8080_v38 }
 0x3ce   :  { %1105 = vrot.lane.b32.xlu0 %v7232_v63, %s3946_s20  ;;  %v2253_v21 = vsel %vm2200_vm4, %v2188_v58, %v7207_v16  ;;  %v572_v25 = vsel %vm386_vm1, %v569_v26, %v571_v13 }
 0x3cf   :  { %v1280_v42 = vpop.permute.xlu1 %1279  ;;  %v2318_v31 = vsel %vm2265_vm5, %v2253_v21, %v7223_v44 }
 0x3d0   :  { %v7251_v12 = vpop.permute.xlu0 %1089  ;;  %v2383_v24 = vsel %vm2330_vm6, %v2318_v31, %v1280_v42  ;;  %v8081_v42 = vld [vmem:[#allocation122_spill] sm:$0xff] }
 0x3d1   :  { %2059 = vrot.lane.b32.xlu1 %v544_v23, %s3951_s1  ;;  %v2189_v15 = vsel %vm2135_vm3, %v6826_v35, %v8081_v42 }
 0x3d2   :  { %1869 = vrot.lane.b32.xlu0 %v8078_v59, %s3950_s7 }
 0x3d3   :  { %v2044_v61 = vpop.permute.xlu1 %2043 }
 0x3d4   :  { %v2641_v34 = vsel %vm2590_vm10, %v2576_v55, %v2044_v61  ;;  %v1854_v11 = vpop.permute.xlu0 %1853 }
 0x3d5   :  { %1487 = vrot.lane.b32.xlu1 %v544_v23, %s3948_s24  ;;  %3801 = vmatprep.mubr.msk.f32.mxu1 %vm2666_vm11, %v2641_v34  ;;  %v2577_v2 = vsel %vm2525_vm9, %v2512_v0, %v1854_v11  ;;  %v2254_v34 = vsel %vm2200_vm4, %v2189_v15, %v7225_v28 }
 0x3d6   :  { %1297 = vrot.lane.b32.xlu0 %v8078_v59, %s3947_s23  ;;  %v2319_v7 = vsel %vm2265_vm5, %v2254_v34, %v7251_v12 }
 0x3d7   :  { %v1472_v29 = vpop.permute.xlu1 %1471 }
 0x3d8   :  { %v7275_v32 = vpop.permute.xlu0 %1281  ;;  %v2448_v50 = vsel %vm2395_vm7, %v2383_v24, %v1472_v29  ;;  %v126_v29 = vld [vmem:[%s7561_s0 + $0x348] sm:$0xff] }
 0x3d9   :  { %915 = vrot.lane.b32.xlu1 %v544_v23, %s3945_s18  ;;  %v2384_v28 = vsel %vm2330_vm6, %v2319_v7, %v7275_v32  ;;  %v584_v12 = vrot.slane %v126_v29, 1  ;;  %v595_v32 = vrot.slane %v127_v46, 2  ;;  %v594_v51 = vrot.slane %v126_v29, 2 }
 0x3da   :  { %2061 = vrot.lane.b32.xlu0 %v546_v37, %s3951_s1 }
 0x3db   :  { %v7285_v5 = vpop.permute.xlu1 %899  ;;  %v596_v43 = vsel %vm386_vm1, %v594_v51, %v595_v32 }
 0x3dc   :  { %v2046_v18 = vpop.permute.xlu0 %2045 }
 0x3dd   :  { %v2642_v48 = vsel %vm2590_vm10, %v2577_v2, %v2046_v18  ;;  %1679 = vrot.lane.b32.xlu1 %v123_v30, %s3949_s29  ;;  %v588_v18 = vsel %vm225_vm0, %v585_v41, %v587_v36 }
 0x3de   :  { %1489 = vrot.lane.b32.xlu0 %v546_v37, %s3948_s24  ;;  %3802 = vmatmul.mubr.msk.f32.gmra.mxu1 %vm2666_vm11, %v2642_v48  ;;  %v597_v48 = vrot.slane %v128_v17, 2 }
 0x3df   :  { %v1664_v57 = vpop.permute.xlu1 %1663 }
 0x3e0   :  { %v1474_v20 = vpop.permute.xlu0 %1473  ;;  %v2513_v16 = vsel %vm2460_vm8, %v2448_v50, %v1664_v57  ;;  %v586_v57 = vsel %vm225_vm0, %v584_v12, %v585_v41 }
 0x3e1   :  { %1107 = vrot.lane.b32.xlu1 %v123_v30, %s3946_s20 }
 0x3e2   :  { %917 = vrot.lane.b32.xlu0 %v546_v37, %s3945_s18  ;;  %v2449_v37 = vsel %vm2395_vm7, %v2384_v28, %v1474_v20 }
 0x3e3   :  { %v7298_v22 = vpop.permute.xlu1 %1091 }
 0x3e4   :  { %v7300_v8 = vpop.permute.xlu0 %901 }
 0x3e5   :  { %1871 = vrot.lane.b32.xlu1 %v560_v27, %s3950_s7 }
 0x3e6   :  { %1681 = vrot.lane.b32.xlu0 %v124_v1, %s3949_s29 }
 0x3e7   :  { %v1856_v4 = vpop.permute.xlu1 %1855 }
 0x3e8   :  { %v1666_v9 = vpop.permute.xlu0 %1665  ;;  %v2578_v59 = vsel %vm2525_vm9, %v2513_v16, %v1856_v4 }
 0x3e9   :  { %1299 = vrot.lane.b32.xlu1 %v560_v27, %s3947_s23  ;;  %v2514_v52 = vsel %vm2460_vm8, %v2449_v37, %v1666_v9  ;;  %v598_v27 = vsel %vm386_vm1, %v595_v32, %v597_v48  ;;  %v8082_v9 = vld [vmem:[#allocation5_spill] sm:$0xff] }
 0x3ea   :  { %1109 = vrot.lane.b32.xlu0 %v124_v1, %s3946_s20  ;;  %v2190_v38 = vsel %vm2135_vm3, %v6887_v39, %v8082_v9  ;;  %v8084_v37 = vld [vmem:[#allocation125_spill] sm:$0xff] }
 0x3eb   :  { %v1284_v23 = vpop.permute.xlu1 %1283  ;;  %v2255_v58 = vsel %vm2200_vm4, %v2190_v38, %v7285_v5  ;;  %v8083_v5 = vld [vmem:[#allocation6_spill] sm:$0xff] }
 0x3ec   :  { %v7319_v45 = vpop.permute.xlu0 %1093  ;;  %v2320_v21 = vsel %vm2265_vm5, %v2255_v58, %v7298_v22  ;;  %v2191_v22 = vsel %vm2135_vm3, %v6908_v54, %v8083_v5 }
 0x3ed   :  { %2063 = vrot.lane.b32.xlu1 %v570_v53, %s3951_s1  ;;  %v2385_v31 = vsel %vm2330_vm6, %v2320_v21, %v1284_v23  ;;  %v2256_v23 = vsel %vm2200_vm4, %v2191_v22, %v7300_v8 }
 0x3ee   :  { %1873 = vrot.lane.b32.xlu0 %v562_v56, %s3950_s7 }
 0x3ef   :  { %v2048_v55 = vpop.permute.xlu1 %2047 }
 0x3f0   :  { %v2643_v44 = vsel %vm2590_vm10, %v2578_v59, %v2048_v55  ;;  %v1858_v61 = vpop.permute.xlu0 %1857 }
 0x3f1   :  { %1491 = vrot.lane.b32.xlu1 %v570_v53, %s3948_s24  ;;  %3804 = vmatprep.mubr.msk.f32.mxu1 %vm2666_vm11, %v2643_v44  ;;  %v2579_v0 = vsel %vm2525_vm9, %v2514_v52, %v1858_v61  ;;  %v2321_v44 = vsel %vm2265_vm5, %v2256_v23, %v7319_v45 }
 0x3f2   :  { %1301 = vrot.lane.b32.xlu0 %v562_v56, %s3947_s23 }
 0x3f3   :  { %v1476_v11 = vpop.permute.xlu1 %1475 }
 0x3f4   :  { %v1286_v35 = vpop.permute.xlu0 %1285  ;;  %v2450_v24 = vsel %vm2395_vm7, %v2385_v31, %v1476_v11 }
 0x3f5   :  { %1493 = vrot.lane.b32.xlu1 %v572_v25, %s3948_s24  ;;  %v2386_v42 = vsel %vm2330_vm6, %v2321_v44, %v1286_v35  ;;  %v2192_v35 = vsel %vm2135_vm3, %v6972_v60, %v8084_v37  ;;  %v8085_v60 = vld [vmem:[#allocation124_spill] sm:$0xff] }
 0x3f6   :  { %2065 = vrot.lane.b32.xlu0 %v572_v25, %s3951_s1 }
 0x3f7   :  { %v904_v30 = vpop.permute.xlu1 %903 }
 0x3f8   :  { %v2050_v1 = vpop.permute.xlu0 %2049  ;;  %v2257_v41 = vsel %vm2200_vm4, %v2192_v35, %v904_v30  ;;  %v2193_v30 = vsel %vm2135_vm3, %v6992_v33, %v8085_v60 }
 0x3f9   :  { %v2644_v2 = vsel %vm2590_vm10, %v2579_v0, %v2050_v1  ;;  %1685 = vrot.lane.b32.xlu1 %v127_v46, %s3949_s29 }
 0x3fa   :  { %1683 = vrot.lane.b32.xlu0 %v126_v29, %s3949_s29  ;;  %3805 = vmatmul.mubr.msk.f32.gmra.mxu1 %vm2666_vm11, %v2644_v2 }
 0x3fb   :  { %v1668_v47 = vpop.permute.xlu1 %1667 }
 0x3fc   :  { %v1478_v20 = vpop.permute.xlu0 %1477  ;;  %v2515_v50 = vsel %vm2460_vm8, %v2450_v24, %v1668_v47  ;;  %v8086_v24 = vld [vmem:[#allocation127_spill] sm:$0xff] }
 0x3fd   :  { %1877 = vrot.lane.b32.xlu1 %v588_v18, %s3950_s7  ;;  %v2451_v15 = vsel %vm2395_vm7, %v2386_v42, %v1478_v20 }
 0x3fe   :  { %1875 = vrot.lane.b32.xlu0 %v586_v57, %s3950_s7 }
 0x3ff   :  { %v1096_v49 = vpop.permute.xlu1 %1095 }
 0x400   :  { %v906_v26 = vpop.permute.xlu0 %905  ;;  %v2322_v36 = vsel %vm2265_vm5, %v2257_v41, %v1096_v49 }
 0x401   :  { %2069 = vrot.lane.b32.xlu1 %v598_v27, %s3951_s1  ;;  %v2258_v47 = vsel %vm2200_vm4, %v2193_v30, %v906_v26 }
 0x402   :  { %2067 = vrot.lane.b32.xlu0 %v596_v43, %s3951_s1 }
 0x403   :  { %v1860_v4 = vpop.permute.xlu1 %1859 }
 0x404   :  { %v1670_v40 = vpop.permute.xlu0 %1669  ;;  %v2580_v16 = vsel %vm2525_vm9, %v2515_v50, %v1860_v4  ;;  %v2194_v50 = vsel %vm2135_vm3, %v7056_v19, %v8086_v24  ;;  %v8087_v19 = vld [vmem:[#allocation126_spill] sm:$0xff] }
 0x405   :  { %v2516_v25 = vsel %vm2460_vm8, %v2451_v15, %v1670_v40  ;;  %v2195_v15 = vsel %vm2135_vm3, %v7075_v3, %v8087_v19 }
 0x407   :  { %v1288_v53 = vpop.permute.xlu1 %1287 }
 0x408   :  { %v1098_v56 = vpop.permute.xlu0 %1097  ;;  %v2387_v12 = vsel %vm2330_vm6, %v2322_v36, %v1288_v53 }
 0x409   :  { %v2323_v20 = vsel %vm2265_vm5, %v2258_v47, %v1098_v56 }
 0x40b   :  { %v2052_v13 = vpop.permute.xlu1 %2051 }
 0x40c   :  { %v2645_v59 = vsel %vm2590_vm10, %v2580_v16, %v2052_v13  ;;  %v1862_v39 = vpop.permute.xlu0 %1861 }
 0x40d   :  { %3807 = vmatprep.mubr.msk.f32.mxu1 %vm2666_vm11, %v2645_v59  ;;  %v2581_v11 = vsel %vm2525_vm9, %v2516_v25, %v1862_v39 }
 0x40f   :  { %v1480_v55 = vpop.permute.xlu1 %1479 }
 0x410   :  { %v1290_v61 = vpop.permute.xlu0 %1289  ;;  %v2452_v1 = vsel %vm2395_vm7, %v2387_v12, %v1480_v55  ;;  %v8088_v12 = vld [vmem:[#allocation128_spill] sm:$0xff] }
 0x411   :  { %v2388_v49 = vsel %vm2330_vm6, %v2323_v20, %v1290_v61 }
 0x413   :  { %v908_v34 = vpop.permute.xlu1 %907 }
 0x414   :  { %v2054_v46 = vpop.permute.xlu0 %2053  ;;  %v2259_v16 = vsel %vm2200_vm4, %v2194_v50, %v908_v34  ;;  %v8091_v50 = vld [vmem:[#allocation130_spill] sm:$0xff] }
 0x415   :  { %v2646_v54 = vsel %vm2590_vm10, %v2581_v11, %v2054_v46 }
 0x416   :  { %3808 = vmatmul.mubr.msk.f32.gmra.mxu1 %vm2666_vm11, %v2646_v54 }
 0x417   :  { %v1672_v8 = vpop.permute.xlu1 %1671 }
 0x418   :  { %v1482_v17 = vpop.permute.xlu0 %1481  ;;  %v2517_v2 = vsel %vm2460_vm8, %v2452_v1, %v1672_v8 }
 0x419   :  { %v2453_v43 = vsel %vm2395_vm7, %v2388_v49, %v1482_v17 }
 0x41b   :  { %v1100_v7 = vpop.permute.xlu1 %1099 }
 0x41c   :  { %v910_v29 = vpop.permute.xlu0 %909  ;;  %v2324_v13 = vsel %vm2265_vm5, %v2259_v16, %v1100_v7  ;;  %v2198_v16 = vsel %vm2135_vm3, %v7214_v14, %v8091_v50 }
 0x41d   :  { %v2260_v25 = vsel %vm2200_vm4, %v2195_v15, %v910_v29 }
 0x41f   :  { %v1864_v45 = vpop.permute.xlu1 %1863 }
 0x420   :  { %v1674_v28 = vpop.permute.xlu0 %1673  ;;  %v2582_v32 = vsel %vm2525_vm9, %v2517_v2, %v1864_v45 }
 0x421   :  { %v2518_v4 = vsel %vm2460_vm8, %v2453_v43, %v1674_v28 }
 0x423   :  { %v1292_v52 = vpop.permute.xlu1 %1291 }
 0x424   :  { %v1102_v0 = vpop.permute.xlu0 %1101  ;;  %v2389_v39 = vsel %vm2330_vm6, %v2324_v13, %v1292_v52 }
 0x425   :  { %v2325_v11 = vsel %vm2265_vm5, %v2260_v25, %v1102_v0  ;;  %v2196_v0 = vsel %vm2135_vm3, %v7140_v62, %v8088_v12  ;;  %v8089_v62 = vld [vmem:[#allocation8_spill] sm:$0xff] }
 0x427   :  { %v2056_v18 = vpop.permute.xlu1 %2055 }
 0x428   :  { %v2647_v48 = vsel %vm2590_vm10, %v2582_v32, %v2056_v18  ;;  %v1866_v51 = vpop.permute.xlu0 %1865 }
 0x429   :  { %3810 = vmatprep.mubr.msk.f32.mxu1 %vm2666_vm11, %v2647_v48  ;;  %v2583_v9 = vsel %vm2525_vm9, %v2518_v4, %v1866_v51 }
 0x42b   :  { %v1484_v57 = vpop.permute.xlu1 %1483 }
 0x42c   :  { %v1294_v27 = vpop.permute.xlu0 %1293  ;;  %v2454_v22 = vsel %vm2395_vm7, %v2389_v39, %v1484_v57 }
 0x42d   :  { %v2390_v54 = vsel %vm2330_vm6, %v2325_v11, %v1294_v27  ;;  %v2197_v27 = vsel %vm2135_vm3, %v7158_v6, %v8089_v62 }
 0x42f   :  { %v912_v40 = vpop.permute.xlu1 %911 }
 0x430   :  { %v2058_v38 = vpop.permute.xlu0 %2057  ;;  %v2261_v1 = vsel %vm2200_vm4, %v2196_v0, %v912_v40 }
 0x431   :  { %v2648_v58 = vsel %vm2590_vm10, %v2583_v9, %v2058_v38 }
 0x432   :  { %3811 = vmatmul.mubr.msk.f32.gmra.mxu1 %vm2666_vm11, %v2648_v58 }
 0x433   :  { %v1676_v33 = vpop.permute.xlu1 %1675 }
 0x434   :  { %v1486_v26 = vpop.permute.xlu0 %1485  ;;  %v2519_v23 = vsel %vm2460_vm8, %v2454_v22, %v1676_v33 }
 0x435   :  { %v2455_v8 = vsel %vm2395_vm7, %v2390_v54, %v1486_v26  ;;  %v3453_v54 = vld [vmem:[%s7564_s3] sm:$0xff] }
 0x437   :  { %v1104_v21 = vpop.permute.xlu1 %1103 }
 0x438   :  { %v914_v53 = vpop.permute.xlu0 %913  ;;  %v2326_v2 = vsel %vm2265_vm5, %v2261_v1, %v1104_v21 }
 0x439   :  { %v2262_v49 = vsel %vm2200_vm4, %v2197_v27, %v914_v53 }
 0x43b   :  { %v1868_v31 = vpop.permute.xlu1 %1867 }
 0x43c   :  { %v1678_v56 = vpop.permute.xlu0 %1677  ;;  %v2584_v55 = vsel %vm2525_vm9, %v2519_v23, %v1868_v31 }
 0x43d   :  { %v2520_v17 = vsel %vm2460_vm8, %v2455_v8, %v1678_v56  ;;  %v8090_v56 = vld [vmem:[#allocation129_spill] sm:$0xff]  ;;  %v3952_v8 = vmov 0.0  }
 0x43e   :  { %v2199_v24 = vsel %vm2135_vm3, %v7232_v63, %v8090_v56  ;;  %3822 = vmatprep.subr.mxu1 %v3952_v8 }
 0x43f   :  { %v1296_v59 = vpop.permute.xlu1 %1295  ;;  %3823 = vmatpush3.msra.mxu1 %v3453_v54 }
 0x440   :  { %v1106_v5 = vpop.permute.xlu0 %1105  ;;  %v2391_v18 = vsel %vm2330_vm6, %v2326_v2, %v1296_v59 }
 0x441   :  { %v2327_v4 = vsel %vm2265_vm5, %v2262_v49, %v1106_v5 }
 0x443   :  { %v2060_v44 = vpop.permute.xlu1 %2059 }
 0x444   :  { %v2649_v61 = vsel %vm2590_vm10, %v2584_v55, %v2060_v44  ;;  %v1870_v42 = vpop.permute.xlu0 %1869 }
 0x445   :  { %3813 = vmatprep.mubr.msk.f32.mxu1 %vm2666_vm11, %v2649_v61  ;;  %v2585_v45 = vsel %vm2525_vm9, %v2520_v17, %v1870_v42  ;;  %v3776_v17 = vpop.f32.mrf.mxu0 }
 0x447   :  { %v1488_v34 = vpop.permute.xlu1 %1487 }
 0x448   :  { %v1298_v46 = vpop.permute.xlu0 %1297  ;;  %v2456_v51 = vsel %vm2395_vm7, %v2391_v18, %v1488_v34 }
 0x449   :  { %v2392_v9 = vsel %vm2330_vm6, %v2327_v4, %v1298_v46 }
 0x44b   :  { %v916_v7 = vpop.permute.xlu1 %915 }
 0x44c   :  { %v2062_v28 = vpop.permute.xlu0 %2061  ;;  %v2263_v59 = vsel %vm2200_vm4, %v2198_v16, %v916_v7  ;;  %v3779_v7 = vpop.f32.mrf.mxu1 }
 0x44d   :  { %v2650_v37 = vsel %vm2590_vm10, %v2585_v45, %v2062_v28  ;;  %v3089_v45 = vpop.f32.mrf.mxu0 }
 0x44e   :  { %3814 = vmatmul.mubr.msk.f32.gmra.mxu1 %vm2666_vm11, %v2650_v37  ;;  %v3099_v28 = vpop.f32.mrf.mxu1  ;;  %v7486_v37 = vld [vmem:[%s7563_s2] ss:$0 sm:$0xff] }
 0x44f   :  { %v1680_v3 = vpop.permute.xlu1 %1679 }
 0x450   :  { %v1490_v29 = vpop.permute.xlu0 %1489  ;;  %v2521_v60 = vsel %vm2460_vm8, %v2456_v51, %v1680_v3  ;;  %v3090_v3 = vadd.f32 %v7486_v37, %v3089_v45 }
 0x451   :  { %v2457_v38 = vsel %vm2395_vm7, %v2392_v9, %v1490_v29  ;;  %v3782_v29 = vpop.f32.mrf.mxu1 }
 0x452   :  { %v3115_v27 = vadd.f32 %v7486_v37, %v3782_v29 }
 0x453   :  { %v1108_v35 = vpop.permute.xlu1 %1107 }
 0x454   :  { %v918_v41 = vpop.permute.xlu0 %917  ;;  %v2328_v22 = vsel %vm2265_vm5, %v2263_v59, %v1108_v35  ;;  %v3095_v35 = vadd.f32 %v7486_v37, %v3776_v17 }
 0x455   :  { %v2264_v13 = vsel %vm2200_vm4, %v2199_v24, %v918_v41  ;;  %v3100_v41 = vadd.f32 %v7486_v37, %v3099_v28 }
 0x456   :  { %v3281_v12 = vmax.f32 %v3095_v35, 0.0 }
 0x457   :  { %v1872_v36 = vpop.permute.xlu1 %1871  ;;  %v3282_v0 = vmax.f32 %v3100_v41, 0.0 }
 0x458   :  { %v1682_v52 = vpop.permute.xlu0 %1681  ;;  %v2586_v30 = vsel %vm2525_vm9, %v2521_v60, %v1872_v36  ;;  %v3280_v36 = vmax.f32 %v3090_v3, 0.0 }
 0x459   :  { %v2522_v58 = vsel %vm2460_vm8, %v2457_v38, %v1682_v52  ;;  %v3109_v52 = vpop.f32.mrf.mxu1  ;;  %v3385_v51 = vsel %vm3312_vm12, %v3282_v0, 0.0  ;;  %v3285_v38 = vmax.f32 %v3115_v27, 0.0 }
 0x45a   :  { %v3382_v2 = vsel %vm3312_vm12, %v3280_v36, 0.0  ;;  %v3110_v18 = vadd.f32 %v7486_v37, %v3109_v52 }
 0x45b   :  { %v1300_v32 = vpop.permute.xlu1 %1299  ;;  %v3785_v1 = vpop.f32.mrf.mxu1 }
 0x45c   :  { %v1110_v48 = vpop.permute.xlu0 %1109  ;;  %v2393_v44 = vsel %vm2330_vm6, %v2328_v22, %v1300_v32  ;;  %v3105_v32 = vadd.f32 %v7486_v37, %v3779_v7 }
 0x45d   :  { %v2329_v39 = vsel %vm2265_vm5, %v2264_v13, %v1110_v48  ;;  %v3383_v48 = vsel %vm3312_vm12, %v3281_v12, 0.0 }
 0x45e   :  { %v3384_v60 = vadd.f32 %v3383_v48, %v3382_v2 }
 0x45f   :  { %v2064_v47 = vpop.permute.xlu1 %2063 }
 0x460   :  { %v2651_v57 = vsel %vm2590_vm10, %v2586_v30, %v2064_v47  ;;  %v1874_v20 = vpop.permute.xlu0 %1873  ;;  %v3119_v30 = vpop.f32.mrf.mxu1  ;;  %v3283_v47 = vmax.f32 %v3105_v32, 0.0 }
 0x461   :  { %3816 = vmatprep.mubr.msk.f32.mxu1 %vm2666_vm11, %v2651_v57  ;;  %v2587_v26 = vsel %vm2525_vm9, %v2522_v58, %v1874_v20  ;;  %v3284_v57 = vmax.f32 %v3110_v18, 0.0  ;;  %v3386_v20 = vadd.f32 %v3385_v51, %v3384_v60  ;;  %v3120_v49 = vadd.f32 %v7486_v37, %v3119_v30 }
 0x462   :  { %v3788_v62 = vpop.f32.mrf.mxu1 }
 0x463   :  { %v1492_v43 = vpop.permute.xlu1 %1491  ;;  %v3389_v4 = vsel %vm3312_vm12, %v3284_v57, 0.0  ;;  %v3286_v58 = vmax.f32 %v3120_v49, 0.0 }
 0x464   :  { %v1302_v40 = vpop.permute.xlu0 %1301  ;;  %v2458_v61 = vsel %vm2395_vm7, %v2393_v44, %v1492_v43  ;;  %v3387_v43 = vsel %vm3312_vm12, %v3283_v47, 0.0  ;;  %v3129_v9 = vpop.f32.mrf.mxu1 }
 0x465   :  { %v2394_v23 = vsel %vm2330_vm6, %v2329_v39, %v1302_v40  ;;  %v3388_v40 = vadd.f32 %v3387_v43, %v3386_v20  ;;  %v3135_v39 = vadd.f32 %v7486_v37, %v3788_v62 }
 0x467   :  { %v1494_v33 = vpop.permute.xlu1 %1493 }
 0x468   :  { %v2066_v21 = vpop.permute.xlu0 %2065  ;;  %v2459_v63 = vsel %vm2395_vm7, %v2394_v23, %v1494_v33  ;;  %v3390_v33 = vadd.f32 %v3389_v4, %v3388_v40 }
 0x469   :  { %v2652_v31 = vsel %vm2590_vm10, %v2587_v26, %v2066_v21  ;;  %v3791_v26 = vpop.f32.mrf.mxu1  ;;  %v3125_v21 = vadd.f32 %v7486_v37, %v3785_v1 }
 0x46a   :  { %3817 = vmatmul.mubr.msk.f32.gmra.mxu1 %vm2666_vm11, %v2652_v31  ;;  %v3130_v31 = vadd.f32 %v7486_v37, %v3129_v9 }
 0x46b   :  { %v1686_v6 = vpop.permute.xlu1 %1685  ;;  %v3139_v24 = vpop.f32.mrf.mxu1  ;;  %v3287_v50 = vmax.f32 %v3125_v21, 0.0 }
 0x46c   :  { %v1684_v53 = vpop.permute.xlu0 %1683  ;;  %v2524_v14 = vsel %vm2460_vm8, %v2459_v63, %v1686_v6  ;;  %v3391_v6 = vsel %vm3312_vm12, %v3285_v38, 0.0  ;;  %v3288_v16 = vmax.f32 %v3130_v31, 0.0  ;;  %v3289_v63 = vmax.f32 %v3135_v39, 0.0 }
 0x46d   :  { %v2523_v42 = vsel %vm2460_vm8, %v2458_v61, %v1684_v53  ;;  %v3393_v53 = vsel %vm3312_vm12, %v3286_v58, 0.0  ;;  %v3392_v56 = vadd.f32 %v3391_v6, %v3390_v33  ;;  %v3794_v59 = vpop.f32.mrf.mxu1  ;;  %v3395_v22 = vsel %vm3312_vm12, %v3287_v50, 0.0 }
 0x46e   :  { %v3397_v23 = vsel %vm3312_vm12, %v3288_v16, 0.0  ;;  %v3155_v45 = vadd.f32 %v7486_v37, %v3794_v59 }
 0x46f   :  { %v1878_v5 = vpop.permute.xlu1 %1877  ;;  %v3394_v13 = vadd.f32 %v3393_v53, %v3392_v56  ;;  %v3149_v44 = vpop.f32.mrf.mxu1 }
 0x470   :  { %v1876_v55 = vpop.permute.xlu0 %1875  ;;  %v2589_v19 = vsel %vm2525_vm9, %v2524_v14, %v1878_v5  ;;  %v3140_v5 = vadd.f32 %v7486_v37, %v3139_v24  ;;  %v3293_v36 = vmax.f32 %v3155_v45, 0.0 }
 0x471   :  { %v2588_v25 = vsel %vm2525_vm9, %v2523_v42, %v1876_v55  ;;  %v3396_v55 = vadd.f32 %v3395_v22, %v3394_v13  ;;  %v3797_v42 = vpop.f32.mrf.mxu1 }
 0x472   :  { %v3290_v61 = vmax.f32 %v3140_v5, 0.0  ;;  %v3165_v1 = vadd.f32 %v7486_v37, %v3797_v42  ;;  %v3407_v32 = vsel %vm3312_vm12, %v3293_v36, 0.0 }
 0x473   :  { %v2070_v15 = vpop.permute.xlu1 %2069  ;;  %v3398_v14 = vadd.f32 %v3397_v23, %v3396_v55 }
 0x474   :  { %v2654_v34 = vsel %vm2590_vm10, %v2589_v19, %v2070_v15  ;;  %v2068_v11 = vpop.permute.xlu0 %2067  ;;  %v3145_v19 = vadd.f32 %v7486_v37, %v3791_v26  ;;  %v3150_v15 = vadd.f32 %v7486_v37, %v3149_v44  ;;  %v3295_v60 = vmax.f32 %v3165_v1, 0.0 }
 0x475   :  { %v2653_v46 = vsel %vm2590_vm10, %v2588_v25, %v2068_v11  ;;  %v3399_v25 = vsel %vm3312_vm12, %v3289_v63, 0.0 }
 0x476   :  { %3819 = vmatprep.mubr.msk.f32.mxu1 %vm2666_vm11, %v2653_v46  ;;  %v3400_v11 = vadd.f32 %v3399_v25, %v3398_v14  ;;  %v3159_v46 = vpop.f32.mrf.mxu1  ;;  %v3291_v54 = vmax.f32 %v3145_v19, 0.0  ;;  %v3411_v27 = vsel %vm3312_vm12, %v3295_v60, 0.0 }
 0x477   :  { %3820 = vmatmul.mubr.msk.f32.gmra.mxu1 %vm2666_vm11, %v2654_v34  ;;  %v3401_v34 = vsel %vm3312_vm12, %v3290_v61, 0.0  ;;  %v3160_v28 = vadd.f32 %v7486_v37, %v3159_v46 }
 0x478   :  { %3824 = vmatprep.mubr.msk.f32.mxu1 %vm3953_vm13, %v3952_v8  ;;  %v3292_v8 = vmax.f32 %v3150_v15, 0.0  ;;  %v3402_v17 = vadd.f32 %v3401_v34, %v3400_v11  ;;  %v3403_v3 = vsel %vm3312_vm12, %v3291_v54, 0.0 }
 0x479   :  { %v3294_v52 = vmax.f32 %v3160_v28, 0.0 }
 0x47a   :  { %v3405_v29 = vsel %vm3312_vm12, %v3292_v8, 0.0  ;;  %v3404_v35 = vadd.f32 %v3403_v3, %v3402_v17 }
 0x47b   :  { %v3409_v18 = vsel %vm3312_vm12, %v3294_v52, 0.0 }
 0x47c   :  { %v3406_v12 = vadd.f32 %v3405_v29, %v3404_v35 }
 0x47e   :  { %v3408_v48 = vadd.f32 %v3407_v32, %v3406_v12 }
 0x480   :  { %v3410_v47 = vadd.f32 %v3409_v18, %v3408_v48 }
 0x482   :  { %v3800_v7 = vpop.f32.mrf.mxu1  ;;  %v3412_v43 = vadd.f32 %v3411_v27, %v3410_v47  ;;  %v3376_v47 = vrot.slane %v7131_v10, 4 }
 0x483   :  { %v3175_v20 = vadd.f32 %v7486_v37, %v3800_v7 }
 0x484   :  { %v3169_v41 = vpop.f32.mrf.mxu1 }
 0x485   :  { %v3170_v2 = vadd.f32 %v7486_v37, %v3169_v41  ;;  %v3297_v40 = vmax.f32 %v3175_v20, 0.0 }
 0x487   :  { %v3296_v30 = vmax.f32 %v3170_v2, 0.0  ;;  %v3415_v21 = vsel %vm3312_vm12, %v3297_v40, 0.0  ;;  %v3377_v40 = vadd.f32 %v3376_v47, %v7131_v10 }
 0x489   :  { %v3413_v49 = vsel %vm3312_vm12, %v3296_v30, 0.0 }
 0x48a   :  { %v3414_v38 = vadd.f32 %v3413_v49, %v3412_v43 }
 0x48c   :  { %v3416_v6 = vadd.f32 %v3415_v21, %v3414_v38  ;;  %v3378_v21 = vrot.slane %v3377_v40, 2 }
 0x49e   :  { %v3803_v0 = vpop.f32.mrf.mxu1 }
 0x49f   :  { %v3185_v33 = vadd.f32 %v7486_v37, %v3803_v0 }
 0x4a0   :  { %v3179_v51 = vpop.f32.mrf.mxu1 }
 0x4a1   :  { %v3180_v62 = vadd.f32 %v7486_v37, %v3179_v51  ;;  %v3299_v56 = vmax.f32 %v3185_v33, 0.0 }
 0x4a3   :  { %v3298_v9 = vmax.f32 %v3180_v62, 0.0  ;;  %v3419_v39 = vsel %vm3312_vm12, %v3299_v56, 0.0  ;;  %v3379_v56 = vadd.f32 %v3378_v21, %v3377_v40 }
 0x4a5   :  { %v3417_v31 = vsel %vm3312_vm12, %v3298_v9, 0.0 }
 0x4a6   :  { %v3418_v50 = vadd.f32 %v3417_v31, %v3416_v6 }
 0x4a8   :  { %v3420_v22 = vadd.f32 %v3419_v39, %v3418_v50 }
 0x4ba   :  { %v3806_v57 = vpop.f32.mrf.mxu1 }
 0x4bb   :  { %v3195_v13 = vadd.f32 %v7486_v37, %v3806_v57 }
 0x4bc   :  { %v3189_v4 = vpop.f32.mrf.mxu1 }
 0x4bd   :  { %v3190_v26 = vadd.f32 %v7486_v37, %v3189_v4  ;;  %v3301_v55 = vmax.f32 %v3195_v13, 0.0 }
 0x4bf   :  { %v3300_v24 = vmax.f32 %v3190_v26, 0.0  ;;  %v3423_v19 = vsel %vm3312_vm12, %v3301_v55, 0.0  ;;  %v3646_v55 = vld [vmem:[%s7565_s4] ss:$0 sm:$0xff]  ;;  %s3954_s4 = smov [#allocation2]  }
 0x4c0   :  { %s3572_s1 = sshll.u32 %s3954_s4, 4  ;;  %s3573_s1 = int_to_ptr.vmem [resolvable:$true] %s3572_s1 }
 0x4c1   :  { %v3421_v5 = vsel %vm3312_vm12, %v3300_v24, 0.0  ;;  %s3922_s8 = scalar_lea.vmem %s3573_s1, 16  ;;  %s3926_s9 = scalar_lea.vmem %s3573_s1, 32 }
 0x4c2   :  { %v3422_v63 = vadd.f32 %v3421_v5, %v3420_v22  ;;  %p3923_p0 = scmp.ne.s32.totalorder %s3573_s1, %s3922_s8  ;;  %p3927_p1 = scmp.lt.s32.totalorder %s3573_s1, %s3573_s1 }
 0x4c3   :  { %p3928_p2 = scmp.lt.s32.totalorder %s3926_s9, %s3922_s8 }
 0x4c4   :  { %v3424_v25 = vadd.f32 %v3423_v19, %v3422_v63 }
 0x4c5   :  { %p3929_p3 = por %p3928_p2, %p3927_p1 }
 0x4c7   :  { %p3930_p4 = pnand %p3929_p3, %p3923_p0 }
 0x4d6   :  { %v3809_v58 = vpop.f32.mrf.mxu1 }
 0x4d7   :  { %v3205_v14 = vadd.f32 %v7486_v37, %v3809_v58 }
 0x4d8   :  { %v3199_v53 = vpop.f32.mrf.mxu1 }
 0x4d9   :  { %v3200_v59 = vadd.f32 %v7486_v37, %v3199_v53  ;;  %v3303_v11 = vmax.f32 %v3205_v14, 0.0 }
 0x4db   :  { %v3302_v44 = vmax.f32 %v3200_v59, 0.0  ;;  %v3427_v7 = vsel %vm3312_vm12, %v3303_v11, 0.0 }
 0x4dd   :  { %v3425_v15 = vsel %vm3312_vm12, %v3302_v44, 0.0 }
 0x4de   :  { %v3426_v54 = vadd.f32 %v3425_v15, %v3424_v25 }
 0x4e0   :  { %v3428_v3 = vadd.f32 %v3427_v7, %v3426_v54 }
 0x4f2   :  { %v3812_v16 = vpop.f32.mrf.mxu1 }
 0x4f3   :  { %v3215_v8 = vadd.f32 %v7486_v37, %v3812_v16  ;;  %v3380_v16 = vrot.slane %v3379_v56, 1 }
 0x4f4   :  { %v3209_v23 = vpop.f32.mrf.mxu1 }
 0x4f5   :  { %v3210_v42 = vadd.f32 %v7486_v37, %v3209_v23  ;;  %v3305_v29 = vmax.f32 %v3215_v8, 0.0  ;;  %v3381_v59 = vadd.f32 %v3380_v16, %v3379_v56 }
 0x4f7   :  { %v3304_v46 = vmax.f32 %v3210_v42, 0.0  ;;  %v3431_v0 = vsel %vm3312_vm12, %v3305_v29, 0.0  ;;  %v3451_v5 = vmul.f32 0.00390625, %v3381_v59  ;;  %v3537_v42 = vlaneseq }
 0x4f9   :  { %v3429_v45 = vsel %vm3312_vm12, %v3304_v46, 0.0  ;;  %v3538_v19 = vand.u32 127, %v3537_v42 }
 0x4fa   :  { %v3430_v36 = vadd.f32 %v3429_v45, %v3428_v3  ;;  %v3561_v45 = vshrl.u32 %v3537_v42, 7 }
 0x4fc   :  { %v3432_v2 = vadd.f32 %v3431_v0, %v3430_v36  ;;  %v3562_v29 = vsub.s32 %v3538_v19, %v3561_v45 }
 0x50e   :  { %v3815_v61 = vpop.f32.mrf.mxu1 }
 0x50f   :  { %v3225_v52 = vadd.f32 %v7486_v37, %v3815_v61 }
 0x510   :  { %v3219_v34 = vpop.f32.mrf.mxu1 }
 0x511   :  { %v3220_v17 = vadd.f32 %v7486_v37, %v3219_v34  ;;  %v3307_v32 = vmax.f32 %v3225_v52, 0.0 }
 0x513   :  { %v3306_v35 = vmax.f32 %v3220_v17, 0.0  ;;  %v3435_v60 = vsel %vm3312_vm12, %v3307_v32, 0.0 }
 0x515   :  { %v3433_v1 = vsel %vm3312_vm12, %v3306_v35, 0.0 }
 0x516   :  { %v3434_v48 = vadd.f32 %v3433_v1, %v3432_v2 }
 0x518   :  { %v3436_v57 = vadd.f32 %v3435_v60, %v3434_v48 }
 0x52a   :  { %v3818_v28 = vpop.f32.mrf.mxu1 }
 0x52b   :  { %v3235_v51 = vadd.f32 %v7486_v37, %v3818_v28 }
 0x52c   :  { %v3229_v41 = vpop.f32.mrf.mxu1 }
 0x52d   :  { %v3230_v12 = vadd.f32 %v7486_v37, %v3229_v41  ;;  %v3309_v62 = vmax.f32 %v3235_v51, 0.0 }
 0x52f   :  { %v3308_v18 = vmax.f32 %v3230_v12, 0.0  ;;  %v3439_v9 = vsel %vm3312_vm12, %v3309_v62, 0.0 }
 0x531   :  { %v3437_v30 = vsel %vm3312_vm12, %v3308_v18, 0.0 }
 0x532   :  { %v3438_v49 = vadd.f32 %v3437_v30, %v3436_v57 }
 0x534   :  { %v3440_v33 = vadd.f32 %v3439_v9, %v3438_v49 }
 0x537   :  { %v3821_v20 = vpop.f32.mrf.mxu1 }
 0x538   :  { %v3245_v27 = vadd.f32 %v7486_v37, %v3821_v20 }
 0x539   :  { %v3239_v43 = vpop.f32.mrf.mxu1 }
 0x53a   :  { %v3240_v4 = vadd.f32 %v7486_v37, %v3239_v43  ;;  %v3311_v38 = vmax.f32 %v3245_v27, 0.0 }
 0x53c   :  { %v3310_v58 = vmax.f32 %v3240_v4, 0.0  ;;  %v3443_v6 = vsel %vm3312_vm12, %v3311_v38, 0.0 }
 0x53e   :  { %v3441_v26 = vsel %vm3312_vm12, %v3310_v58, 0.0 }
 0x53f   :  { %v3442_v31 = vadd.f32 %v3441_v26, %v3440_v33 }
 0x541   :  { %v3444_v53 = vadd.f32 %v3443_v6, %v3442_v31 }
 0x543   :  { %v3445_v24 = vrot.slane %v3444_v53, 4 }
 0x545   :  { %v3446_v50 = vadd.f32 %v3445_v24, %v3444_v53 }
 0x547   :  { %v3447_v13 = vrot.slane %v3446_v50, 2 }
 0x549   :  { %v3448_v37 = vadd.f32 %v3447_v13, %v3446_v50 }
 0x54b   :  { %v3449_v10 = vrot.slane %v3448_v37, 1 }
 0x54d   :  { %v3450_v39 = vadd.f32 %v3449_v10, %v3448_v37 }
 0x54f   :  { %v3452_v22 = vmul.f32 0.00390625, %v3450_v39 }
 0x551   :  { %v3464_v23 = vsel %vm3463_vm14, %v3452_v22, %v3451_v5 }
 0x552   :  { %3825 = vmatmul.mubr.msk.f32.vlgmr.msra.gmra.mxu1 %vm3312_vm12, %v3464_v23 }
 0x612   :  { %v3533_v44 = vpop.f32.mrf.mxu1 }
 0x613   :  { %v3534_v63 = vadd.f32 %v3646_v55, %v3533_v44 }
 0x614   :  { %v3826_v61 = vpop.f32.mrf.mxu1 }
 0x615   :  { %v3540_v14 = vsel %vm3539_vm15, %v3534_v63, -inf }
 0x616   :  { %3541 = vmax.xlane.f32.xlu0 %v3540_v14 }
 0x69f   :  { %v3542_v15 = vpop.xlane.xlu0 %3541 }
 0x6a0   :  { %vm3543_vm0 = vcmp.eq.f32.partialorder %v3534_v63, %v3542_v15 }
 0x6a1   :  { %v3544_v25 = vsel %vm3543_vm0, %v3538_v19, 10 }
 0x6a2   :  { %v3545_v34 = vsel %vm3539_vm15, %v3544_v25, 2147483647 }
 0x6a3   :  { %v3547_v11 = vshra.s32 %v3545_v34, 16  ;;  %v3546_v54 = vand.u32 65535, %v3545_v34 }
 0x6a5   :  { %v3549_v46 = vcvt.s32.f32 %v3547_v11  ;;  %v3548_v17 = vcvt.s32.f32 %v3546_v54 }
 0x6a7   :  { %3550 = vmin.xlane.f32.xlu1 %v3549_v46 }
 0x730   :  { %v3551_v8 = vpop.xlane.xlu1 %3550 }
 0x731   :  { %vm3552_vm1 = vcmp.eq.f32.partialorder %v3549_v46, %v3551_v8  ;;  %v3557_v28 = vcvt.f32.s32 %v3551_v8 }
 0x732   :  { %v3553_v7 = vsel %vm3552_vm1, %v3548_v17, inf }
 0x733   :  { %3554 = vmin.xlane.f32.xlu0 %v3553_v7  ;;  %v3558_v35 = vshll.u32 %v3557_v28, 16 }
 0x7bc   :  { %v3555_v3 = vpop.xlane.xlu0 %3554 }
 0x7bd   :  { %v3556_v41 = vcvt.f32.s32 %v3555_v3 }
 0x7bf   :  { %v3559_v36 = vadd.s32 %v3558_v35, %v3556_v41 }
 0x7c1   :  { %v3563_v52 = vrot.slane %v3559_v36, %v3562_v29 }
 0x7c3   :  { %3565 = vst.msk [vmem:[#allocation2] sm:$0x1] %vm3564_vm2, %v3563_v52 }
 0x7c4   :  { %3933 = shalt.err (!%p3930_p4)
}
 0x7c5   :  { %3575 = dma.vmem_to_hbm [thread:$0]  %s3573_s1, 16, %s7566_s5, [#allocation3]  }
 0x7c6   :  { %3942 = dma.done.wait [#allocation3], 16  }
 0x7c7   :  { %3943 = vsyncadd [#allocation3], 4294967280 }
 0x7c8   :  { %3579 = vsyncpa [#allocation3], 1 }

</bundles_post_ra>
